<compile_context>
chip_gen: v7x
topology: tpu7x:2x2x1
jax: 0.10.0
libtpu: 0.0.40
codegen_flags: <defaults>
</compile_context>

<pallas_src>
import functools

import numpy as np
import jax
import jax.numpy as jnp
from jax.experimental import pallas as pl
from jax.experimental.pallas import tpu as pltpu

VOCAB = 30000
VOCAB_PAD = 30080          # 235 * 128 — lane-aligned vocab width (pre-padded weights)
LN_EPS = 1e-6              # outer LN is explicitly eps=1e-06 in the reference
# TODO(synk): inner Decoder_Layer LayerNorm eps unknown; using 1e-6 as well.


# ---------------------------------------------------------------------------
# helpers
# ---------------------------------------------------------------------------
def _pick_tile(dim, pref, align):
    """Largest tile <= pref that is `align`-aligned and divides dim; full dim otherwise."""
    if dim <= pref:
        return dim
    t = (pref // align) * align
    while t >= align:
        if dim % t == 0:
            return t
        t -= align
    return dim


# ---------------------------------------------------------------------------
# Tiled matmul + bias  (used for QKV / cross Q,KV projections and final vocab)
# ---------------------------------------------------------------------------
def _matmul_kernel(x_ref, w_ref, b_ref, o_ref, acc_ref):
    @pl.when(pl.program_id(2) == 0)
    def _init():
        acc_ref[...] = jnp.zeros_like(acc_ref)

    acc_ref[...] += jnp.dot(x_ref[...], w_ref[...],
                            preferred_element_type=jnp.float32)

    @pl.when(pl.program_id(2) == pl.num_programs(2) - 1)
    def _flush():
        o_ref[...] = (acc_ref[...] + b_ref[...].astype(jnp.float32)).astype(o_ref.dtype)


def linear(x2d, w, b):
    """x2d: [M, K] @ w: [K, N] + b: [N].  Tiled over (M, N, K) with VMEM accumulator."""
    M, K = x2d.shape
    _, N = w.shape
    tm = _pick_tile(M, 256, 8)
    tn = _pick_tile(N, 640, 128)   # 640 | 30080, lane-dense output stores
    tk = _pick_tile(K, 512, 128)
    grid = (M // tm, N // tn, K // tk)
    return pl.pallas_call(
        _matmul_kernel,
        out_shape=jax.ShapeDtypeStruct((M, N), x2d.dtype),
        grid=grid,
        in_specs=[
            pl.BlockSpec((tm, tk), lambda i, j, k: (i, k)),
            pl.BlockSpec((tk, tn), lambda i, j, k: (k, j)),
            pl.BlockSpec((1, tn), lambda i, j, k: (0, j)),
        ],
        out_specs=pl.BlockSpec((tm, tn), lambda i, j, k: (i, j)),
        scratch_shapes=[pltpu.VMEM((tm, tn), jnp.float32)],
        compiler_params=pltpu.CompilerParams(
            dimension_semantics=("parallel", "parallel", "arbitrary"),
            vmem_limit_bytes=32 * 1024 * 1024),
    )(x2d, w, b.reshape(1, N))


# ---------------------------------------------------------------------------
# LayerNorm (row-tiled) and fused [proj + residual + LN] / [FFN + residual + LN]
# ---------------------------------------------------------------------------
def _ln_math(x, g, beta):
    mu = jnp.mean(x, axis=-1, keepdims=True)
    var = jnp.mean(jnp.square(x - mu), axis=-1, keepdims=True)
    return (x - mu) * jax.lax.rsqrt(var + LN_EPS) * g + beta


def _ln_kernel(x_ref, g_ref, b_ref, o_ref):
    x = x_ref[...].astype(jnp.float32)
    o_ref[...] = _ln_math(x, g_ref[...], b_ref[...]).astype(o_ref.dtype)


def layer_norm(x2d, gamma, beta):
    M, D = x2d.shape
    tm = _pick_tile(M, 256, 8)
    return pl.pallas_call(
        _ln_kernel,
        out_shape=jax.ShapeDtypeStruct((M, D), x2d.dtype),
        grid=(M // tm,),
        in_specs=[
            pl.BlockSpec((tm, D), lambda i: (i, 0)),
            pl.BlockSpec((1, D), lambda i: (0, 0)),
            pl.BlockSpec((1, D), lambda i: (0, 0)),
        ],
        out_specs=pl.BlockSpec((tm, D), lambda i: (i, 0)),
        compiler_params=pltpu.CompilerParams(dimension_semantics=("parallel",)),
    )(x2d, gamma.reshape(1, D), beta.reshape(1, D))


def _proj_add_ln_kernel(ctx_ref, res_ref, w_ref, b_ref, g_ref, beta_ref, o_ref):
    # out = LN(res + ctx @ W + b)   -- output projection fused with residual + LN
    y = jnp.dot(ctx_ref[...].astype(jnp.float32), w_ref[...].astype(jnp.float32),
                preferred_element_type=jnp.float32) + b_ref[...].astype(jnp.float32)
    x = y + res_ref[...].astype(jnp.float32)
    o_ref[...] = _ln_math(x, g_ref[...], beta_ref[...]).astype(o_ref.dtype)


def proj_add_ln(ctx2d, res2d, w, b, gamma, beta):
    M, D = ctx2d.shape
    tm = _pick_tile(M, 256, 8)
    return pl.pallas_call(
        _proj_add_ln_kernel,
        out_shape=jax.ShapeDtypeStruct((M, D), ctx2d.dtype),
        grid=(M // tm,),
        in_specs=[
            pl.BlockSpec((tm, D), lambda i: (i, 0)),
            pl.BlockSpec((tm, D), lambda i: (i, 0)),
            pl.BlockSpec((D, D), lambda i: (0, 0)),
            pl.BlockSpec((1, D), lambda i: (0, 0)),
            pl.BlockSpec((1, D), lambda i: (0, 0)),
            pl.BlockSpec((1, D), lambda i: (0, 0)),
        ],
        out_specs=pl.BlockSpec((tm, D), lambda i: (i, 0)),
        compiler_params=pltpu.CompilerParams(dimension_semantics=("parallel",)),
    )(ctx2d, res2d, w, b.reshape(1, D), gamma.reshape(1, D), beta.reshape(1, D))


def _ffn_ln_kernel(x_ref, w1_ref, b1_ref, w2_ref, b2_ref, g_ref, beta_ref, o_ref):
    # out = LN(x + ReLU(x @ W1 + b1) @ W2 + b2) ; hidden stays in VMEM/vregs
    x = x_ref[...].astype(jnp.float32)
    h = jnp.dot(x, w1_ref[...].astype(jnp.float32),
                preferred_element_type=jnp.float32) + b1_ref[...].astype(jnp.float32)
    h = jnp.maximum(h, 0.0)
    y = jnp.dot(h, w2_ref[...].astype(jnp.float32),
                preferred_element_type=jnp.float32) + b2_ref[...].astype(jnp.float32)
    o_ref[...] = _ln_math(x + y, g_ref[...], beta_ref[...]).astype(o_ref.dtype)


def ffn_ln(x2d, w1, b1, w2, b2, gamma, beta):
    # TODO(synk): for very large D the full [D,4D]/[4D,D] weights per block would need
    # K/N tiling; at these model sizes they comfortably fit VMEM.
    M, D = x2d.shape
    H = w1.shape[1]
    tm = _pick_tile(M, 256, 8)
    return pl.pallas_call(
        _ffn_ln_kernel,
        out_shape=jax.ShapeDtypeStruct((M, D), x2d.dtype),
        grid=(M // tm,),
        in_specs=[
            pl.BlockSpec((tm, D), lambda i: (i, 0)),
            pl.BlockSpec((D, H), lambda i: (0, 0)),
            pl.BlockSpec((1, H), lambda i: (0, 0)),
            pl.BlockSpec((H, D), lambda i: (0, 0)),
            pl.BlockSpec((1, D), lambda i: (0, 0)),
            pl.BlockSpec((1, D), lambda i: (0, 0)),
            pl.BlockSpec((1, D), lambda i: (0, 0)),
        ],
        out_specs=pl.BlockSpec((tm, D), lambda i: (i, 0)),
        compiler_params=pltpu.CompilerParams(dimension_semantics=("parallel",)),
    )(x2d, w1, b1.reshape(1, H), w2, b2.reshape(1, D),
      gamma.reshape(1, D), beta.reshape(1, D))


# ---------------------------------------------------------------------------
# Attention: all heads processed in one lane-dense [S, D] block per batch;
# head slices taken in-kernel (no [B,H,S,dh] transposes, no broadcast mask).
# ---------------------------------------------------------------------------
def _attn_core(q, k, v, bias, heads, scale):
    D = q.shape[-1]
    dh = D // heads
    outs = []
    for h in range(heads):
        sl = slice(h * dh, (h + 1) * dh)
        s = jnp.dot(q[:, sl], k[:, sl].T, preferred_element_type=jnp.float32)
        s = s * scale + bias
        m = jnp.max(s, axis=-1, keepdims=True)
        p = jnp.exp(s - m)
        l = jnp.sum(p, axis=-1, keepdims=True)
        ctx = jnp.dot(p, v[:, sl], preferred_element_type=jnp.float32)
        outs.append(ctx * pl.reciprocal(l, approx=True))
    return jnp.concatenate(outs, axis=-1)


def _self_attn_kernel(qkv_ref, m_ref, o_ref, *, heads, scale):
    qkv = qkv_ref[0].astype(jnp.float32)                 # [S, 3D]
    D = qkv.shape[-1] // 3
    q, k, v = qkv[:, :D], qkv[:, D:2 * D], qkv[:, 2 * D:]
    bias = m_ref[0, 0].astype(jnp.float32)               # [S, S] (or [1, S])
    o_ref[0] = _attn_core(q, k, v, bias, heads, scale).astype(o_ref.dtype)


def _cross_attn_kernel(q_ref, kv_ref, m_ref, o_ref, *, heads, scale):
    q = q_ref[0].astype(jnp.float32)                     # [Sq, D]
    kv = kv_ref[0].astype(jnp.float32)                   # [Sk, 2D]
    D = q.shape[-1]
    k, v = kv[:, :D], kv[:, D:]
    bias = m_ref[0, 0].astype(jnp.float32)               # [1, Sk] or [Sq, Sk]
    o_ref[0] = _attn_core(q, k, v, bias, heads, scale).astype(o_ref.dtype)


def _mask_spec(mask):
    mb, _, mq, mk = mask.shape
    return pl.BlockSpec((1, 1, mq, mk),
                        lambda bb: (bb if mb > 1 else 0, 0, 0, 0))


def mha_self(qkv3d, mask, heads):
    B, S, D3 = qkv3d.shape
    D = D3 // 3
    scale = 1.0 / float(np.sqrt(D // heads))
    return pl.pallas_call(
        functools.partial(_self_attn_kernel, heads=heads, scale=scale),
        out_shape=jax.ShapeDtypeStruct((B, S, D), qkv3d.dtype),
        grid=(B,),
        in_specs=[
            pl.BlockSpec((1, S, D3), lambda bb: (bb, 0, 0)),
            _mask_spec(mask),
        ],
        out_specs=pl.BlockSpec((1, S, D), lambda bb: (bb, 0, 0)),
        compiler_params=pltpu.CompilerParams(dimension_semantics=("parallel",)),
    )(qkv3d, mask.astype(jnp.float32))


def mha_cross(q3d, kv3d, mask, heads):
    B, Sq, D = q3d.shape
    Sk = kv3d.shape[1]
    scale = 1.0 / float(np.sqrt(D // heads))
    return pl.pallas_call(
        functools.partial(_cross_attn_kernel, heads=heads, scale=scale),
        out_shape=jax.ShapeDtypeStruct((B, Sq, D), q3d.dtype),
        grid=(B,),
        in_specs=[
            pl.BlockSpec((1, Sq, D), lambda bb: (bb, 0, 0)),
            pl.BlockSpec((1, Sk, 2 * D), lambda bb: (bb, 0, 0)),
            _mask_spec(mask),
        ],
        out_specs=pl.BlockSpec((1, Sq, D), lambda bb: (bb, 0, 0)),
        compiler_params=pltpu.CompilerParams(dimension_semantics=("parallel",)),
    )(q3d, kv3d, mask.astype(jnp.float32))


# ---------------------------------------------------------------------------
# Decoder forward
# ---------------------------------------------------------------------------
def decoder_layer(x, trg_mask, enc_out, src_mask, p, heads):
    B, S, D = x.shape
    M = B * S
    x2d = x.reshape(M, D)

    # --- self attention (fused QKV projection, fused out-proj + residual + LN) ---
    qkv = linear(x2d, p["self_wqkv"], p["self_bqkv"]).reshape(B, S, 3 * D)
    ctx = mha_self(qkv, trg_mask, heads).reshape(M, D)
    x2d = proj_add_ln(ctx, x2d, p["self_wo"], p["self_bo"], p["ln1_g"], p["ln1_b"])

    # --- cross attention (fused KV projection of encoder output) ---
    Bk, Sk, _ = enc_out.shape
    q = linear(x2d, p["cross_wq"], p["cross_bq"]).reshape(B, S, D)
    kv = linear(enc_out.reshape(Bk * Sk, D), p["cross_wkv"], p["cross_bkv"]).reshape(B, Sk, 2 * D)
    ctx = mha_cross(q, kv, src_mask, heads).reshape(M, D)
    x2d = proj_add_ln(ctx, x2d, p["cross_wo"], p["cross_bo"], p["ln2_g"], p["ln2_b"])

    # --- fused FFN + residual + LN (hidden never touches HBM) ---
    x2d = ffn_ln(x2d, p["ffn_w1"], p["ffn_b1"], p["ffn_w2"], p["ffn_b2"],
                 p["ln3_g"], p["ln3_b"])
    return x2d.reshape(B, S, D)


def decoder_forward(params, trg_data, trg_tri_mask, encoder_out, src_mask, heads):
    B, S = trg_data.shape
    D = params["embed"].shape[1]
    # token embedding * sqrt(D) + sinusoidal positional encoding (glue: gather)
    emb = jnp.take(params["embed"], trg_data, axis=0) * jnp.sqrt(jnp.float32(D))
    emb = emb + params["pos_enc"][None, :S, :]
    # dropout(0.1): identity in eval mode
    x2d = layer_norm(emb.reshape(B * S, D), params["ln_g"], params["ln_b"])
    x = x2d.reshape(B, S, D)
    for layer_p in params["layers"]:
        x = decoder_layer(x, trg_tri_mask, encoder_out, src_mask, layer_p, heads)
    # final projection on pre-padded (lane-aligned) vocab weights
    logits = linear(x.reshape(B * S, D), params["final_w"], params["final_b"])
    return logits[:, :VOCAB].reshape(B, S, VOCAB)


# ---------------------------------------------------------------------------
# Deterministic parameter construction
# ---------------------------------------------------------------------------
def sinusoidal_pe(seq_len, d):
    pos = np.arange(seq_len)[:, None].astype(np.float32)
    i = np.arange(d)[None, :].astype(np.float32)
    angle = pos / np.power(10000.0, (2.0 * np.floor(i / 2.0)) / d)
    pe = np.where((np.arange(d)[None, :] % 2) == 0, np.sin(angle), np.cos(angle))
    return jnp.asarray(pe, jnp.float32)


def init_params(key, seq_len, embed_dim, heads, n_layer):
    D = embed_dim
    H = 4 * D

    def dense(k, fan_in, fan_out):
        w = jax.random.normal(k, (fan_in, fan_out), jnp.float32) * 0.02
        b = jnp.zeros((fan_out,), jnp.float32)
        return w, b

    keys = jax.random.split(key, 4 + n_layer)
    params = {
        "embed": jax.random.normal(keys[0], (VOCAB, D), jnp.float32) * 0.02,
        "pos_enc": sinusoidal_pe(seq_len, D),
        "ln_g": jnp.ones((D,), jnp.float32),
        "ln_b": jnp.zeros((D,), jnp.float32),
        "layers": [],
    }
    # final vocab projection, pre-padded once to a lane-aligned width
    fw, fb = dense(keys[1], D, VOCAB)
    params["final_w"] = jnp.pad(fw, ((0, 0), (0, VOCAB_PAD - VOCAB)))
    params["final_b"] = jnp.pad(fb, ((0, VOCAB_PAD - VOCAB),))

    for li in range(n_layer):
        lk = jax.random.split(keys[4 + li], 8)
        # fused QKV weight [D, 3D] for self-attention
        wq, _ = dense(lk[0], D, D)
        wk, _ = dense(lk[1], D, D)
        wv, _ = dense(lk[2], D, D)
        wo_s, bo_s = dense(lk[3], D, D)
        # cross-attention: Q from decoder state, fused KV [D, 2D] from encoder out
        wq_c, bq_c = dense(lk[4], D, D)
        wk_c, _ = dense(lk[5], D, D)
        wv_c, _ = dense(lk[6], D, D)
        wo_c, bo_c = dense(lk[7], D, D)
        w1, b1 = dense(jax.random.fold_in(lk[0], 1), D, H)
        w2, b2 = dense(jax.random.fold_in(lk[1], 2), H, D)
        params["layers"].append(dict(
            self_wqkv=jnp.concatenate([wq, wk, wv], axis=1),
            self_bqkv=jnp.zeros((3 * D,), jnp.float32),
            self_wo=wo_s, self_bo=bo_s,
            cross_wq=wq_c, cross_bq=bq_c,
            cross_wkv=jnp.concatenate([wk_c, wv_c], axis=1),
            cross_bkv=jnp.zeros((2 * D,), jnp.float32),
            cross_wo=wo_c, cross_bo=bo_c,
            ffn_w1=w1, ffn_b1=b1, ffn_w2=w2, ffn_b2=b2,
            ln1_g=jnp.ones((D,), jnp.float32), ln1_b=jnp.zeros((D,), jnp.float32),
            ln2_g=jnp.ones((D,), jnp.float32), ln2_b=jnp.zeros((D,), jnp.float32),
            ln3_g=jnp.ones((D,), jnp.float32), ln3_b=jnp.zeros((D,), jnp.float32),
        ))
    return params


# ---------------------------------------------------------------------------
if __name__ == "__main__":
    B, S, D, HEADS, N_LAYER = 2, 8, 32, 4, 2
    S_SRC = 8

    key = jax.random.PRNGKey(0)
    k_param, k_tok, k_enc = jax.random.split(key, 3)

    params = init_params(k_param, S, D, HEADS, N_LAYER)

    trg_data = jax.random.randint(k_tok, (B, S), 0, VOCAB, dtype=jnp.int32)
    encoder_out = jax.random.normal(k_enc, (B, S_SRC, D), jnp.float32)

    # causal (lower-triangular) additive mask for target self-attention
    causal = jnp.tril(jnp.ones((S, S), jnp.float32))
    trg_tri_mask = ((1.0 - causal) * -1e9)[None, None, :, :]            # [1,1,S,S]
    # source padding mask (all tokens valid here): [B,1,1,S_src]
    src_mask = jnp.zeros((B, 1, 1, S_SRC), jnp.float32)

    fwd = jax.jit(functools.partial(decoder_forward, heads=HEADS))
    out = fwd(params, trg_data, trg_tri_mask, encoder_out, src_mask)
    out = jax.block_until_ready(out)

    assert out.shape == (B, S, VOCAB), out.shape
    assert jnp.all(jnp.isfinite(out))
    print("KERNEL_OK")
</pallas_src>

<mosaic_0001>
module attributes {stable_mosaic.version = 11 : i64} {
  func.func @_ln_kernel(%arg0: i32, %arg1: memref<16x32xf32, #tpu.memory_space<vmem>>, %arg2: memref<1x32xf32, #tpu.memory_space<vmem>>, %arg3: memref<1x32xf32, #tpu.memory_space<vmem>>, %arg4: memref<16x32xf32, #tpu.memory_space<vmem>>) attributes {dimension_semantics = [#tpu.dimension_semantics<parallel>], iteration_bounds = array<i64: 1>, scalar_prefetch = 0 : i64, scratch_operands = 0 : i64, tpu.core_type = #tpu.core_type<tc>, window_params = [{transform_indices = @transform_0, window_bounds = array<i64: 16, 32>}, {pipeline_mode = #tpu.pipeline_mode<synchronous>, transform_indices = @transform_1, window_bounds = array<i64: 1, 32>}, {pipeline_mode = #tpu.pipeline_mode<synchronous>, transform_indices = @transform_2, window_bounds = array<i64: 1, 32>}, {transform_indices = @transform_3, window_bounds = array<i64: 16, 32>}]} {
    %c0 = arith.constant 0 : index
    %c0_0 = arith.constant 0 : index
    %0 = vector.load %arg1[%c0, %c0_0] : memref<16x32xf32, #tpu.memory_space<vmem>>, vector<16x32xf32>
    %c0_1 = arith.constant 0 : index
    %c0_2 = arith.constant 0 : index
    %1 = vector.load %arg2[%c0_1, %c0_2] : memref<1x32xf32, #tpu.memory_space<vmem>>, vector<1x32xf32>
    %c0_3 = arith.constant 0 : index
    %c0_4 = arith.constant 0 : index
    %2 = vector.load %arg3[%c0_3, %c0_4] : memref<1x32xf32, #tpu.memory_space<vmem>>, vector<1x32xf32>
    %cst = arith.constant dense<0.000000e+00> : vector<16xf32>
    %3 = vector.multi_reduction <add>, %0, %cst [1] : vector<16x32xf32> to vector<16xf32>
    %4 = vector.shape_cast %3 : vector<16xf32> to vector<16x1xf32>
    %cst_5 = arith.constant 3.200000e+01 : f32
    %5 = vector.broadcast %cst_5 : f32 to vector<16x1xf32>
    %6 = arith.divf %4, %5 : vector<16x1xf32>
    %7 = vector.broadcast %6 : vector<16x1xf32> to vector<16x32xf32>
    %8 = arith.subf %0, %7 : vector<16x32xf32>
    %9 = arith.mulf %8, %8 : vector<16x32xf32>
    %cst_6 = arith.constant dense<0.000000e+00> : vector<16xf32>
    %10 = vector.multi_reduction <add>, %9, %cst_6 [1] : vector<16x32xf32> to vector<16xf32>
    %11 = vector.shape_cast %10 : vector<16xf32> to vector<16x1xf32>
    %cst_7 = arith.constant 3.200000e+01 : f32
    %12 = vector.broadcast %cst_7 : f32 to vector<16x1xf32>
    %13 = arith.divf %11, %12 : vector<16x1xf32>
    %14 = vector.broadcast %6 : vector<16x1xf32> to vector<16x32xf32>
    %15 = arith.subf %0, %14 : vector<16x32xf32>
    %cst_8 = arith.constant 9.99999997E-7 : f32
    %16 = vector.broadcast %cst_8 : f32 to vector<16x1xf32>
    %17 = arith.addf %13, %16 : vector<16x1xf32>
    %18 = math.rsqrt %17 : vector<16x1xf32>
    %19 = vector.broadcast %18 : vector<16x1xf32> to vector<16x32xf32>
    %20 = arith.mulf %15, %19 : vector<16x32xf32>
    %21 = vector.broadcast %1 : vector<1x32xf32> to vector<16x32xf32>
    %22 = arith.mulf %20, %21 : vector<16x32xf32>
    %23 = vector.broadcast %2 : vector<1x32xf32> to vector<16x32xf32>
    %24 = arith.addf %22, %23 : vector<16x32xf32>
    %c0_9 = arith.constant 0 : index
    %c0_10 = arith.constant 0 : index
    %25 = vector.load %arg4[%c0_9, %c0_10] : memref<16x32xf32, #tpu.memory_space<vmem>>, vector<16x32xf32>
    tpu.vector_store %arg4[%c0_9, %c0_10], %24 {strides = array<i32>} : memref<16x32xf32, #tpu.memory_space<vmem>>, vector<16x32xf32>,
    return
  }
  func.func @transform_0(%arg0: i32) -> (i32, i32) {
    %c0_i32 = arith.constant 0 : i32
    %c0_i32_0 = arith.constant 0 : i32
    return %arg0, %c0_i32 : i32, i32
  }
  func.func @transform_1(%arg0: i32) -> (i32, i32) {
    %c0_i32 = arith.constant 0 : i32
    %c0_i32_0 = arith.constant 0 : i32
    %c0_i32_1 = arith.constant 0 : i32
    return %c0_i32, %c0_i32_0 : i32, i32
  }
  func.func @transform_2(%arg0: i32) -> (i32, i32) {
    %c0_i32 = arith.constant 0 : i32
    %c0_i32_0 = arith.constant 0 : i32
    %c0_i32_1 = arith.constant 0 : i32
    return %c0_i32, %c0_i32_0 : i32, i32
  }
  func.func @transform_3(%arg0: i32) -> (i32, i32) {
    %c0_i32 = arith.constant 0 : i32
    %c0_i32_0 = arith.constant 0 : i32
    return %arg0, %c0_i32 : i32, i32
  }
}

module attributes {stable_mosaic.version = 11 : i64} {
  func.func @_matmul_kernel(%arg0: i32, %arg1: i32, %arg2: i32, %arg3: memref<16x32xf32, #tpu.memory_space<vmem>>, %arg4: memref<32x96xf32, #tpu.memory_space<vmem>>, %arg5: memref<1x96xf32, #tpu.memory_space<vmem>>, %arg6: memref<16x96xf32, #tpu.memory_space<vmem>>, %arg7: memref<16x96xf32, #tpu.memory_space<vmem>>) attributes {dimension_semantics = [#tpu.dimension_semantics<parallel>, #tpu.dimension_semantics<parallel>, #tpu.dimension_semantics<arbitrary>], iteration_bounds = array<i64: 1, 1, 1>, scalar_prefetch = 0 : i64, scratch_operands = 1 : i64, tpu.core_type = #tpu.core_type<tc>, window_params = [{transform_indices = @transform_0, window_bounds = array<i64: 16, 32>}, {transform_indices = @transform_1, window_bounds = array<i64: 32, 96>}, {transform_indices = @transform_2, window_bounds = array<i64: 1, 96>}, {transform_indices = @transform_3, window_bounds = array<i64: 16, 96>}]} {
    %c0_i32 = arith.constant 0 : i32
    %0 = arith.cmpi eq, %arg2, %c0_i32 : i32
    %1 = arith.extui %0 : i1 to i32
    %c0_i32_0 = arith.constant 0 : i32
    %2 = arith.cmpi ne, %1, %c0_i32_0 : i32
    scf.if %2 {
      %cst_10 = arith.constant 0.000000e+00 : f32
      %12 = vector.broadcast %cst_10 : f32 to vector<16x96xf32>
      %c0_11 = arith.constant 0 : index
      %c0_12 = arith.constant 0 : index
      %13 = vector.load %arg7[%c0_11, %c0_12] : memref<16x96xf32, #tpu.memory_space<vmem>>, vector<16x96xf32>
      tpu.vector_store %arg7[%c0_11, %c0_12], %12 {strides = array<i32>} : memref<16x96xf32, #tpu.memory_space<vmem>>, vector<16x96xf32>,
    } else {
    }
    %c0 = arith.constant 0 : index
    %c0_1 = arith.constant 0 : index
    %3 = vector.load %arg7[%c0, %c0_1] : memref<16x96xf32, #tpu.memory_space<vmem>>, vector<16x96xf32>
    %c0_2 = arith.constant 0 : index
    %c0_3 = arith.constant 0 : index
    %4 = vector.load %arg3[%c0_2, %c0_3] : memref<16x32xf32, #tpu.memory_space<vmem>>, vector<16x32xf32>
    %c0_4 = arith.constant 0 : index
    %c0_5 = arith.constant 0 : index
    %5 = vector.load %arg4[%c0_4, %c0_5] : memref<32x96xf32, #tpu.memory_space<vmem>>, vector<32x96xf32>
    %cst = arith.constant dense<0.000000e+00> : vector<16x96xf32>
    %6 = tpu.matmul %4, %5, %cst {dimension_numbers = #tpu.dot_dimension_numbers<[1], [0], [0], [1], [0, 0, 1, 1], [], []>} : vector<16x32xf32>, vector<32x96xf32>, vector<16x96xf32> -> vector<16x96xf32>
    %7 = arith.addf %3, %6 : vector<16x96xf32>
    %c0_6 = arith.constant 0 : index
    %c0_7 = arith.constant 0 : index
    %8 = vector.load %arg7[%c0_6, %c0_7] : memref<16x96xf32, #tpu.memory_space<vmem>>, vector<16x96xf32>
    tpu.vector_store %arg7[%c0_6, %c0_7], %7 {strides = array<i32>} : memref<16x96xf32, #tpu.memory_space<vmem>>, vector<16x96xf32>,
    %c0_i32_8 = arith.constant 0 : i32
    %9 = arith.cmpi eq, %arg2, %c0_i32_8 : i32
    %10 = arith.extui %9 : i1 to i32
    %c0_i32_9 = arith.constant 0 : i32
    %11 = arith.cmpi ne, %10, %c0_i32_9 : i32
    scf.if %11 {
      %c0_10 = arith.constant 0 : index
      %c0_11 = arith.constant 0 : index
      %12 = vector.load %arg7[%c0_10, %c0_11] : memref<16x96xf32, #tpu.memory_space<vmem>>, vector<16x96xf32>
      %c0_12 = arith.constant 0 : index
      %c0_13 = arith.constant 0 : index
      %13 = vector.load %arg5[%c0_12, %c0_13] : memref<1x96xf32, #tpu.memory_space<vmem>>, vector<1x96xf32>
      %14 = vector.broadcast %13 : vector<1x96xf32> to vector<16x96xf32>
      %15 = arith.addf %12, %14 : vector<16x96xf32>
      %c0_14 = arith.constant 0 : index
      %c0_15 = arith.constant 0 : index
      %16 = vector.load %arg6[%c0_14, %c0_15] : memref<16x96xf32, #tpu.memory_space<vmem>>, vector<16x96xf32>
      tpu.vector_store %arg6[%c0_14, %c0_15], %15 {strides = array<i32>} : memref<16x96xf32, #tpu.memory_space<vmem>>, vector<16x96xf32>,
    } else {
    }
    return
  }
  func.func @transform_0(%arg0: i32, %arg1: i32, %arg2: i32) -> (i32, i32) {
    %c0_i32 = arith.constant 0 : i32
    return %arg0, %arg2 : i32, i32
  }
  func.func @transform_1(%arg0: i32, %arg1: i32, %arg2: i32) -> (i32, i32) {
    %c0_i32 = arith.constant 0 : i32
    return %arg2, %arg1 : i32, i32
  }
  func.func @transform_2(%arg0: i32, %arg1: i32, %arg2: i32) -> (i32, i32) {
    %c0_i32 = arith.constant 0 : i32
    %c0_i32_0 = arith.constant 0 : i32
    return %c0_i32, %arg1 : i32, i32
  }
  func.func @transform_3(%arg0: i32, %arg1: i32, %arg2: i32) -> (i32, i32) {
    %c0_i32 = arith.constant 0 : i32
    return %arg0, %arg1 : i32, i32
  }
}

module attributes {stable_mosaic.version = 11 : i64} {
  func.func @_self_attn_kernel(%arg0: i32, %arg1: memref<1x8x96xf32, #tpu.memory_space<vmem>>, %arg2: memref<1x1x8x8xf32, #tpu.memory_space<vmem>>, %arg3: memref<1x8x32xf32, #tpu.memory_space<vmem>>) attributes {dimension_semantics = [#tpu.dimension_semantics<parallel>], iteration_bounds = array<i64: 2>, scalar_prefetch = 0 : i64, scratch_operands = 0 : i64, tpu.core_type = #tpu.core_type<tc>, window_params = [{transform_indices = @transform_0, window_bounds = array<i64: 1, 8, 96>}, {pipeline_mode = #tpu.pipeline_mode<synchronous>, transform_indices = @transform_1, window_bounds = array<i64: 1, 1, 8, 8>}, {transform_indices = @transform_2, window_bounds = array<i64: 1, 8, 32>}]} {
    %c0 = arith.constant 0 : index
    %c0_0 = arith.constant 0 : index
    %c0_1 = arith.constant 0 : index
    %0 = vector.load %arg1[%c0, %c0_0, %c0_1] : memref<1x8x96xf32, #tpu.memory_space<vmem>>, vector<1x8x96xf32>
    %1 = vector.shape_cast %0 : vector<1x8x96xf32> to vector<8x96xf32>
    %2 = vector.extract_strided_slice %1 {offsets = [0, 0], sizes = [8, 32], strides = [1, 1]} : vector<8x96xf32> to vector<8x32xf32>
    %3 = vector.extract_strided_slice %1 {offsets = [0, 32], sizes = [8, 32], strides = [1, 1]} : vector<8x96xf32> to vector<8x32xf32>
    %4 = vector.extract_strided_slice %1 {offsets = [0, 64], sizes = [8, 32], strides = [1, 1]} : vector<8x96xf32> to vector<8x32xf32>
    %c0_2 = arith.constant 0 : index
    %c0_3 = arith.constant 0 : index
    %c0_4 = arith.constant 0 : index
    %c0_5 = arith.constant 0 : index
    %5 = vector.load %arg2[%c0_2, %c0_3, %c0_4, %c0_5] : memref<1x1x8x8xf32, #tpu.memory_space<vmem>>, vector<1x1x8x8xf32>
    %6 = vector.shape_cast %5 : vector<1x1x8x8xf32> to vector<8x8xf32>
    %7 = vector.extract_strided_slice %2 {offsets = [0, 0], sizes = [8, 8], strides = [1, 1]} : vector<8x32xf32> to vector<8x8xf32>
    %8 = vector.extract_strided_slice %3 {offsets = [0, 0], sizes = [8, 8], strides = [1, 1]} : vector<8x32xf32> to vector<8x8xf32>
    %9 = tpu.transpose %8, [1, 0] : vector<8x8xf32> -> vector<8x8xf32>
    %cst = arith.constant dense<0.000000e+00> : vector<8x8xf32>
    %10 = tpu.matmul %7, %9, %cst {dimension_numbers = #tpu.dot_dimension_numbers<[1], [0], [0], [1], [0, 0, 1, 1], [], []>} : vector<8x8xf32>, vector<8x8xf32>, vector<8x8xf32> -> vector<8x8xf32>
    %cst_6 = arith.constant 0.353553385 : f32
    %11 = vector.broadcast %cst_6 : f32 to vector<8x8xf32>
    %12 = arith.mulf %10, %11 : vector<8x8xf32>
    %13 = arith.addf %12, %6 : vector<8x8xf32>
    %cst_7 = arith.constant dense<0xFF800000> : vector<8xf32>
    %14 = vector.multi_reduction <maximumf>, %13, %cst_7 [1] : vector<8x8xf32> to vector<8xf32>
    %15 = vector.shape_cast %14 : vector<8xf32> to vector<8x1xf32>
    %16 = vector.broadcast %15 : vector<8x1xf32> to vector<8x8xf32>
    %17 = arith.subf %13, %16 : vector<8x8xf32>
    %18 = math.exp %17 : vector<8x8xf32>
    %cst_8 = arith.constant dense<0.000000e+00> : vector<8xf32>
    %19 = vector.multi_reduction <add>, %18, %cst_8 [1] : vector<8x8xf32> to vector<8xf32>
    %20 = vector.shape_cast %19 : vector<8xf32> to vector<8x1xf32>
    %21 = vector.extract_strided_slice %4 {offsets = [0, 0], sizes = [8, 8], strides = [1, 1]} : vector<8x32xf32> to vector<8x8xf32>
    %cst_9 = arith.constant dense<0.000000e+00> : vector<8x8xf32>
    %22 = tpu.matmul %18, %21, %cst_9 {dimension_numbers = #tpu.dot_dimension_numbers<[1], [0], [0], [1], [0, 0, 1, 1], [], []>} : vector<8x8xf32>, vector<8x8xf32>, vector<8x8xf32> -> vector<8x8xf32>
    %23 = tpu.reciprocal %20 {approx = true} : vector<8x1xf32> -> vector<8x1xf32>
    %24 = vector.broadcast %23 : vector<8x1xf32> to vector<8x8xf32>
    %25 = arith.mulf %22, %24 : vector<8x8xf32>
    %26 = vector.extract_strided_slice %2 {offsets = [0, 8], sizes = [8, 8], strides = [1, 1]} : vector<8x32xf32> to vector<8x8xf32>
    %27 = vector.extract_strided_slice %3 {offsets = [0, 8], sizes = [8, 8], strides = [1, 1]} : vector<8x32xf32> to vector<8x8xf32>
    %28 = tpu.transpose %27, [1, 0] : vector<8x8xf32> -> vector<8x8xf32>
    %cst_10 = arith.constant dense<0.000000e+00> : vector<8x8xf32>
    %29 = tpu.matmul %26, %28, %cst_10 {dimension_numbers = #tpu.dot_dimension_numbers<[1], [0], [0], [1], [0, 0, 1, 1], [], []>} : vector<8x8xf32>, vector<8x8xf32>, vector<8x8xf32> -> vector<8x8xf32>
    %cst_11 = arith.constant 0.353553385 : f32
    %30 = vector.broadcast %cst_11 : f32 to vector<8x8xf32>
    %31 = arith.mulf %29, %30 : vector<8x8xf32>
    %32 = arith.addf %31, %6 : vector<8x8xf32>
    %cst_12 = arith.constant dense<0xFF800000> : vector<8xf32>
    %33 = vector.multi_reduction <maximumf>, %32, %cst_12 [1] : vector<8x8xf32> to vector<8xf32>
    %34 = vector.shape_cast %33 : vector<8xf32> to vector<8x1xf32>
    %35 = vector.broadcast %34 : vector<8x1xf32> to vector<8x8xf32>
    %36 = arith.subf %32, %35 : vector<8x8xf32>
    %37 = math.exp %36 : vector<8x8xf32>
    %cst_13 = arith.constant dense<0.000000e+00> : vector<8xf32>
    %38 = vector.multi_reduction <add>, %37, %cst_13 [1] : vector<8x8xf32> to vector<8xf32>
    %39 = vector.shape_cast %38 : vector<8xf32> to vector<8x1xf32>
    %40 = vector.extract_strided_slice %4 {offsets = [0, 8], sizes = [8, 8], strides = [1, 1]} : vector<8x32xf32> to vector<8x8xf32>
    %cst_14 = arith.constant dense<0.000000e+00> : vector<8x8xf32>
    %41 = tpu.matmul %37, %40, %cst_14 {dimension_numbers = #tpu.dot_dimension_numbers<[1], [0], [0], [1], [0, 0, 1, 1], [], []>} : vector<8x8xf32>, vector<8x8xf32>, vector<8x8xf32> -> vector<8x8xf32>
    %42 = tpu.reciprocal %39 {approx = true} : vector<8x1xf32> -> vector<8x1xf32>
    %43 = vector.broadcast %42 : vector<8x1xf32> to vector<8x8xf32>
    %44 = arith.mulf %41, %43 : vector<8x8xf32>
    %45 = vector.extract_strided_slice %2 {offsets = [0, 16], sizes = [8, 8], strides = [1, 1]} : vector<8x32xf32> to vector<8x8xf32>
    %46 = vector.extract_strided_slice %3 {offsets = [0, 16], sizes = [8, 8], strides = [1, 1]} : vector<8x32xf32> to vector<8x8xf32>
    %47 = tpu.transpose %46, [1, 0] : vector<8x8xf32> -> vector<8x8xf32>
    %cst_15 = arith.constant dense<0.000000e+00> : vector<8x8xf32>
    %48 = tpu.matmul %45, %47, %cst_15 {dimension_numbers = #tpu.dot_dimension_numbers<[1], [0], [0], [1], [0, 0, 1, 1], [], []>} : vector<8x8xf32>, vector<8x8xf32>, vector<8x8xf32> -> vector<8x8xf32>
    %cst_16 = arith.constant 0.353553385 : f32
    %49 = vector.broadcast %cst_16 : f32 to vector<8x8xf32>
    %50 = arith.mulf %48, %49 : vector<8x8xf32>
    %51 = arith.addf %50, %6 : vector<8x8xf32>
    %cst_17 = arith.constant dense<0xFF800000> : vector<8xf32>
    %52 = vector.multi_reduction <maximumf>, %51, %cst_17 [1] : vector<8x8xf32> to vector<8xf32>
    %53 = vector.shape_cast %52 : vector<8xf32> to vector<8x1xf32>
    %54 = vector.broadcast %53 : vector<8x1xf32> to vector<8x8xf32>
    %55 = arith.subf %51, %54 : vector<8x8xf32>
    %56 = math.exp %55 : vector<8x8xf32>
    %cst_18 = arith.constant dense<0.000000e+00> : vector<8xf32>
    %57 = vector.multi_reduction <add>, %56, %cst_18 [1] : vector<8x8xf32> to vector<8xf32>
    %58 = vector.shape_cast %57 : vector<8xf32> to vector<8x1xf32>
    %59 = vector.extract_strided_slice %4 {offsets = [0, 16], sizes = [8, 8], strides = [1, 1]} : vector<8x32xf32> to vector<8x8xf32>
    %cst_19 = arith.constant dense<0.000000e+00> : vector<8x8xf32>
    %60 = tpu.matmul %56, %59, %cst_19 {dimension_numbers = #tpu.dot_dimension_numbers<[1], [0], [0], [1], [0, 0, 1, 1], [], []>} : vector<8x8xf32>, vector<8x8xf32>, vector<8x8xf32> -> vector<8x8xf32>
    %61 = tpu.reciprocal %58 {approx = true} : vector<8x1xf32> -> vector<8x1xf32>
    %62 = vector.broadcast %61 : vector<8x1xf32> to vector<8x8xf32>
    %63 = arith.mulf %60, %62 : vector<8x8xf32>
    %64 = vector.extract_strided_slice %2 {offsets = [0, 24], sizes = [8, 8], strides = [1, 1]} : vector<8x32xf32> to vector<8x8xf32>
    %65 = vector.extract_strided_slice %3 {offsets = [0, 24], sizes = [8, 8], strides = [1, 1]} : vector<8x32xf32> to vector<8x8xf32>
    %66 = tpu.transpose %65, [1, 0] : vector<8x8xf32> -> vector<8x8xf32>
    %cst_20 = arith.constant dense<0.000000e+00> : vector<8x8xf32>
    %67 = tpu.matmul %64, %66, %cst_20 {dimension_numbers = #tpu.dot_dimension_numbers<[1], [0], [0], [1], [0, 0, 1, 1], [], []>} : vector<8x8xf32>, vector<8x8xf32>, vector<8x8xf32> -> vector<8x8xf32>
    %cst_21 = arith.constant 0.353553385 : f32
    %68 = vector.broadcast %cst_21 : f32 to vector<8x8xf32>
    %69 = arith.mulf %67, %68 : vector<8x8xf32>
    %70 = arith.addf %69, %6 : vector<8x8xf32>
    %cst_22 = arith.constant dense<0xFF800000> : vector<8xf32>
    %71 = vector.multi_reduction <maximumf>, %70, %cst_22 [1] : vector<8x8xf32> to vector<8xf32>
    %72 = vector.shape_cast %71 : vector<8xf32> to vector<8x1xf32>
    %73 = vector.broadcast %72 : vector<8x1xf32> to vector<8x8xf32>
    %74 = arith.subf %70, %73 : vector<8x8xf32>
    %75 = math.exp %74 : vector<8x8xf32>
    %cst_23 = arith.constant dense<0.000000e+00> : vector<8xf32>
    %76 = vector.multi_reduction <add>, %75, %cst_23 [1] : vector<8x8xf32> to vector<8xf32>
    %77 = vector.shape_cast %76 : vector<8xf32> to vector<8x1xf32>
    %78 = vector.extract_strided_slice %4 {offsets = [0, 24], sizes = [8, 8], strides = [1, 1]} : vector<8x32xf32> to vector<8x8xf32>
    %cst_24 = arith.constant dense<0.000000e+00> : vector<8x8xf32>
    %79 = tpu.matmul %75, %78, %cst_24 {dimension_numbers = #tpu.dot_dimension_numbers<[1], [0], [0], [1], [0, 0, 1, 1], [], []>} : vector<8x8xf32>, vector<8x8xf32>, vector<8x8xf32> -> vector<8x8xf32>
    %80 = tpu.reciprocal %77 {approx = true} : vector<8x1xf32> -> vector<8x1xf32>
    %81 = vector.broadcast %80 : vector<8x1xf32> to vector<8x8xf32>
    %82 = arith.mulf %79, %81 : vector<8x8xf32>
    %83 = tpu.concatenate %25, %44, %63, %82 in 1 : vector<8x8xf32>, vector<8x8xf32>, vector<8x8xf32>, vector<8x8xf32> -> vector<8x32xf32>
    %c0_25 = arith.constant 0 : index
    %c0_26 = arith.constant 0 : index
    %c0_27 = arith.constant 0 : index
    %84 = vector.load %arg3[%c0_25, %c0_26, %c0_27] : memref<1x8x32xf32, #tpu.memory_space<vmem>>, vector<1x8x32xf32>
    %85 = vector.shape_cast %84 : vector<1x8x32xf32> to vector<8x32xf32>
    %86 = vector.shape_cast %83 : vector<8x32xf32> to vector<1x8x32xf32>
    tpu.vector_store %arg3[%c0_25, %c0_26, %c0_27], %86 {strides = array<i32>} : memref<1x8x32xf32, #tpu.memory_space<vmem>>, vector<1x8x32xf32>,
    return
  }
  func.func @transform_0(%arg0: i32) -> (i32, i32, i32) {
    %c0_i32 = arith.constant 0 : i32
    %c0_i32_0 = arith.constant 0 : i32
    %c0_i32_1 = arith.constant 0 : i32
    return %arg0, %c0_i32, %c0_i32_0 : i32, i32, i32
  }
  func.func @transform_1(%arg0: i32) -> (i32, i32, i32, i32) {
    %c0_i32 = arith.constant 0 : i32
    %c0_i32_0 = arith.constant 0 : i32
    %c0_i32_1 = arith.constant 0 : i32
    %c0_i32_2 = arith.constant 0 : i32
    %c0_i32_3 = arith.constant 0 : i32
    return %c0_i32, %c0_i32_0, %c0_i32_1, %c0_i32_2 : i32, i32, i32, i32
  }
  func.func @transform_2(%arg0: i32) -> (i32, i32, i32) {
    %c0_i32 = arith.constant 0 : i32
    %c0_i32_0 = arith.constant 0 : i32
    %c0_i32_1 = arith.constant 0 : i32
    return %arg0, %c0_i32, %c0_i32_0 : i32, i32, i32
  }
}

module attributes {stable_mosaic.version = 11 : i64} {
  func.func @_proj_add_ln_kernel(%arg0: i32, %arg1: memref<16x32xf32, #tpu.memory_space<vmem>>, %arg2: memref<16x32xf32, #tpu.memory_space<vmem>>, %arg3: memref<32x32xf32, #tpu.memory_space<vmem>>, %arg4: memref<1x32xf32, #tpu.memory_space<vmem>>, %arg5: memref<1x32xf32, #tpu.memory_space<vmem>>, %arg6: memref<1x32xf32, #tpu.memory_space<vmem>>, %arg7: memref<16x32xf32, #tpu.memory_space<vmem>>) attributes {dimension_semantics = [#tpu.dimension_semantics<parallel>], iteration_bounds = array<i64: 1>, scalar_prefetch = 0 : i64, scratch_operands = 0 : i64, tpu.core_type = #tpu.core_type<tc>, window_params = [{transform_indices = @transform_0, window_bounds = array<i64: 16, 32>}, {transform_indices = @transform_1, window_bounds = array<i64: 16, 32>}, {pipeline_mode = #tpu.pipeline_mode<synchronous>, transform_indices = @transform_2, window_bounds = array<i64: 32, 32>}, {pipeline_mode = #tpu.pipeline_mode<synchronous>, transform_indices = @transform_3, window_bounds = array<i64: 1, 32>}, {pipeline_mode = #tpu.pipeline_mode<synchronous>, transform_indices = @transform_4, window_bounds = array<i64: 1, 32>}, {pipeline_mode = #tpu.pipeline_mode<synchronous>, transform_indices = @transform_5, window_bounds = array<i64: 1, 32>}, {transform_indices = @transform_6, window_bounds = array<i64: 16, 32>}]} {
    %c0 = arith.constant 0 : index
    %c0_0 = arith.constant 0 : index
    %0 = vector.load %arg1[%c0, %c0_0] : memref<16x32xf32, #tpu.memory_space<vmem>>, vector<16x32xf32>
    %c0_1 = arith.constant 0 : index
    %c0_2 = arith.constant 0 : index
    %1 = vector.load %arg3[%c0_1, %c0_2] : memref<32x32xf32, #tpu.memory_space<vmem>>, vector<32x32xf32>
    %cst = arith.constant dense<0.000000e+00> : vector<16x32xf32>
    %2 = tpu.matmul %0, %1, %cst {dimension_numbers = #tpu.dot_dimension_numbers<[1], [0], [0], [1], [0, 0, 1, 1], [], []>} : vector<16x32xf32>, vector<32x32xf32>, vector<16x32xf32> -> vector<16x32xf32>
    %c0_3 = arith.constant 0 : index
    %c0_4 = arith.constant 0 : index
    %3 = vector.load %arg4[%c0_3, %c0_4] : memref<1x32xf32, #tpu.memory_space<vmem>>, vector<1x32xf32>
    %4 = vector.broadcast %3 : vector<1x32xf32> to vector<16x32xf32>
    %5 = arith.addf %2, %4 : vector<16x32xf32>
    %c0_5 = arith.constant 0 : index
    %c0_6 = arith.constant 0 : index
    %6 = vector.load %arg2[%c0_5, %c0_6] : memref<16x32xf32, #tpu.memory_space<vmem>>, vector<16x32xf32>
    %7 = arith.addf %5, %6 : vector<16x32xf32>
    %c0_7 = arith.constant 0 : index
    %c0_8 = arith.constant 0 : index
    %8 = vector.load %arg5[%c0_7, %c0_8] : memref<1x32xf32, #tpu.memory_space<vmem>>, vector<1x32xf32>
    %c0_9 = arith.constant 0 : index
    %c0_10 = arith.constant 0 : index
    %9 = vector.load %arg6[%c0_9, %c0_10] : memref<1x32xf32, #tpu.memory_space<vmem>>, vector<1x32xf32>
    %cst_11 = arith.constant dense<0.000000e+00> : vector<16xf32>
    %10 = vector.multi_reduction <add>, %7, %cst_11 [1] : vector<16x32xf32> to vector<16xf32>
    %11 = vector.shape_cast %10 : vector<16xf32> to vector<16x1xf32>
    %cst_12 = arith.constant 3.200000e+01 : f32
    %12 = vector.broadcast %cst_12 : f32 to vector<16x1xf32>
    %13 = arith.divf %11, %12 : vector<16x1xf32>
    %14 = vector.broadcast %13 : vector<16x1xf32> to vector<16x32xf32>
    %15 = arith.subf %7, %14 : vector<16x32xf32>
    %16 = arith.mulf %15, %15 : vector<16x32xf32>
    %cst_13 = arith.constant dense<0.000000e+00> : vector<16xf32>
    %17 = vector.multi_reduction <add>, %16, %cst_13 [1] : vector<16x32xf32> to vector<16xf32>
    %18 = vector.shape_cast %17 : vector<16xf32> to vector<16x1xf32>
    %cst_14 = arith.constant 3.200000e+01 : f32
    %19 = vector.broadcast %cst_14 : f32 to vector<16x1xf32>
    %20 = arith.divf %18, %19 : vector<16x1xf32>
    %21 = vector.broadcast %13 : vector<16x1xf32> to vector<16x32xf32>
    %22 = arith.subf %7, %21 : vector<16x32xf32>
    %cst_15 = arith.constant 9.99999997E-7 : f32
    %23 = vector.broadcast %cst_15 : f32 to vector<16x1xf32>
    %24 = arith.addf %20, %23 : vector<16x1xf32>
    %25 = math.rsqrt %24 : vector<16x1xf32>
    %26 = vector.broadcast %25 : vector<16x1xf32> to vector<16x32xf32>
    %27 = arith.mulf %22, %26 : vector<16x32xf32>
    %28 = vector.broadcast %8 : vector<1x32xf32> to vector<16x32xf32>
    %29 = arith.mulf %27, %28 : vector<16x32xf32>
    %30 = vector.broadcast %9 : vector<1x32xf32> to vector<16x32xf32>
    %31 = arith.addf %29, %30 : vector<16x32xf32>
    %c0_16 = arith.constant 0 : index
    %c0_17 = arith.constant 0 : index
    %32 = vector.load %arg7[%c0_16, %c0_17] : memref<16x32xf32, #tpu.memory_space<vmem>>, vector<16x32xf32>
    tpu.vector_store %arg7[%c0_16, %c0_17], %31 {strides = array<i32>} : memref<16x32xf32, #tpu.memory_space<vmem>>, vector<16x32xf32>,
    return
  }
  func.func @transform_0(%arg0: i32) -> (i32, i32) {
    %c0_i32 = arith.constant 0 : i32
    %c0_i32_0 = arith.constant 0 : i32
    return %arg0, %c0_i32 : i32, i32
  }
  func.func @transform_1(%arg0: i32) -> (i32, i32) {
    %c0_i32 = arith.constant 0 : i32
    %c0_i32_0 = arith.constant 0 : i32
    return %arg0, %c0_i32 : i32, i32
  }
  func.func @transform_2(%arg0: i32) -> (i32, i32) {
    %c0_i32 = arith.constant 0 : i32
    %c0_i32_0 = arith.constant 0 : i32
    %c0_i32_1 = arith.constant 0 : i32
    return %c0_i32, %c0_i32_0 : i32, i32
  }
  func.func @transform_3(%arg0: i32) -> (i32, i32) {
    %c0_i32 = arith.constant 0 : i32
    %c0_i32_0 = arith.constant 0 : i32
    %c0_i32_1 = arith.constant 0 : i32
    return %c0_i32, %c0_i32_0 : i32, i32
  }
  func.func @transform_4(%arg0: i32) -> (i32, i32) {
    %c0_i32 = arith.constant 0 : i32
    %c0_i32_0 = arith.constant 0 : i32
    %c0_i32_1 = arith.constant 0 : i32
    return %c0_i32, %c0_i32_0 : i32, i32
  }
  func.func @transform_5(%arg0: i32) -> (i32, i32) {
    %c0_i32 = arith.constant 0 : i32
    %c0_i32_0 = arith.constant 0 : i32
    %c0_i32_1 = arith.constant 0 : i32
    return %c0_i32, %c0_i32_0 : i32, i32
  }
  func.func @transform_6(%arg0: i32) -> (i32, i32) {
    %c0_i32 = arith.constant 0 : i32
    %c0_i32_0 = arith.constant 0 : i32
    return %arg0, %c0_i32 : i32, i32
  }
}

module attributes {stable_mosaic.version = 11 : i64} {
  func.func @_matmul_kernel(%arg0: i32, %arg1: i32, %arg2: i32, %arg3: memref<16x32xf32, #tpu.memory_space<vmem>>, %arg4: memref<32x32xf32, #tpu.memory_space<vmem>>, %arg5: memref<1x32xf32, #tpu.memory_space<vmem>>, %arg6: memref<16x32xf32, #tpu.memory_space<vmem>>, %arg7: memref<16x32xf32, #tpu.memory_space<vmem>>) attributes {dimension_semantics = [#tpu.dimension_semantics<parallel>, #tpu.dimension_semantics<parallel>, #tpu.dimension_semantics<arbitrary>], iteration_bounds = array<i64: 1, 1, 1>, scalar_prefetch = 0 : i64, scratch_operands = 1 : i64, tpu.core_type = #tpu.core_type<tc>, window_params = [{transform_indices = @transform_0, window_bounds = array<i64: 16, 32>}, {transform_indices = @transform_1, window_bounds = array<i64: 32, 32>}, {transform_indices = @transform_2, window_bounds = array<i64: 1, 32>}, {transform_indices = @transform_3, window_bounds = array<i64: 16, 32>}]} {
    %c0_i32 = arith.constant 0 : i32
    %0 = arith.cmpi eq, %arg2, %c0_i32 : i32
    %1 = arith.extui %0 : i1 to i32
    %c0_i32_0 = arith.constant 0 : i32
    %2 = arith.cmpi ne, %1, %c0_i32_0 : i32
    scf.if %2 {
      %cst_10 = arith.constant 0.000000e+00 : f32
      %12 = vector.broadcast %cst_10 : f32 to vector<16x32xf32>
      %c0_11 = arith.constant 0 : index
      %c0_12 = arith.constant 0 : index
      %13 = vector.load %arg7[%c0_11, %c0_12] : memref<16x32xf32, #tpu.memory_space<vmem>>, vector<16x32xf32>
      tpu.vector_store %arg7[%c0_11, %c0_12], %12 {strides = array<i32>} : memref<16x32xf32, #tpu.memory_space<vmem>>, vector<16x32xf32>,
    } else {
    }
    %c0 = arith.constant 0 : index
    %c0_1 = arith.constant 0 : index
    %3 = vector.load %arg7[%c0, %c0_1] : memref<16x32xf32, #tpu.memory_space<vmem>>, vector<16x32xf32>
    %c0_2 = arith.constant 0 : index
    %c0_3 = arith.constant 0 : index
    %4 = vector.load %arg3[%c0_2, %c0_3] : memref<16x32xf32, #tpu.memory_space<vmem>>, vector<16x32xf32>
    %c0_4 = arith.constant 0 : index
    %c0_5 = arith.constant 0 : index
    %5 = vector.load %arg4[%c0_4, %c0_5] : memref<32x32xf32, #tpu.memory_space<vmem>>, vector<32x32xf32>
    %cst = arith.constant dense<0.000000e+00> : vector<16x32xf32>
    %6 = tpu.matmul %4, %5, %cst {dimension_numbers = #tpu.dot_dimension_numbers<[1], [0], [0], [1], [0, 0, 1, 1], [], []>} : vector<16x32xf32>, vector<32x32xf32>, vector<16x32xf32> -> vector<16x32xf32>
    %7 = arith.addf %3, %6 : vector<16x32xf32>
    %c0_6 = arith.constant 0 : index
    %c0_7 = arith.constant 0 : index
    %8 = vector.load %arg7[%c0_6, %c0_7] : memref<16x32xf32, #tpu.memory_space<vmem>>, vector<16x32xf32>
    tpu.vector_store %arg7[%c0_6, %c0_7], %7 {strides = array<i32>} : memref<16x32xf32, #tpu.memory_space<vmem>>, vector<16x32xf32>,
    %c0_i32_8 = arith.constant 0 : i32
    %9 = arith.cmpi eq, %arg2, %c0_i32_8 : i32
    %10 = arith.extui %9 : i1 to i32
    %c0_i32_9 = arith.constant 0 : i32
    %11 = arith.cmpi ne, %10, %c0_i32_9 : i32
    scf.if %11 {
      %c0_10 = arith.constant 0 : index
      %c0_11 = arith.constant 0 : index
      %12 = vector.load %arg7[%c0_10, %c0_11] : memref<16x32xf32, #tpu.memory_space<vmem>>, vector<16x32xf32>
      %c0_12 = arith.constant 0 : index
      %c0_13 = arith.constant 0 : index
      %13 = vector.load %arg5[%c0_12, %c0_13] : memref<1x32xf32, #tpu.memory_space<vmem>>, vector<1x32xf32>
      %14 = vector.broadcast %13 : vector<1x32xf32> to vector<16x32xf32>
      %15 = arith.addf %12, %14 : vector<16x32xf32>
      %c0_14 = arith.constant 0 : index
      %c0_15 = arith.constant 0 : index
      %16 = vector.load %arg6[%c0_14, %c0_15] : memref<16x32xf32, #tpu.memory_space<vmem>>, vector<16x32xf32>
      tpu.vector_store %arg6[%c0_14, %c0_15], %15 {strides = array<i32>} : memref<16x32xf32, #tpu.memory_space<vmem>>, vector<16x32xf32>,
    } else {
    }
    return
  }
  func.func @transform_0(%arg0: i32, %arg1: i32, %arg2: i32) -> (i32, i32) {
    %c0_i32 = arith.constant 0 : i32
    return %arg0, %arg2 : i32, i32
  }
  func.func @transform_1(%arg0: i32, %arg1: i32, %arg2: i32) -> (i32, i32) {
    %c0_i32 = arith.constant 0 : i32
    return %arg2, %arg1 : i32, i32
  }
  func.func @transform_2(%arg0: i32, %arg1: i32, %arg2: i32) -> (i32, i32) {
    %c0_i32 = arith.constant 0 : i32
    %c0_i32_0 = arith.constant 0 : i32
    return %c0_i32, %arg1 : i32, i32
  }
  func.func @transform_3(%arg0: i32, %arg1: i32, %arg2: i32) -> (i32, i32) {
    %c0_i32 = arith.constant 0 : i32
    return %arg0, %arg1 : i32, i32
  }
}

module attributes {stable_mosaic.version = 11 : i64} {
  func.func @_matmul_kernel(%arg0: i32, %arg1: i32, %arg2: i32, %arg3: memref<16x32xf32, #tpu.memory_space<vmem>>, %arg4: memref<32x64xf32, #tpu.memory_space<vmem>>, %arg5: memref<1x64xf32, #tpu.memory_space<vmem>>, %arg6: memref<16x64xf32, #tpu.memory_space<vmem>>, %arg7: memref<16x64xf32, #tpu.memory_space<vmem>>) attributes {dimension_semantics = [#tpu.dimension_semantics<parallel>, #tpu.dimension_semantics<parallel>, #tpu.dimension_semantics<arbitrary>], iteration_bounds = array<i64: 1, 1, 1>, scalar_prefetch = 0 : i64, scratch_operands = 1 : i64, tpu.core_type = #tpu.core_type<tc>, window_params = [{transform_indices = @transform_0, window_bounds = array<i64: 16, 32>}, {transform_indices = @transform_1, window_bounds = array<i64: 32, 64>}, {transform_indices = @transform_2, window_bounds = array<i64: 1, 64>}, {transform_indices = @transform_3, window_bounds = array<i64: 16, 64>}]} {
    %c0_i32 = arith.constant 0 : i32
    %0 = arith.cmpi eq, %arg2, %c0_i32 : i32
    %1 = arith.extui %0 : i1 to i32
    %c0_i32_0 = arith.constant 0 : i32
    %2 = arith.cmpi ne, %1, %c0_i32_0 : i32
    scf.if %2 {
      %cst_10 = arith.constant 0.000000e+00 : f32
      %12 = vector.broadcast %cst_10 : f32 to vector<16x64xf32>
      %c0_11 = arith.constant 0 : index
      %c0_12 = arith.constant 0 : index
      %13 = vector.load %arg7[%c0_11, %c0_12] : memref<16x64xf32, #tpu.memory_space<vmem>>, vector<16x64xf32>
      tpu.vector_store %arg7[%c0_11, %c0_12], %12 {strides = array<i32>} : memref<16x64xf32, #tpu.memory_space<vmem>>, vector<16x64xf32>,
    } else {
    }
    %c0 = arith.constant 0 : index
    %c0_1 = arith.constant 0 : index
    %3 = vector.load %arg7[%c0, %c0_1] : memref<16x64xf32, #tpu.memory_space<vmem>>, vector<16x64xf32>
    %c0_2 = arith.constant 0 : index
    %c0_3 = arith.constant 0 : index
    %4 = vector.load %arg3[%c0_2, %c0_3] : memref<16x32xf32, #tpu.memory_space<vmem>>, vector<16x32xf32>
    %c0_4 = arith.constant 0 : index
    %c0_5 = arith.constant 0 : index
    %5 = vector.load %arg4[%c0_4, %c0_5] : memref<32x64xf32, #tpu.memory_space<vmem>>, vector<32x64xf32>
    %cst = arith.constant dense<0.000000e+00> : vector<16x64xf32>
    %6 = tpu.matmul %4, %5, %cst {dimension_numbers = #tpu.dot_dimension_numbers<[1], [0], [0], [1], [0, 0, 1, 1], [], []>} : vector<16x32xf32>, vector<32x64xf32>, vector<16x64xf32> -> vector<16x64xf32>
    %7 = arith.addf %3, %6 : vector<16x64xf32>
    %c0_6 = arith.constant 0 : index
    %c0_7 = arith.constant 0 : index
    %8 = vector.load %arg7[%c0_6, %c0_7] : memref<16x64xf32, #tpu.memory_space<vmem>>, vector<16x64xf32>
    tpu.vector_store %arg7[%c0_6, %c0_7], %7 {strides = array<i32>} : memref<16x64xf32, #tpu.memory_space<vmem>>, vector<16x64xf32>,
    %c0_i32_8 = arith.constant 0 : i32
    %9 = arith.cmpi eq, %arg2, %c0_i32_8 : i32
    %10 = arith.extui %9 : i1 to i32
    %c0_i32_9 = arith.constant 0 : i32
    %11 = arith.cmpi ne, %10, %c0_i32_9 : i32
    scf.if %11 {
      %c0_10 = arith.constant 0 : index
      %c0_11 = arith.constant 0 : index
      %12 = vector.load %arg7[%c0_10, %c0_11] : memref<16x64xf32, #tpu.memory_space<vmem>>, vector<16x64xf32>
      %c0_12 = arith.constant 0 : index
      %c0_13 = arith.constant 0 : index
      %13 = vector.load %arg5[%c0_12, %c0_13] : memref<1x64xf32, #tpu.memory_space<vmem>>, vector<1x64xf32>
      %14 = vector.broadcast %13 : vector<1x64xf32> to vector<16x64xf32>
      %15 = arith.addf %12, %14 : vector<16x64xf32>
      %c0_14 = arith.constant 0 : index
      %c0_15 = arith.constant 0 : index
      %16 = vector.load %arg6[%c0_14, %c0_15] : memref<16x64xf32, #tpu.memory_space<vmem>>, vector<16x64xf32>
      tpu.vector_store %arg6[%c0_14, %c0_15], %15 {strides = array<i32>} : memref<16x64xf32, #tpu.memory_space<vmem>>, vector<16x64xf32>,
    } else {
    }
    return
  }
  func.func @transform_0(%arg0: i32, %arg1: i32, %arg2: i32) -> (i32, i32) {
    %c0_i32 = arith.constant 0 : i32
    return %arg0, %arg2 : i32, i32
  }
  func.func @transform_1(%arg0: i32, %arg1: i32, %arg2: i32) -> (i32, i32) {
    %c0_i32 = arith.constant 0 : i32
    return %arg2, %arg1 : i32, i32
  }
  func.func @transform_2(%arg0: i32, %arg1: i32, %arg2: i32) -> (i32, i32) {
    %c0_i32 = arith.constant 0 : i32
    %c0_i32_0 = arith.constant 0 : i32
    return %c0_i32, %arg1 : i32, i32
  }
  func.func @transform_3(%arg0: i32, %arg1: i32, %arg2: i32) -> (i32, i32) {
    %c0_i32 = arith.constant 0 : i32
    return %arg0, %arg1 : i32, i32
  }
}

module attributes {stable_mosaic.version = 11 : i64} {
  func.func @_cross_attn_kernel(%arg0: i32, %arg1: memref<1x8x32xf32, #tpu.memory_space<vmem>>, %arg2: memref<1x8x64xf32, #tpu.memory_space<vmem>>, %arg3: memref<1x1x1x8xf32, #tpu.memory_space<vmem>>, %arg4: memref<1x8x32xf32, #tpu.memory_space<vmem>>) attributes {dimension_semantics = [#tpu.dimension_semantics<parallel>], iteration_bounds = array<i64: 2>, scalar_prefetch = 0 : i64, scratch_operands = 0 : i64, tpu.core_type = #tpu.core_type<tc>, window_params = [{transform_indices = @transform_0, window_bounds = array<i64: 1, 8, 32>}, {transform_indices = @transform_1, window_bounds = array<i64: 1, 8, 64>}, {transform_indices = @transform_2, window_bounds = array<i64: 1, 1, 1, 8>}, {transform_indices = @transform_3, window_bounds = array<i64: 1, 8, 32>}]} {
    %c0 = arith.constant 0 : index
    %c0_0 = arith.constant 0 : index
    %c0_1 = arith.constant 0 : index
    %0 = vector.load %arg1[%c0, %c0_0, %c0_1] : memref<1x8x32xf32, #tpu.memory_space<vmem>>, vector<1x8x32xf32>
    %1 = vector.shape_cast %0 : vector<1x8x32xf32> to vector<8x32xf32>
    %c0_2 = arith.constant 0 : index
    %c0_3 = arith.constant 0 : index
    %c0_4 = arith.constant 0 : index
    %2 = vector.load %arg2[%c0_2, %c0_3, %c0_4] : memref<1x8x64xf32, #tpu.memory_space<vmem>>, vector<1x8x64xf32>
    %3 = vector.shape_cast %2 : vector<1x8x64xf32> to vector<8x64xf32>
    %4 = vector.extract_strided_slice %3 {offsets = [0, 0], sizes = [8, 32], strides = [1, 1]} : vector<8x64xf32> to vector<8x32xf32>
    %5 = vector.extract_strided_slice %3 {offsets = [0, 32], sizes = [8, 32], strides = [1, 1]} : vector<8x64xf32> to vector<8x32xf32>
    %c0_5 = arith.constant 0 : index
    %c0_6 = arith.constant 0 : index
    %c0_7 = arith.constant 0 : index
    %c0_8 = arith.constant 0 : index
    %6 = vector.load %arg3[%c0_5, %c0_6, %c0_7, %c0_8] : memref<1x1x1x8xf32, #tpu.memory_space<vmem>>, vector<1x1x1x8xf32>
    %7 = vector.shape_cast %6 : vector<1x1x1x8xf32> to vector<1x8xf32>
    %8 = vector.extract_strided_slice %1 {offsets = [0, 0], sizes = [8, 8], strides = [1, 1]} : vector<8x32xf32> to vector<8x8xf32>
    %9 = vector.extract_strided_slice %4 {offsets = [0, 0], sizes = [8, 8], strides = [1, 1]} : vector<8x32xf32> to vector<8x8xf32>
    %10 = tpu.transpose %9, [1, 0] : vector<8x8xf32> -> vector<8x8xf32>
    %cst = arith.constant dense<0.000000e+00> : vector<8x8xf32>
    %11 = tpu.matmul %8, %10, %cst {dimension_numbers = #tpu.dot_dimension_numbers<[1], [0], [0], [1], [0, 0, 1, 1], [], []>} : vector<8x8xf32>, vector<8x8xf32>, vector<8x8xf32> -> vector<8x8xf32>
    %cst_9 = arith.constant 0.353553385 : f32
    %12 = vector.broadcast %cst_9 : f32 to vector<8x8xf32>
    %13 = arith.mulf %11, %12 : vector<8x8xf32>
    %14 = vector.broadcast %7 : vector<1x8xf32> to vector<8x8xf32>
    %15 = arith.addf %13, %14 : vector<8x8xf32>
    %cst_10 = arith.constant dense<0xFF800000> : vector<8xf32>
    %16 = vector.multi_reduction <maximumf>, %15, %cst_10 [1] : vector<8x8xf32> to vector<8xf32>
    %17 = vector.shape_cast %16 : vector<8xf32> to vector<8x1xf32>
    %18 = vector.broadcast %17 : vector<8x1xf32> to vector<8x8xf32>
    %19 = arith.subf %15, %18 : vector<8x8xf32>
    %20 = math.exp %19 : vector<8x8xf32>
    %cst_11 = arith.constant dense<0.000000e+00> : vector<8xf32>
    %21 = vector.multi_reduction <add>, %20, %cst_11 [1] : vector<8x8xf32> to vector<8xf32>
    %22 = vector.shape_cast %21 : vector<8xf32> to vector<8x1xf32>
    %23 = vector.extract_strided_slice %5 {offsets = [0, 0], sizes = [8, 8], strides = [1, 1]} : vector<8x32xf32> to vector<8x8xf32>
    %cst_12 = arith.constant dense<0.000000e+00> : vector<8x8xf32>
    %24 = tpu.matmul %20, %23, %cst_12 {dimension_numbers = #tpu.dot_dimension_numbers<[1], [0], [0], [1], [0, 0, 1, 1], [], []>} : vector<8x8xf32>, vector<8x8xf32>, vector<8x8xf32> -> vector<8x8xf32>
    %25 = tpu.reciprocal %22 {approx = true} : vector<8x1xf32> -> vector<8x1xf32>
    %26 = vector.broadcast %25 : vector<8x1xf32> to vector<8x8xf32>
    %27 = arith.mulf %24, %26 : vector<8x8xf32>
    %28 = vector.extract_strided_slice %1 {offsets = [0, 8], sizes = [8, 8], strides = [1, 1]} : vector<8x32xf32> to vector<8x8xf32>
    %29 = vector.extract_strided_slice %4 {offsets = [0, 8], sizes = [8, 8], strides = [1, 1]} : vector<8x32xf32> to vector<8x8xf32>
    %30 = tpu.transpose %29, [1, 0] : vector<8x8xf32> -> vector<8x8xf32>
    %cst_13 = arith.constant dense<0.000000e+00> : vector<8x8xf32>
    %31 = tpu.matmul %28, %30, %cst_13 {dimension_numbers = #tpu.dot_dimension_numbers<[1], [0], [0], [1], [0, 0, 1, 1], [], []>} : vector<8x8xf32>, vector<8x8xf32>, vector<8x8xf32> -> vector<8x8xf32>
    %cst_14 = arith.constant 0.353553385 : f32
    %32 = vector.broadcast %cst_14 : f32 to vector<8x8xf32>
    %33 = arith.mulf %31, %32 : vector<8x8xf32>
    %34 = vector.broadcast %7 : vector<1x8xf32> to vector<8x8xf32>
    %35 = arith.addf %33, %34 : vector<8x8xf32>
    %cst_15 = arith.constant dense<0xFF800000> : vector<8xf32>
    %36 = vector.multi_reduction <maximumf>, %35, %cst_15 [1] : vector<8x8xf32> to vector<8xf32>
    %37 = vector.shape_cast %36 : vector<8xf32> to vector<8x1xf32>
    %38 = vector.broadcast %37 : vector<8x1xf32> to vector<8x8xf32>
    %39 = arith.subf %35, %38 : vector<8x8xf32>
    %40 = math.exp %39 : vector<8x8xf32>
    %cst_16 = arith.constant dense<0.000000e+00> : vector<8xf32>
    %41 = vector.multi_reduction <add>, %40, %cst_16 [1] : vector<8x8xf32> to vector<8xf32>
    %42 = vector.shape_cast %41 : vector<8xf32> to vector<8x1xf32>
    %43 = vector.extract_strided_slice %5 {offsets = [0, 8], sizes = [8, 8], strides = [1, 1]} : vector<8x32xf32> to vector<8x8xf32>
    %cst_17 = arith.constant dense<0.000000e+00> : vector<8x8xf32>
    %44 = tpu.matmul %40, %43, %cst_17 {dimension_numbers = #tpu.dot_dimension_numbers<[1], [0], [0], [1], [0, 0, 1, 1], [], []>} : vector<8x8xf32>, vector<8x8xf32>, vector<8x8xf32> -> vector<8x8xf32>
    %45 = tpu.reciprocal %42 {approx = true} : vector<8x1xf32> -> vector<8x1xf32>
    %46 = vector.broadcast %45 : vector<8x1xf32> to vector<8x8xf32>
    %47 = arith.mulf %44, %46 : vector<8x8xf32>
    %48 = vector.extract_strided_slice %1 {offsets = [0, 16], sizes = [8, 8], strides = [1, 1]} : vector<8x32xf32> to vector<8x8xf32>
    %49 = vector.extract_strided_slice %4 {offsets = [0, 16], sizes = [8, 8], strides = [1, 1]} : vector<8x32xf32> to vector<8x8xf32>
    %50 = tpu.transpose %49, [1, 0] : vector<8x8xf32> -> vector<8x8xf32>
    %cst_18 = arith.constant dense<0.000000e+00> : vector<8x8xf32>
    %51 = tpu.matmul %48, %50, %cst_18 {dimension_numbers = #tpu.dot_dimension_numbers<[1], [0], [0], [1], [0, 0, 1, 1], [], []>} : vector<8x8xf32>, vector<8x8xf32>, vector<8x8xf32> -> vector<8x8xf32>
    %cst_19 = arith.constant 0.353553385 : f32
    %52 = vector.broadcast %cst_19 : f32 to vector<8x8xf32>
    %53 = arith.mulf %51, %52 : vector<8x8xf32>
    %54 = vector.broadcast %7 : vector<1x8xf32> to vector<8x8xf32>
    %55 = arith.addf %53, %54 : vector<8x8xf32>
    %cst_20 = arith.constant dense<0xFF800000> : vector<8xf32>
    %56 = vector.multi_reduction <maximumf>, %55, %cst_20 [1] : vector<8x8xf32> to vector<8xf32>
    %57 = vector.shape_cast %56 : vector<8xf32> to vector<8x1xf32>
    %58 = vector.broadcast %57 : vector<8x1xf32> to vector<8x8xf32>
    %59 = arith.subf %55, %58 : vector<8x8xf32>
    %60 = math.exp %59 : vector<8x8xf32>
    %cst_21 = arith.constant dense<0.000000e+00> : vector<8xf32>
    %61 = vector.multi_reduction <add>, %60, %cst_21 [1] : vector<8x8xf32> to vector<8xf32>
    %62 = vector.shape_cast %61 : vector<8xf32> to vector<8x1xf32>
    %63 = vector.extract_strided_slice %5 {offsets = [0, 16], sizes = [8, 8], strides = [1, 1]} : vector<8x32xf32> to vector<8x8xf32>
    %cst_22 = arith.constant dense<0.000000e+00> : vector<8x8xf32>
    %64 = tpu.matmul %60, %63, %cst_22 {dimension_numbers = #tpu.dot_dimension_numbers<[1], [0], [0], [1], [0, 0, 1, 1], [], []>} : vector<8x8xf32>, vector<8x8xf32>, vector<8x8xf32> -> vector<8x8xf32>
    %65 = tpu.reciprocal %62 {approx = true} : vector<8x1xf32> -> vector<8x1xf32>
    %66 = vector.broadcast %65 : vector<8x1xf32> to vector<8x8xf32>
    %67 = arith.mulf %64, %66 : vector<8x8xf32>
    %68 = vector.extract_strided_slice %1 {offsets = [0, 24], sizes = [8, 8], strides = [1, 1]} : vector<8x32xf32> to vector<8x8xf32>
    %69 = vector.extract_strided_slice %4 {offsets = [0, 24], sizes = [8, 8], strides = [1, 1]} : vector<8x32xf32> to vector<8x8xf32>
    %70 = tpu.transpose %69, [1, 0] : vector<8x8xf32> -> vector<8x8xf32>
    %cst_23 = arith.constant dense<0.000000e+00> : vector<8x8xf32>
    %71 = tpu.matmul %68, %70, %cst_23 {dimension_numbers = #tpu.dot_dimension_numbers<[1], [0], [0], [1], [0, 0, 1, 1], [], []>} : vector<8x8xf32>, vector<8x8xf32>, vector<8x8xf32> -> vector<8x8xf32>
    %cst_24 = arith.constant 0.353553385 : f32
    %72 = vector.broadcast %cst_24 : f32 to vector<8x8xf32>
    %73 = arith.mulf %71, %72 : vector<8x8xf32>
    %74 = vector.broadcast %7 : vector<1x8xf32> to vector<8x8xf32>
    %75 = arith.addf %73, %74 : vector<8x8xf32>
    %cst_25 = arith.constant dense<0xFF800000> : vector<8xf32>
    %76 = vector.multi_reduction <maximumf>, %75, %cst_25 [1] : vector<8x8xf32> to vector<8xf32>
    %77 = vector.shape_cast %76 : vector<8xf32> to vector<8x1xf32>
    %78 = vector.broadcast %77 : vector<8x1xf32> to vector<8x8xf32>
    %79 = arith.subf %75, %78 : vector<8x8xf32>
    %80 = math.exp %79 : vector<8x8xf32>
    %cst_26 = arith.constant dense<0.000000e+00> : vector<8xf32>
    %81 = vector.multi_reduction <add>, %80, %cst_26 [1] : vector<8x8xf32> to vector<8xf32>
    %82 = vector.shape_cast %81 : vector<8xf32> to vector<8x1xf32>
    %83 = vector.extract_strided_slice %5 {offsets = [0, 24], sizes = [8, 8], strides = [1, 1]} : vector<8x32xf32> to vector<8x8xf32>
    %cst_27 = arith.constant dense<0.000000e+00> : vector<8x8xf32>
    %84 = tpu.matmul %80, %83, %cst_27 {dimension_numbers = #tpu.dot_dimension_numbers<[1], [0], [0], [1], [0, 0, 1, 1], [], []>} : vector<8x8xf32>, vector<8x8xf32>, vector<8x8xf32> -> vector<8x8xf32>
    %85 = tpu.reciprocal %82 {approx = true} : vector<8x1xf32> -> vector<8x1xf32>
    %86 = vector.broadcast %85 : vector<8x1xf32> to vector<8x8xf32>
    %87 = arith.mulf %84, %86 : vector<8x8xf32>
    %88 = tpu.concatenate %27, %47, %67, %87 in 1 : vector<8x8xf32>, vector<8x8xf32>, vector<8x8xf32>, vector<8x8xf32> -> vector<8x32xf32>
    %c0_28 = arith.constant 0 : index
    %c0_29 = arith.constant 0 : index
    %c0_30 = arith.constant 0 : index
    %89 = vector.load %arg4[%c0_28, %c0_29, %c0_30] : memref<1x8x32xf32, #tpu.memory_space<vmem>>, vector<1x8x32xf32>
    %90 = vector.shape_cast %89 : vector<1x8x32xf32> to vector<8x32xf32>
    %91 = vector.shape_cast %88 : vector<8x32xf32> to vector<1x8x32xf32>
    tpu.vector_store %arg4[%c0_28, %c0_29, %c0_30], %91 {strides = array<i32>} : memref<1x8x32xf32, #tpu.memory_space<vmem>>, vector<1x8x32xf32>,
    return
  }
  func.func @transform_0(%arg0: i32) -> (i32, i32, i32) {
    %c0_i32 = arith.constant 0 : i32
    %c0_i32_0 = arith.constant 0 : i32
    %c0_i32_1 = arith.constant 0 : i32
    return %arg0, %c0_i32, %c0_i32_0 : i32, i32, i32
  }
  func.func @transform_1(%arg0: i32) -> (i32, i32, i32) {
    %c0_i32 = arith.constant 0 : i32
    %c0_i32_0 = arith.constant 0 : i32
    %c0_i32_1 = arith.constant 0 : i32
    return %arg0, %c0_i32, %c0_i32_0 : i32, i32, i32
  }
  func.func @transform_2(%arg0: i32) -> (i32, i32, i32, i32) {
    %c0_i32 = arith.constant 0 : i32
    %c0_i32_0 = arith.constant 0 : i32
    %c0_i32_1 = arith.constant 0 : i32
    %c0_i32_2 = arith.constant 0 : i32
    return %arg0, %c0_i32, %c0_i32_0, %c0_i32_1 : i32, i32, i32, i32
  }
  func.func @transform_3(%arg0: i32) -> (i32, i32, i32) {
    %c0_i32 = arith.constant 0 : i32
    %c0_i32_0 = arith.constant 0 : i32
    %c0_i32_1 = arith.constant 0 : i32
    return %arg0, %c0_i32, %c0_i32_0 : i32, i32, i32
  }
}

module attributes {stable_mosaic.version = 11 : i64} {
  func.func @_ffn_ln_kernel(%arg0: i32, %arg1: memref<16x32xf32, #tpu.memory_space<vmem>>, %arg2: memref<32x128xf32, #tpu.memory_space<vmem>>, %arg3: memref<1x128xf32, #tpu.memory_space<vmem>>, %arg4: memref<128x32xf32, #tpu.memory_space<vmem>>, %arg5: memref<1x32xf32, #tpu.memory_space<vmem>>, %arg6: memref<1x32xf32, #tpu.memory_space<vmem>>, %arg7: memref<1x32xf32, #tpu.memory_space<vmem>>, %arg8: memref<16x32xf32, #tpu.memory_space<vmem>>) attributes {dimension_semantics = [#tpu.dimension_semantics<parallel>], iteration_bounds = array<i64: 1>, scalar_prefetch = 0 : i64, scratch_operands = 0 : i64, tpu.core_type = #tpu.core_type<tc>, window_params = [{transform_indices = @transform_0, window_bounds = array<i64: 16, 32>}, {pipeline_mode = #tpu.pipeline_mode<synchronous>, transform_indices = @transform_1, window_bounds = array<i64: 32, 128>}, {pipeline_mode = #tpu.pipeline_mode<synchronous>, transform_indices = @transform_2, window_bounds = array<i64: 1, 128>}, {pipeline_mode = #tpu.pipeline_mode<synchronous>, transform_indices = @transform_3, window_bounds = array<i64: 128, 32>}, {pipeline_mode = #tpu.pipeline_mode<synchronous>, transform_indices = @transform_4, window_bounds = array<i64: 1, 32>}, {pipeline_mode = #tpu.pipeline_mode<synchronous>, transform_indices = @transform_5, window_bounds = array<i64: 1, 32>}, {pipeline_mode = #tpu.pipeline_mode<synchronous>, transform_indices = @transform_6, window_bounds = array<i64: 1, 32>}, {transform_indices = @transform_7, window_bounds = array<i64: 16, 32>}]} {
    %c0 = arith.constant 0 : index
    %c0_0 = arith.constant 0 : index
    %0 = vector.load %arg1[%c0, %c0_0] : memref<16x32xf32, #tpu.memory_space<vmem>>, vector<16x32xf32>
    %c0_1 = arith.constant 0 : index
    %c0_2 = arith.constant 0 : index
    %1 = vector.load %arg2[%c0_1, %c0_2] : memref<32x128xf32, #tpu.memory_space<vmem>>, vector<32x128xf32>
    %cst = arith.constant dense<0.000000e+00> : vector<16x128xf32>
    %2 = tpu.matmul %0, %1, %cst {dimension_numbers = #tpu.dot_dimension_numbers<[1], [0], [0], [1], [0, 0, 1, 1], [], []>} : vector<16x32xf32>, vector<32x128xf32>, vector<16x128xf32> -> vector<16x128xf32>
    %c0_3 = arith.constant 0 : index
    %c0_4 = arith.constant 0 : index
    %3 = vector.load %arg3[%c0_3, %c0_4] : memref<1x128xf32, #tpu.memory_space<vmem>>, vector<1x128xf32>
    %4 = vector.broadcast %3 : vector<1x128xf32> to vector<16x128xf32>
    %5 = arith.addf %2, %4 : vector<16x128xf32>
    %cst_5 = arith.constant 0.000000e+00 : f32
    %6 = vector.broadcast %cst_5 : f32 to vector<16x128xf32>
    %7 = arith.maximumf %5, %6 : vector<16x128xf32>
    %c0_6 = arith.constant 0 : index
    %c0_7 = arith.constant 0 : index
    %8 = vector.load %arg4[%c0_6, %c0_7] : memref<128x32xf32, #tpu.memory_space<vmem>>, vector<128x32xf32>
    %cst_8 = arith.constant dense<0.000000e+00> : vector<16x32xf32>
    %9 = tpu.matmul %7, %8, %cst_8 {dimension_numbers = #tpu.dot_dimension_numbers<[1], [0], [0], [1], [0, 0, 1, 1], [], []>} : vector<16x128xf32>, vector<128x32xf32>, vector<16x32xf32> -> vector<16x32xf32>
    %c0_9 = arith.constant 0 : index
    %c0_10 = arith.constant 0 : index
    %10 = vector.load %arg5[%c0_9, %c0_10] : memref<1x32xf32, #tpu.memory_space<vmem>>, vector<1x32xf32>
    %11 = vector.broadcast %10 : vector<1x32xf32> to vector<16x32xf32>
    %12 = arith.addf %9, %11 : vector<16x32xf32>
    %13 = arith.addf %0, %12 : vector<16x32xf32>
    %c0_11 = arith.constant 0 : index
    %c0_12 = arith.constant 0 : index
    %14 = vector.load %arg6[%c0_11, %c0_12] : memref<1x32xf32, #tpu.memory_space<vmem>>, vector<1x32xf32>
    %c0_13 = arith.constant 0 : index
    %c0_14 = arith.constant 0 : index
    %15 = vector.load %arg7[%c0_13, %c0_14] : memref<1x32xf32, #tpu.memory_space<vmem>>, vector<1x32xf32>
    %cst_15 = arith.constant dense<0.000000e+00> : vector<16xf32>
    %16 = vector.multi_reduction <add>, %13, %cst_15 [1] : vector<16x32xf32> to vector<16xf32>
    %17 = vector.shape_cast %16 : vector<16xf32> to vector<16x1xf32>
    %cst_16 = arith.constant 3.200000e+01 : f32
    %18 = vector.broadcast %cst_16 : f32 to vector<16x1xf32>
    %19 = arith.divf %17, %18 : vector<16x1xf32>
    %20 = vector.broadcast %19 : vector<16x1xf32> to vector<16x32xf32>
    %21 = arith.subf %13, %20 : vector<16x32xf32>
    %22 = arith.mulf %21, %21 : vector<16x32xf32>
    %cst_17 = arith.constant dense<0.000000e+00> : vector<16xf32>
    %23 = vector.multi_reduction <add>, %22, %cst_17 [1] : vector<16x32xf32> to vector<16xf32>
    %24 = vector.shape_cast %23 : vector<16xf32> to vector<16x1xf32>
    %cst_18 = arith.constant 3.200000e+01 : f32
    %25 = vector.broadcast %cst_18 : f32 to vector<16x1xf32>
    %26 = arith.divf %24, %25 : vector<16x1xf32>
    %27 = vector.broadcast %19 : vector<16x1xf32> to vector<16x32xf32>
    %28 = arith.subf %13, %27 : vector<16x32xf32>
    %cst_19 = arith.constant 9.99999997E-7 : f32
    %29 = vector.broadcast %cst_19 : f32 to vector<16x1xf32>
    %30 = arith.addf %26, %29 : vector<16x1xf32>
    %31 = math.rsqrt %30 : vector<16x1xf32>
    %32 = vector.broadcast %31 : vector<16x1xf32> to vector<16x32xf32>
    %33 = arith.mulf %28, %32 : vector<16x32xf32>
    %34 = vector.broadcast %14 : vector<1x32xf32> to vector<16x32xf32>
    %35 = arith.mulf %33, %34 : vector<16x32xf32>
    %36 = vector.broadcast %15 : vector<1x32xf32> to vector<16x32xf32>
    %37 = arith.addf %35, %36 : vector<16x32xf32>
    %c0_20 = arith.constant 0 : index
    %c0_21 = arith.constant 0 : index
    %38 = vector.load %arg8[%c0_20, %c0_21] : memref<16x32xf32, #tpu.memory_space<vmem>>, vector<16x32xf32>
    tpu.vector_store %arg8[%c0_20, %c0_21], %37 {strides = array<i32>} : memref<16x32xf32, #tpu.memory_space<vmem>>, vector<16x32xf32>,
    return
  }
  func.func @transform_0(%arg0: i32) -> (i32, i32) {
    %c0_i32 = arith.constant 0 : i32
    %c0_i32_0 = arith.constant 0 : i32
    return %arg0, %c0_i32 : i32, i32
  }
  func.func @transform_1(%arg0: i32) -> (i32, i32) {
    %c0_i32 = arith.constant 0 : i32
    %c0_i32_0 = arith.constant 0 : i32
    %c0_i32_1 = arith.constant 0 : i32
    return %c0_i32, %c0_i32_0 : i32, i32
  }
  func.func @transform_2(%arg0: i32) -> (i32, i32) {
    %c0_i32 = arith.constant 0 : i32
    %c0_i32_0 = arith.constant 0 : i32
    %c0_i32_1 = arith.constant 0 : i32
    return %c0_i32, %c0_i32_0 : i32, i32
  }
  func.func @transform_3(%arg0: i32) -> (i32, i32) {
    %c0_i32 = arith.constant 0 : i32
    %c0_i32_0 = arith.constant 0 : i32
    %c0_i32_1 = arith.constant 0 : i32
    return %c0_i32, %c0_i32_0 : i32, i32
  }
  func.func @transform_4(%arg0: i32) -> (i32, i32) {
    %c0_i32 = arith.constant 0 : i32
    %c0_i32_0 = arith.constant 0 : i32
    %c0_i32_1 = arith.constant 0 : i32
    return %c0_i32, %c0_i32_0 : i32, i32
  }
  func.func @transform_5(%arg0: i32) -> (i32, i32) {
    %c0_i32 = arith.constant 0 : i32
    %c0_i32_0 = arith.constant 0 : i32
    %c0_i32_1 = arith.constant 0 : i32
    return %c0_i32, %c0_i32_0 : i32, i32
  }
  func.func @transform_6(%arg0: i32) -> (i32, i32) {
    %c0_i32 = arith.constant 0 : i32
    %c0_i32_0 = arith.constant 0 : i32
    %c0_i32_1 = arith.constant 0 : i32
    return %c0_i32, %c0_i32_0 : i32, i32
  }
  func.func @transform_7(%arg0: i32) -> (i32, i32) {
    %c0_i32 = arith.constant 0 : i32
    %c0_i32_0 = arith.constant 0 : i32
    return %arg0, %c0_i32 : i32, i32
  }
}

module attributes {stable_mosaic.version = 11 : i64} {
  func.func @_proj_add_ln_kernel(%arg0: i32, %arg1: memref<16x32xf32, #tpu.memory_space<vmem>>, %arg2: memref<16x32xf32, #tpu.memory_space<vmem>>, %arg3: memref<32x32xf32, #tpu.memory_space<vmem>>, %arg4: memref<1x32xf32, #tpu.memory_space<vmem>>, %arg5: memref<1x32xf32, #tpu.memory_space<vmem>>, %arg6: memref<1x32xf32, #tpu.memory_space<vmem>>, %arg7: memref<16x32xf32, #tpu.memory_space<vmem>>) attributes {dimension_semantics = [#tpu.dimension_semantics<parallel>], iteration_bounds = array<i64: 1>, scalar_prefetch = 0 : i64, scratch_operands = 0 : i64, tpu.core_type = #tpu.core_type<tc>, window_params = [{transform_indices = @transform_0, window_bounds = array<i64: 16, 32>}, {transform_indices = @transform_1, window_bounds = array<i64: 16, 32>}, {pipeline_mode = #tpu.pipeline_mode<synchronous>, transform_indices = @transform_2, window_bounds = array<i64: 32, 32>}, {pipeline_mode = #tpu.pipeline_mode<synchronous>, transform_indices = @transform_3, window_bounds = array<i64: 1, 32>}, {pipeline_mode = #tpu.pipeline_mode<synchronous>, transform_indices = @transform_4, window_bounds = array<i64: 1, 32>}, {pipeline_mode = #tpu.pipeline_mode<synchronous>, transform_indices = @transform_5, window_bounds = array<i64: 1, 32>}, {transform_indices = @transform_6, window_bounds = array<i64: 16, 32>}]} {
    %c0 = arith.constant 0 : index
    %c0_0 = arith.constant 0 : index
    %0 = vector.load %arg1[%c0, %c0_0] : memref<16x32xf32, #tpu.memory_space<vmem>>, vector<16x32xf32>
    %c0_1 = arith.constant 0 : index
    %c0_2 = arith.constant 0 : index
    %1 = vector.load %arg3[%c0_1, %c0_2] : memref<32x32xf32, #tpu.memory_space<vmem>>, vector<32x32xf32>
    %cst = arith.constant dense<0.000000e+00> : vector<16x32xf32>
    %2 = tpu.matmul %0, %1, %cst {dimension_numbers = #tpu.dot_dimension_numbers<[1], [0], [0], [1], [0, 0, 1, 1], [], []>} : vector<16x32xf32>, vector<32x32xf32>, vector<16x32xf32> -> vector<16x32xf32>
    %c0_3 = arith.constant 0 : index
    %c0_4 = arith.constant 0 : index
    %3 = vector.load %arg4[%c0_3, %c0_4] : memref<1x32xf32, #tpu.memory_space<vmem>>, vector<1x32xf32>
    %4 = vector.broadcast %3 : vector<1x32xf32> to vector<16x32xf32>
    %5 = arith.addf %2, %4 : vector<16x32xf32>
    %c0_5 = arith.constant 0 : index
    %c0_6 = arith.constant 0 : index
    %6 = vector.load %arg2[%c0_5, %c0_6] : memref<16x32xf32, #tpu.memory_space<vmem>>, vector<16x32xf32>
    %7 = arith.addf %5, %6 : vector<16x32xf32>
    %c0_7 = arith.constant 0 : index
    %c0_8 = arith.constant 0 : index
    %8 = vector.load %arg5[%c0_7, %c0_8] : memref<1x32xf32, #tpu.memory_space<vmem>>, vector<1x32xf32>
    %c0_9 = arith.constant 0 : index
    %c0_10 = arith.constant 0 : index
    %9 = vector.load %arg6[%c0_9, %c0_10] : memref<1x32xf32, #tpu.memory_space<vmem>>, vector<1x32xf32>
    %cst_11 = arith.constant dense<0.000000e+00> : vector<16xf32>
    %10 = vector.multi_reduction <add>, %7, %cst_11 [1] : vector<16x32xf32> to vector<16xf32>
    %11 = vector.shape_cast %10 : vector<16xf32> to vector<16x1xf32>
    %cst_12 = arith.constant 3.200000e+01 : f32
    %12 = vector.broadcast %cst_12 : f32 to vector<16x1xf32>
    %13 = arith.divf %11, %12 : vector<16x1xf32>
    %14 = vector.broadcast %13 : vector<16x1xf32> to vector<16x32xf32>
    %15 = arith.subf %7, %14 : vector<16x32xf32>
    %16 = arith.mulf %15, %15 : vector<16x32xf32>
    %cst_13 = arith.constant dense<0.000000e+00> : vector<16xf32>
    %17 = vector.multi_reduction <add>, %16, %cst_13 [1] : vector<16x32xf32> to vector<16xf32>
    %18 = vector.shape_cast %17 : vector<16xf32> to vector<16x1xf32>
    %cst_14 = arith.constant 3.200000e+01 : f32
    %19 = vector.broadcast %cst_14 : f32 to vector<16x1xf32>
    %20 = arith.divf %18, %19 : vector<16x1xf32>
    %21 = vector.broadcast %13 : vector<16x1xf32> to vector<16x32xf32>
    %22 = arith.subf %7, %21 : vector<16x32xf32>
    %cst_15 = arith.constant 9.99999997E-7 : f32
    %23 = vector.broadcast %cst_15 : f32 to vector<16x1xf32>
    %24 = arith.addf %20, %23 : vector<16x1xf32>
    %25 = math.rsqrt %24 : vector<16x1xf32>
    %26 = vector.broadcast %25 : vector<16x1xf32> to vector<16x32xf32>
    %27 = arith.mulf %22, %26 : vector<16x32xf32>
    %28 = vector.broadcast %8 : vector<1x32xf32> to vector<16x32xf32>
    %29 = arith.mulf %27, %28 : vector<16x32xf32>
    %30 = vector.broadcast %9 : vector<1x32xf32> to vector<16x32xf32>
    %31 = arith.addf %29, %30 : vector<16x32xf32>
    %c0_16 = arith.constant 0 : index
    %c0_17 = arith.constant 0 : index
    %32 = vector.load %arg7[%c0_16, %c0_17] : memref<16x32xf32, #tpu.memory_space<vmem>>, vector<16x32xf32>
    tpu.vector_store %arg7[%c0_16, %c0_17], %31 {strides = array<i32>} : memref<16x32xf32, #tpu.memory_space<vmem>>, vector<16x32xf32>,
    return
  }
  func.func @transform_0(%arg0: i32) -> (i32, i32) {
    %c0_i32 = arith.constant 0 : i32
    %c0_i32_0 = arith.constant 0 : i32
    return %arg0, %c0_i32 : i32, i32
  }
  func.func @transform_1(%arg0: i32) -> (i32, i32) {
    %c0_i32 = arith.constant 0 : i32
    %c0_i32_0 = arith.constant 0 : i32
    return %arg0, %c0_i32 : i32, i32
  }
  func.func @transform_2(%arg0: i32) -> (i32, i32) {
    %c0_i32 = arith.constant 0 : i32
    %c0_i32_0 = arith.constant 0 : i32
    %c0_i32_1 = arith.constant 0 : i32
    return %c0_i32, %c0_i32_0 : i32, i32
  }
  func.func @transform_3(%arg0: i32) -> (i32, i32) {
    %c0_i32 = arith.constant 0 : i32
    %c0_i32_0 = arith.constant 0 : i32
    %c0_i32_1 = arith.constant 0 : i32
    return %c0_i32, %c0_i32_0 : i32, i32
  }
  func.func @transform_4(%arg0: i32) -> (i32, i32) {
    %c0_i32 = arith.constant 0 : i32
    %c0_i32_0 = arith.constant 0 : i32
    %c0_i32_1 = arith.constant 0 : i32
    return %c0_i32, %c0_i32_0 : i32, i32
  }
  func.func @transform_5(%arg0: i32) -> (i32, i32) {
    %c0_i32 = arith.constant 0 : i32
    %c0_i32_0 = arith.constant 0 : i32
    %c0_i32_1 = arith.constant 0 : i32
    return %c0_i32, %c0_i32_0 : i32, i32
  }
  func.func @transform_6(%arg0: i32) -> (i32, i32) {
    %c0_i32 = arith.constant 0 : i32
    %c0_i32_0 = arith.constant 0 : i32
    return %arg0, %c0_i32 : i32, i32
  }
}

module attributes {stable_mosaic.version = 11 : i64} {
  func.func @_ffn_ln_kernel(%arg0: i32, %arg1: memref<16x32xf32, #tpu.memory_space<vmem>>, %arg2: memref<32x128xf32, #tpu.memory_space<vmem>>, %arg3: memref<1x128xf32, #tpu.memory_space<vmem>>, %arg4: memref<128x32xf32, #tpu.memory_space<vmem>>, %arg5: memref<1x32xf32, #tpu.memory_space<vmem>>, %arg6: memref<1x32xf32, #tpu.memory_space<vmem>>, %arg7: memref<1x32xf32, #tpu.memory_space<vmem>>, %arg8: memref<16x32xf32, #tpu.memory_space<vmem>>) attributes {dimension_semantics = [#tpu.dimension_semantics<parallel>], iteration_bounds = array<i64: 1>, scalar_prefetch = 0 : i64, scratch_operands = 0 : i64, tpu.core_type = #tpu.core_type<tc>, window_params = [{transform_indices = @transform_0, window_bounds = array<i64: 16, 32>}, {pipeline_mode = #tpu.pipeline_mode<synchronous>, transform_indices = @transform_1, window_bounds = array<i64: 32, 128>}, {pipeline_mode = #tpu.pipeline_mode<synchronous>, transform_indices = @transform_2, window_bounds = array<i64: 1, 128>}, {pipeline_mode = #tpu.pipeline_mode<synchronous>, transform_indices = @transform_3, window_bounds = array<i64: 128, 32>}, {pipeline_mode = #tpu.pipeline_mode<synchronous>, transform_indices = @transform_4, window_bounds = array<i64: 1, 32>}, {pipeline_mode = #tpu.pipeline_mode<synchronous>, transform_indices = @transform_5, window_bounds = array<i64: 1, 32>}, {pipeline_mode = #tpu.pipeline_mode<synchronous>, transform_indices = @transform_6, window_bounds = array<i64: 1, 32>}, {transform_indices = @transform_7, window_bounds = array<i64: 16, 32>}]} {
    %c0 = arith.constant 0 : index
    %c0_0 = arith.constant 0 : index
    %0 = vector.load %arg1[%c0, %c0_0] : memref<16x32xf32, #tpu.memory_space<vmem>>, vector<16x32xf32>
    %c0_1 = arith.constant 0 : index
    %c0_2 = arith.constant 0 : index
    %1 = vector.load %arg2[%c0_1, %c0_2] : memref<32x128xf32, #tpu.memory_space<vmem>>, vector<32x128xf32>
    %cst = arith.constant dense<0.000000e+00> : vector<16x128xf32>
    %2 = tpu.matmul %0, %1, %cst {dimension_numbers = #tpu.dot_dimension_numbers<[1], [0], [0], [1], [0, 0, 1, 1], [], []>} : vector<16x32xf32>, vector<32x128xf32>, vector<16x128xf32> -> vector<16x128xf32>
    %c0_3 = arith.constant 0 : index
    %c0_4 = arith.constant 0 : index
    %3 = vector.load %arg3[%c0_3, %c0_4] : memref<1x128xf32, #tpu.memory_space<vmem>>, vector<1x128xf32>
    %4 = vector.broadcast %3 : vector<1x128xf32> to vector<16x128xf32>
    %5 = arith.addf %2, %4 : vector<16x128xf32>
    %cst_5 = arith.constant 0.000000e+00 : f32
    %6 = vector.broadcast %cst_5 : f32 to vector<16x128xf32>
    %7 = arith.maximumf %5, %6 : vector<16x128xf32>
    %c0_6 = arith.constant 0 : index
    %c0_7 = arith.constant 0 : index
    %8 = vector.load %arg4[%c0_6, %c0_7] : memref<128x32xf32, #tpu.memory_space<vmem>>, vector<128x32xf32>
    %cst_8 = arith.constant dense<0.000000e+00> : vector<16x32xf32>
    %9 = tpu.matmul %7, %8, %cst_8 {dimension_numbers = #tpu.dot_dimension_numbers<[1], [0], [0], [1], [0, 0, 1, 1], [], []>} : vector<16x128xf32>, vector<128x32xf32>, vector<16x32xf32> -> vector<16x32xf32>
    %c0_9 = arith.constant 0 : index
    %c0_10 = arith.constant 0 : index
    %10 = vector.load %arg5[%c0_9, %c0_10] : memref<1x32xf32, #tpu.memory_space<vmem>>, vector<1x32xf32>
    %11 = vector.broadcast %10 : vector<1x32xf32> to vector<16x32xf32>
    %12 = arith.addf %9, %11 : vector<16x32xf32>
    %13 = arith.addf %0, %12 : vector<16x32xf32>
    %c0_11 = arith.constant 0 : index
    %c0_12 = arith.constant 0 : index
    %14 = vector.load %arg6[%c0_11, %c0_12] : memref<1x32xf32, #tpu.memory_space<vmem>>, vector<1x32xf32>
    %c0_13 = arith.constant 0 : index
    %c0_14 = arith.constant 0 : index
    %15 = vector.load %arg7[%c0_13, %c0_14] : memref<1x32xf32, #tpu.memory_space<vmem>>, vector<1x32xf32>
    %cst_15 = arith.constant dense<0.000000e+00> : vector<16xf32>
    %16 = vector.multi_reduction <add>, %13, %cst_15 [1] : vector<16x32xf32> to vector<16xf32>
    %17 = vector.shape_cast %16 : vector<16xf32> to vector<16x1xf32>
    %cst_16 = arith.constant 3.200000e+01 : f32
    %18 = vector.broadcast %cst_16 : f32 to vector<16x1xf32>
    %19 = arith.divf %17, %18 : vector<16x1xf32>
    %20 = vector.broadcast %19 : vector<16x1xf32> to vector<16x32xf32>
    %21 = arith.subf %13, %20 : vector<16x32xf32>
    %22 = arith.mulf %21, %21 : vector<16x32xf32>
    %cst_17 = arith.constant dense<0.000000e+00> : vector<16xf32>
    %23 = vector.multi_reduction <add>, %22, %cst_17 [1] : vector<16x32xf32> to vector<16xf32>
    %24 = vector.shape_cast %23 : vector<16xf32> to vector<16x1xf32>
    %cst_18 = arith.constant 3.200000e+01 : f32
    %25 = vector.broadcast %cst_18 : f32 to vector<16x1xf32>
    %26 = arith.divf %24, %25 : vector<16x1xf32>
    %27 = vector.broadcast %19 : vector<16x1xf32> to vector<16x32xf32>
    %28 = arith.subf %13, %27 : vector<16x32xf32>
    %cst_19 = arith.constant 9.99999997E-7 : f32
    %29 = vector.broadcast %cst_19 : f32 to vector<16x1xf32>
    %30 = arith.addf %26, %29 : vector<16x1xf32>
    %31 = math.rsqrt %30 : vector<16x1xf32>
    %32 = vector.broadcast %31 : vector<16x1xf32> to vector<16x32xf32>
    %33 = arith.mulf %28, %32 : vector<16x32xf32>
    %34 = vector.broadcast %14 : vector<1x32xf32> to vector<16x32xf32>
    %35 = arith.mulf %33, %34 : vector<16x32xf32>
    %36 = vector.broadcast %15 : vector<1x32xf32> to vector<16x32xf32>
    %37 = arith.addf %35, %36 : vector<16x32xf32>
    %c0_20 = arith.constant 0 : index
    %c0_21 = arith.constant 0 : index
    %38 = vector.load %arg8[%c0_20, %c0_21] : memref<16x32xf32, #tpu.memory_space<vmem>>, vector<16x32xf32>
    tpu.vector_store %arg8[%c0_20, %c0_21], %37 {strides = array<i32>} : memref<16x32xf32, #tpu.memory_space<vmem>>, vector<16x32xf32>,
    return
  }
  func.func @transform_0(%arg0: i32) -> (i32, i32) {
    %c0_i32 = arith.constant 0 : i32
    %c0_i32_0 = arith.constant 0 : i32
    return %arg0, %c0_i32 : i32, i32
  }
  func.func @transform_1(%arg0: i32) -> (i32, i32) {
    %c0_i32 = arith.constant 0 : i32
    %c0_i32_0 = arith.constant 0 : i32
    %c0_i32_1 = arith.constant 0 : i32
    return %c0_i32, %c0_i32_0 : i32, i32
  }
  func.func @transform_2(%arg0: i32) -> (i32, i32) {
    %c0_i32 = arith.constant 0 : i32
    %c0_i32_0 = arith.constant 0 : i32
    %c0_i32_1 = arith.constant 0 : i32
    return %c0_i32, %c0_i32_0 : i32, i32
  }
  func.func @transform_3(%arg0: i32) -> (i32, i32) {
    %c0_i32 = arith.constant 0 : i32
    %c0_i32_0 = arith.constant 0 : i32
    %c0_i32_1 = arith.constant 0 : i32
    return %c0_i32, %c0_i32_0 : i32, i32
  }
  func.func @transform_4(%arg0: i32) -> (i32, i32) {
    %c0_i32 = arith.constant 0 : i32
    %c0_i32_0 = arith.constant 0 : i32
    %c0_i32_1 = arith.constant 0 : i32
    return %c0_i32, %c0_i32_0 : i32, i32
  }
  func.func @transform_5(%arg0: i32) -> (i32, i32) {
    %c0_i32 = arith.constant 0 : i32
    %c0_i32_0 = arith.constant 0 : i32
    %c0_i32_1 = arith.constant 0 : i32
    return %c0_i32, %c0_i32_0 : i32, i32
  }
  func.func @transform_6(%arg0: i32) -> (i32, i32) {
    %c0_i32 = arith.constant 0 : i32
    %c0_i32_0 = arith.constant 0 : i32
    %c0_i32_1 = arith.constant 0 : i32
    return %c0_i32, %c0_i32_0 : i32, i32
  }
  func.func @transform_7(%arg0: i32) -> (i32, i32) {
    %c0_i32 = arith.constant 0 : i32
    %c0_i32_0 = arith.constant 0 : i32
    return %arg0, %c0_i32 : i32, i32
  }
}

module attributes {stable_mosaic.version = 11 : i64} {
  func.func @_matmul_kernel(%arg0: i32, %arg1: i32, %arg2: i32, %arg3: memref<16x32xf32, #tpu.memory_space<vmem>>, %arg4: memref<32x640xf32, #tpu.memory_space<vmem>>, %arg5: memref<1x640xf32, #tpu.memory_space<vmem>>, %arg6: memref<16x640xf32, #tpu.memory_space<vmem>>, %arg7: memref<16x640xf32, #tpu.memory_space<vmem>>) attributes {dimension_semantics = [#tpu.dimension_semantics<parallel>, #tpu.dimension_semantics<parallel>, #tpu.dimension_semantics<arbitrary>], iteration_bounds = array<i64: 1, 47, 1>, scalar_prefetch = 0 : i64, scratch_operands = 1 : i64, tpu.core_type = #tpu.core_type<tc>, window_params = [{transform_indices = @transform_0, window_bounds = array<i64: 16, 32>}, {transform_indices = @transform_1, window_bounds = array<i64: 32, 640>}, {transform_indices = @transform_2, window_bounds = array<i64: 1, 640>}, {transform_indices = @transform_3, window_bounds = array<i64: 16, 640>}]} {
    %c0_i32 = arith.constant 0 : i32
    %0 = arith.cmpi eq, %arg2, %c0_i32 : i32
    %1 = arith.extui %0 : i1 to i32
    %c0_i32_0 = arith.constant 0 : i32
    %2 = arith.cmpi ne, %1, %c0_i32_0 : i32
    scf.if %2 {
      %cst_10 = arith.constant 0.000000e+00 : f32
      %12 = vector.broadcast %cst_10 : f32 to vector<16x640xf32>
      %c0_11 = arith.constant 0 : index
      %c0_12 = arith.constant 0 : index
      %13 = vector.load %arg7[%c0_11, %c0_12] : memref<16x640xf32, #tpu.memory_space<vmem>>, vector<16x640xf32>
      tpu.vector_store %arg7[%c0_11, %c0_12], %12 {strides = array<i32>} : memref<16x640xf32, #tpu.memory_space<vmem>>, vector<16x640xf32>,
    } else {
    }
    %c0 = arith.constant 0 : index
    %c0_1 = arith.constant 0 : index
    %3 = vector.load %arg7[%c0, %c0_1] : memref<16x640xf32, #tpu.memory_space<vmem>>, vector<16x640xf32>
    %c0_2 = arith.constant 0 : index
    %c0_3 = arith.constant 0 : index
    %4 = vector.load %arg3[%c0_2, %c0_3] : memref<16x32xf32, #tpu.memory_space<vmem>>, vector<16x32xf32>
    %c0_4 = arith.constant 0 : index
    %c0_5 = arith.constant 0 : index
    %5 = vector.load %arg4[%c0_4, %c0_5] : memref<32x640xf32, #tpu.memory_space<vmem>>, vector<32x640xf32>
    %cst = arith.constant dense<0.000000e+00> : vector<16x640xf32>
    %6 = tpu.matmul %4, %5, %cst {dimension_numbers = #tpu.dot_dimension_numbers<[1], [0], [0], [1], [0, 0, 1, 1], [], []>} : vector<16x32xf32>, vector<32x640xf32>, vector<16x640xf32> -> vector<16x640xf32>
    %7 = arith.addf %3, %6 : vector<16x640xf32>
    %c0_6 = arith.constant 0 : index
    %c0_7 = arith.constant 0 : index
    %8 = vector.load %arg7[%c0_6, %c0_7] : memref<16x640xf32, #tpu.memory_space<vmem>>, vector<16x640xf32>
    tpu.vector_store %arg7[%c0_6, %c0_7], %7 {strides = array<i32>} : memref<16x640xf32, #tpu.memory_space<vmem>>, vector<16x640xf32>,
    %c0_i32_8 = arith.constant 0 : i32
    %9 = arith.cmpi eq, %arg2, %c0_i32_8 : i32
    %10 = arith.extui %9 : i1 to i32
    %c0_i32_9 = arith.constant 0 : i32
    %11 = arith.cmpi ne, %10, %c0_i32_9 : i32
    scf.if %11 {
      %c0_10 = arith.constant 0 : index
      %c0_11 = arith.constant 0 : index
      %12 = vector.load %arg7[%c0_10, %c0_11] : memref<16x640xf32, #tpu.memory_space<vmem>>, vector<16x640xf32>
      %c0_12 = arith.constant 0 : index
      %c0_13 = arith.constant 0 : index
      %13 = vector.load %arg5[%c0_12, %c0_13] : memref<1x640xf32, #tpu.memory_space<vmem>>, vector<1x640xf32>
      %14 = vector.broadcast %13 : vector<1x640xf32> to vector<16x640xf32>
      %15 = arith.addf %12, %14 : vector<16x640xf32>
      %c0_14 = arith.constant 0 : index
      %c0_15 = arith.constant 0 : index
      %16 = vector.load %arg6[%c0_14, %c0_15] : memref<16x640xf32, #tpu.memory_space<vmem>>, vector<16x640xf32>
      tpu.vector_store %arg6[%c0_14, %c0_15], %15 {strides = array<i32>} : memref<16x640xf32, #tpu.memory_space<vmem>>, vector<16x640xf32>,
    } else {
    }
    return
  }
  func.func @transform_0(%arg0: i32, %arg1: i32, %arg2: i32) -> (i32, i32) {
    %c0_i32 = arith.constant 0 : i32
    return %arg0, %arg2 : i32, i32
  }
  func.func @transform_1(%arg0: i32, %arg1: i32, %arg2: i32) -> (i32, i32) {
    %c0_i32 = arith.constant 0 : i32
    return %arg2, %arg1 : i32, i32
  }
  func.func @transform_2(%arg0: i32, %arg1: i32, %arg2: i32) -> (i32, i32) {
    %c0_i32 = arith.constant 0 : i32
    %c0_i32_0 = arith.constant 0 : i32
    return %c0_i32, %arg1 : i32, i32
  }
  func.func @transform_3(%arg0: i32, %arg1: i32, %arg2: i32) -> (i32, i32) {
    %c0_i32 = arith.constant 0 : i32
    return %arg0, %arg1 : i32, i32
  }
}

</mosaic_0001>

<bundles_post_ra>
// kernel: decoder_forward.18
= control target key start
LH: loop header
LB: loop body
LE: loop exit
PB: predicated region body
PF: predicated region fallthrough
CT: control target
= control target key end

     0   :  { %8 = vsyncpa [#allocation3], 0  ;;  %s214_s0 = inlined_call_operand.vmem [shape: f32[16,32], index: 0, kind: input, shape index: {}]   ;;  %s215_s1 = inlined_call_operand.hbm [shape: f32[1,32], index: 1, kind: input, shape index: {}]   ;;  %s216_s2 = inlined_call_operand.hbm [shape: f32[1,32], index: 2, kind: input, shape index: {}]   ;;  %s217_s3 = inlined_call_operand.vmem [shape: f32[16,32], index: 3, kind: output, shape index: {}]  }
   0x1   :  { %9 = vsyncpa [#allocation5], 0  ;;  %s150_s12 = smov [#allocation2]   ;;  %s151_s14 = smov [#allocation4]  }
   0x2   :  { %s18_s13 = sshll.u32 %s150_s12, 4  ;;  %s28_s15 = sshll.u32 %s151_s14, 4  ;;  %s19_s13 = int_to_ptr.vmem [resolvable:$true] %s18_s13  ;;  %s29_s15 = int_to_ptr.vmem [resolvable:$true] %s28_s15 }
   0x3   :  { %s102_s18 = scalar_lea.hbm %s215_s1, 16 }
   0x4   :  { %p103_p0 = scmp.ne.s32.totalorder %s215_s1, %s102_s18  ;;  %p106_p1 = scmp.lt.u32.totalorder %s102_s18, %s215_s1 }
   0x6   :  { %p108_p2 = pnand %p106_p1, %p103_p0 }
   0x8   :  { %111 = shalt.err (!%p108_p2)
}
   0x9   :  { %s112_s23 = scalar_lea.vmem %s19_s13, 16  ;;  %s116_s24 = scalar_lea.vmem %s19_s13, 32 }
   0xa   :  { %p113_p3 = scmp.ne.s32.totalorder %s19_s13, %s112_s23  ;;  %p117_p4 = scmp.lt.s32.totalorder %s19_s13, %s19_s13 }
   0xb   :  { %p118_p5 = scmp.lt.s32.totalorder %s116_s24, %s112_s23 }
   0xd   :  { %p119_p6 = por %p118_p5, %p117_p4 }
   0xf   :  { %p120_p7 = pnand %p119_p6, %p113_p3 }
  0x11   :  { %123 = shalt.err (!%p120_p7)
}
  0x12   :  { %21 = dma.hbm_to_vmem [thread:$0]  %s215_s1, 16, %s19_s13, [#allocation3]  }
  0x13   :  { %s124_s29 = scalar_lea.hbm %s216_s2, 16 }
  0x14   :  { %p125_p8 = scmp.ne.s32.totalorder %s216_s2, %s124_s29  ;;  %p128_p9 = scmp.lt.u32.totalorder %s124_s29, %s216_s2 }
  0x16   :  { %p130_p10 = pnand %p128_p9, %p125_p8 }
  0x18   :  { %133 = shalt.err (!%p130_p10)
}
  0x19   :  { %s134_s7 = scalar_lea.vmem %s29_s15, 16  ;;  %s138_s8 = scalar_lea.vmem %s29_s15, 32 }
  0x1a   :  { %p135_p11 = scmp.ne.s32.totalorder %s29_s15, %s134_s7  ;;  %p139_p12 = scmp.lt.s32.totalorder %s29_s15, %s29_s15 }
  0x1b   :  { %p140_p13 = scmp.lt.s32.totalorder %s138_s8, %s134_s7 }
  0x1d   :  { %p141_p0 = por %p140_p13, %p139_p12 }
  0x1f   :  { %p142_p1 = pnand %p141_p0, %p135_p11 }
  0x21   :  { %145 = shalt.err (!%p142_p1)
}
  0x22   :  { %31 = dma.hbm_to_vmem [thread:$0]  %s216_s2, 16, %s29_s15, [#allocation5]  }
  0x23   :  { %146 = dma.done.wait [#allocation3], 16  }
  0x24   :  { %147 = vsyncadd [#allocation3], 4294967280 }
  0x25   :  { %148 = dma.done.wait [#allocation5], 16  }
  0x26   :  { %149 = vsyncadd [#allocation5], 4294967280  ;;  %vm42_vm0 = vcmask 261120   ;;  %v38_v0 = vld [vmem:[%s214_s0] sm:$0xff]  ;;  %v39_v1 = vld [vmem:[%s214_s0 + $0x8] sm:$0xff] }
  0x27   :  { %v43_v2 = vsel %vm42_vm0, %v38_v0, 0.0  ;;  %v46_v3 = vsel %vm42_vm0, %v39_v1, 0.0  ;;  %v94_v21 = vld [vmem:[#allocation2] ss:$0 sm:$0xff]  ;;  %v95_v23 = vld [vmem:[#allocation4] ss:$0 sm:$0xff] }
  0x28   :  { %44 = vadd.xlane.f32.xlu0 %v43_v2 }
  0x2c   :  { %47 = vadd.xlane.f32.xlu0 %v46_v3 }
  0xb5   :  { %v45_v4 = vpop.xlane.xlu0 %44 }
  0xb6   :  { %v50_v5 = vmul.f32 0.03125, %v45_v4 }
  0xb8   :  { %v52_v6 = vsub.f32 %v38_v0, %v50_v5 }
  0xb9   :  { %v48_v7 = vpop.xlane.xlu0 %47 }
  0xba   :  { %v51_v8 = vmul.f32 0.03125, %v48_v7  ;;  %v54_v9 = vmul.f32 %v52_v6, %v52_v6 }
  0xbc   :  { %v53_v10 = vsub.f32 %v39_v1, %v51_v8  ;;  %v56_v11 = vsel %vm42_vm0, %v54_v9, 0.0 }
  0xbd   :  { %57 = vadd.xlane.f32.xlu1 %v56_v11 }
  0xbe   :  { %v55_v12 = vmul.f32 %v53_v10, %v53_v10 }
  0xc0   :  { %v59_v13 = vsel %vm42_vm0, %v55_v12, 0.0 }
  0xc1   :  { %60 = vadd.xlane.f32.xlu1 %v59_v13 }
 0x14a   :  { %v58_v14 = vpop.xlane.xlu1 %57 }
 0x14b   :  { %v62_v15 = vmul.f32 0.03125, %v58_v14 }
 0x14d   :  { %v64_v16 = vadd.f32 1e-06, %v62_v15 }
 0x14e   :  { %v61_v17 = vpop.xlane.xlu1 %60 }
 0x14f   :  { %98 = vrsqrt.f32 %v64_v16  ;;  %v63_v18 = vmul.f32 0.03125, %v61_v17 }
 0x151   :  { %v65_v19 = vadd.f32 1e-06, %v63_v18 }
 0x153   :  { %100 = vrsqrt.f32 %v65_v19 }
 0x159   :  { %v99_v20 = vpop.eup %98 }
 0x15a   :  { %v68_v22 = vmul.f32 %v99_v20, %v52_v6 }
 0x15c   :  { %v76_v24 = vmul.f32 %v94_v21, %v68_v22 }
 0x15d   :  { %v101_v25 = vpop.eup %100 }
 0x15e   :  { %v84_v26 = vadd.f32 %v95_v23, %v76_v24  ;;  %v69_v27 = vmul.f32 %v101_v25, %v53_v10 }
 0x160   :  { %86 = vst.msk [vmem:[%s217_s3] sm:$0xff] %vm42_vm0, %v84_v26  ;;  %v77_v28 = vmul.f32 %v94_v21, %v69_v27 }
 0x162   :  { %v85_v29 = vadd.f32 %v95_v23, %v77_v28 }
 0x164   :  { %87 = vst.msk [vmem:[%s217_s3 + $0x8] sm:$0xff] %vm42_vm0, %v85_v29 }
 0x165   :  { %92 = vsyncpa [#allocation3], 1 }
 0x166   :  { %93 = vsyncpa [#allocation5], 1 }

// kernel: decoder_forward.19
= control target key start
LH: loop header
LB: loop body
LE: loop exit
PB: predicated region body
PF: predicated region fallthrough
CT: control target
= control target key end

     0   :  { %vm29_vm0 = vcmask 261120   ;;  %vm18_vm1 = vcmask 785408   ;;  %v165_v3 = vmov 0.0   ;;  %s221_s1 = inlined_call_operand.vmem [shape: f32[32,96], index: 1, kind: input, shape index: {}]   ;;  %s222_s0 = inlined_call_operand.vmem [shape: f32[16,32], index: 0, kind: input, shape index: {}]   ;;  %s223_s2 = inlined_call_operand.vmem [shape: f32[1,96], index: 2, kind: input, shape index: {}]   ;;  %s224_s3 = inlined_call_operand.vmem [shape: f32[16,96], index: 3, kind: output, shape index: {}]  }
   0x1   :  { %v25_v0 = vld [vmem:[%s221_s1] sm:$0xff]  ;;  %v26_v1 = vld [vmem:[%s221_s1 + $0x8] sm:$0xff]  ;;  %v27_v2 = vld [vmem:[%s221_s1 + $0x10] sm:$0xff]  ;;  %20 = vst.msk [vmem:[#allocation2 + $0x8] sm:$0xff] %vm18_vm1, %v165_v3 }
   0x2   :  { %19 = vst.msk [vmem:[#allocation2] sm:$0xff] %vm18_vm1, %v165_v3  ;;  %v156_v4 = vpack.c.bf16 %v26_v1, %v25_v0  ;;  %v28_v5 = vld [vmem:[%s221_s1 + $0x18] sm:$0xff]  ;;  %v23_v6 = vld [vmem:[%s222_s0] sm:$0xff]  ;;  %v24_v8 = vld [vmem:[%s222_s0 + $0x8] sm:$0xff] }
   0x3   :  { %v160_v7 = vpack.c.bf16 %v28_v5, %v27_v2  ;;  %153 = vmatprep.mubr.msk.f32.mxu0 %vm29_vm0, %v23_v6  ;;  %v138_v15 = vld [vmem:[%s223_s2] ss:$0 sm:$0xff] }
   0x4   :  { %157 = vmatprep.subr.bf16.mxu0 %v156_v4 }
   0x5   :  { %159 = vmatpush3.bf16.msra.mxu0 %v156_v4 }
   0x6   :  { %161 = vmatprep.subr.bf16.mxu0 %v160_v7 }
   0x8   :  { %v22_v9 = vld [vmem:[#allocation2 + $0x8] sm:$0xff] }
   0x9   :  { %163 = vmatpush3.bf16.msra.mxu0 %v160_v7  ;;  %v21_v10 = vld [vmem:[#allocation2] sm:$0xff] }
   0xc   :  { %154 = vmatmul.mubr.msk.f32.vlgmr.msra.gmra.mrb[0].mxu0 %vm29_vm0, %v24_v8 }
  0xdf   :  { %v155_v11 = vpop.f32.mrb[0].mxu0 }
  0xe0   :  { %v112_v12 = vadd.f32 %v155_v11, %v22_v9  ;;  %v102_v13 = vpop.f32.mrb[1].mxu0 }
  0xe1   :  { %v111_v14 = vadd.f32 %v102_v13, %v21_v10 }
  0xe2   :  { %115 = vst.msk [vmem:[#allocation2 + $0x8] sm:$0xff] %vm18_vm1, %v112_v12 }
  0xe3   :  { %114 = vst.msk [vmem:[#allocation2] sm:$0xff] %vm18_vm1, %v111_v14 }
  0xe9   :  { %v120_v16 = vld [vmem:[#allocation2 + $0x8] sm:$0xff] }
  0xea   :  { %v129_v17 = vadd.f32 %v138_v15, %v120_v16  ;;  %v119_v18 = vld [vmem:[#allocation2] sm:$0xff] }
  0xeb   :  { %v128_v19 = vadd.f32 %v138_v15, %v119_v18 }
  0xec   :  { %131 = vst.msk [vmem:[%s224_s3 + $0x8] sm:$0xff] %vm18_vm1, %v129_v17 }
  0xed   :  { %130 = vst.msk [vmem:[%s224_s3] sm:$0xff] %vm18_vm1, %v128_v19 }

// kernel: decoder_forward.20
= control target key start
LH: loop header
LB: loop body
LE: loop exit
PB: predicated region body
PF: predicated region fallthrough
CT: control target
= control target key end

     0   :  { %s1037_s9 = smov 0   ;;  %s1130_s0 = inlined_call_operand.vmem [shape: f32[2,8,96], index: 0, kind: input, shape index: {}]   ;;  %s1131_s1 = inlined_call_operand.vmem [shape: f32[1,1,8,8], index: 1, kind: input, shape index: {}]   ;;  %s1132_s2 = inlined_call_operand.vmem [shape: f32[2,8,32], index: 2, kind: output, shape index: {}]  }
   0x1 LB: > { %s881_s10 = sadd.s32 4294967295, %s1004_s9   ;;  %p885_p0 = scmp.ge.s32.totalorder %s1004_s9, 1  ;;  %s1004_s9 = sphi %s1037_s9, %s12_s9  }
   0x2   : > { %p111_p1 = scmp.lt.s32.totalorder %s1004_s9, 3 }
   0x4   : > { %p112_p2 = pnand %p885_p0, %p111_p1 }
   0x5   : > { %p131_p3 = scmp.lt.s32.totalorder (!%p112_p2), %s881_s10, 1  ;;  %v1006_v0 = vmov (!%p112_p2), 0.0   ;;  %vm1007_vm0 = vmmov (!%p112_p2), 0   ;;  %s1008_s15 = smov (!%p112_p2), 96   ;;  %vm144_vm1 = vcmask (!%p112_p2), 64512   ;;  %v140_v4 = vld [vmem:[%s1131_s1] sm:$0xff] (!%p112_p2) }
   0x6   : > { %115 = sbr.rel (%p112_p2) target bundleno = 1226 (0x4ca), region = 28  ;;  %918 = vmatprep.subr.mxu0 (!%p112_p2), %v1006_v0  ;;  %920 = vmatprep.mubr.msk.f32.mxu0 (!%p112_p2), %vm1007_vm0, %v1006_v0  ;;  %s1009_s16 = smov (!%p112_p2), 64   ;;  %vm822_vm2 = vcmask (!%p112_p2), 130048   ;;  %vm824_vm3 = vcmask (!%p112_p2), 195584   ;;  %vm826_vm4 = vcmask (!%p112_p2), 261120  }
   0x7   : > { %923 = vmatprep.subr.mxu1 (!%p112_p2), %v1006_v0  ;;  %925 = vmatprep.mubr.msk.f32.mxu1 (!%p112_p2), %vm1007_vm0, %v1006_v0  ;;  %s1010_s17 = smov (!%p112_p2), 88   ;;  %s1011_s18 = smov (!%p112_p2), 120  }
   0x8   : > { %s1012_s19 = smov (!%p112_p2), 80   ;;  %s1013_s20 = smov (!%p112_p2), 112  }
   0x9   : > { %s1014_s21 = smov (!%p112_p2), 72   ;;  %s1015_s22 = smov (!%p112_p2), 104  }
   0xa   : > { %s1016_s25 = smov (!%p112_p2), 56   ;;  %s1017_s26 = smov (!%p112_p2), 48  }
   0xb   : > { %s1018_s27 = smov (!%p112_p2), 40   ;;  %s1019_s28 = smov (!%p112_p2), 8  }
   0xc   : > { %s1020_s29 = smov (!%p112_p2), 16   ;;  %s1021_s30 = smov (!%p112_p2), 24  }
   0xd   : > { %s1134_s10 = smov (!%p131_p3, %s881_s10), 1 }
   0xe   : > { %s886_s11 = sshll.u32 %s1134_s10, 3 }
   0xf   : > { %s134_s14 = scalar_lea.vmem %s1130_s0, %s886_s11  ;;  %s138_s5 = scalar_lea.vmem %s1132_s2, %s886_s11 }
  0x10   : > { %v1059_v1 = vld [vmem:[%s134_s14] sm:$0xff] }
  0x11   : > { %142 = vrot.lane.b32.xlu0 %v1059_v1, %s1008_s15  ;;  %230 = vrot.lane.b32.xlu1 %v1059_v1, %s1009_s16 }
  0x15   : > { %310 = vrot.lane.b32.xlu1 %v1059_v1, %s1010_s17 }
  0x19   : > { %308 = vrot.lane.b32.xlu1 %v1059_v1, %s1011_s18 }
  0x1d   : > { %477 = vrot.lane.b32.xlu1 %v1059_v1, %s1012_s19 }
  0x21   : > { %475 = vrot.lane.b32.xlu1 %v1059_v1, %s1013_s20 }
  0x25   : > { %644 = vrot.lane.b32.xlu1 %v1059_v1, %s1014_s21 }
  0x29   : > { %642 = vrot.lane.b32.xlu1 %v1059_v1, %s1015_s22 }
  0x83   : > { %v143_v2 = vpop.permute.xlu0 %142  ;;  %v231_v9 = vpop.permute.xlu1 %230 }
  0x84   : > { %919 = vmatpush3.xpose.msk.msra.mxu0 %vm144_vm1, %v143_v2  ;;  %924 = vmatpush3.msra.mxu1 %v231_v9 }
  0x85   : > { %933 = vmatprep.subr.mxu0 %v1006_v0  ;;  %928 = vmatprep.subr.mxu1 %v1006_v0 }
  0x87   : > { %921 = vmatmul.mubr.msk.f32.vlgmr.msra.gmra.mrb[0].mxu0 %vm144_vm1, %v1059_v1  ;;  %v311_v10 = vpop.permute.xlu1 %310 }
  0x88   : > { %935 = vmatprep.mubr.msk.f32.mxu0 %vm1007_vm0, %v1006_v0 }
  0x8b   : > { %v309_v13 = vpop.permute.xlu1 %308 }
  0x8f   : > { %v478_v15 = vpop.permute.xlu1 %477 }
  0x93   : > { %v476_v16 = vpop.permute.xlu1 %475 }
  0x97   : > { %v645_v18 = vpop.permute.xlu1 %644 }
  0x9b   : > { %v643_v19 = vpop.permute.xlu1 %642 }
 0x15a   : > { %v215_v3 = vpop.f32.mrb[0].mxu0 }
 0x15b   : > { %v219_v5 = vmul.f32 0.35355338, %v215_v3  ;;  %v922_v6 = vpop.f32.mrb[1].mxu0 }
 0x15d   : > { %v220_v7 = vadd.f32 %v219_v5, %v140_v4 }
 0x15f   : > { %v221_v8 = vsel %vm144_vm1, %v220_v7, -inf }
 0x160   : > { %222 = vmax.xlane.f32.xlu0 %v221_v8 }
 0x176   : > { %397 = vrot.lane.b32.xlu0 %v1059_v1, %s1016_s25 }
 0x1ed   : > { %v223_v11 = vpop.xlane.xlu0 %222 }
 0x1ee   : > { %v224_v12 = vsub.f32 %v220_v7, %v223_v11 }
 0x1f0   : > { %v225_v14 = vmul.f32 1.442695, %v224_v12 }
 0x1f1   : > { %v398_v20 = vpop.permute.xlu0 %397 }
 0x1f2   : > { %982 = vpow2.f32 %v225_v14  ;;  %934 = vmatpush3.msra.mxu0 %v398_v20 }
 0x1f3   : > { %943 = vmatprep.subr.mxu0 %v1006_v0 }
 0x1fc   : > { %v1081_v17 = vpop.eup %982 }
 0x1fd   : > { %926 = vmatmul.mubr.msk.f32.vlgmr.msra.gmra.mrb[0].mxu1 %vm144_vm1, %v1081_v17  ;;  %v227_v55 = vsel %vm144_vm1, %v1081_v17, 0.0 }
 0x1fe   : > { %929 = vmatpush3.xpose.msk.msra.mxu1 %vm144_vm1, %v311_v10  ;;  %930 = vmatprep.mubr.msk.f32.mxu1 %vm1007_vm0, %v1006_v0 }
 0x1ff   : > { %938 = vmatprep.subr.mxu1 %v1006_v0 }
 0x201   : > { %931 = vmatmul.mubr.msk.f32.vlgmr.msra.gmra.mrb[2].mxu1 %vm144_vm1, %v309_v13 }
 0x202   : > { %939 = vmatpush3.xpose.msk.msra.mxu1 %vm144_vm1, %v478_v15  ;;  %940 = vmatprep.mubr.msk.f32.mxu1 %vm1007_vm0, %v1006_v0 }
 0x203   : > { %948 = vmatprep.subr.mxu1 %v1006_v0 }
 0x205   : > { %941 = vmatmul.mubr.msk.f32.vlgmr.msra.gmra.mrb[4].mxu1 %vm144_vm1, %v476_v16 }
 0x206   : > { %949 = vmatpush3.xpose.msk.msra.mxu1 %vm144_vm1, %v645_v18  ;;  %950 = vmatprep.mubr.msk.f32.mxu1 %vm1007_vm0, %v1006_v0 }
 0x209   : > { %951 = vmatmul.mubr.msk.f32.vlgmr.msra.gmra.mrb[6].mxu1 %vm144_vm1, %v643_v19 }
 0x2d0   : > { %v1100_v21 = vpop.f32.mrb[0].mxu1 }
 0x2d1   : > { %v927_v22 = vpop.f32.mrb[1].mxu1 }
 0x2d4   : > { %v382_v23 = vpop.f32.mrb[2].mxu1 }
 0x2d5   : > { %v386_v24 = vmul.f32 0.35355338, %v382_v23  ;;  %v932_v25 = vpop.f32.mrb[3].mxu1 }
 0x2d7   : > { %v387_v26 = vadd.f32 %v386_v24, %v140_v4 }
 0x2d8   : > { %v549_v27 = vpop.f32.mrb[4].mxu1 }
 0x2d9   : > { %v553_v28 = vmul.f32 0.35355338, %v549_v27  ;;  %v942_v29 = vpop.f32.mrb[5].mxu1  ;;  %v388_v30 = vsel %vm144_vm1, %v387_v26, -inf }
 0x2da   : > { %389 = vmax.xlane.f32.xlu1 %v388_v30 }
 0x2db   : > { %v554_v31 = vadd.f32 %v553_v28, %v140_v4 }
 0x2dc   : > { %v716_v32 = vpop.f32.mrb[6].mxu1 }
 0x2dd   : > { %v720_v33 = vmul.f32 0.35355338, %v716_v32  ;;  %v952_v34 = vpop.f32.mrb[7].mxu1  ;;  %v555_v35 = vsel %vm144_vm1, %v554_v31, -inf }
 0x2de   : > { %556 = vmax.xlane.f32.xlu0 %v555_v35 }
 0x2df   : > { %v721_v36 = vadd.f32 %v720_v33, %v140_v4 }
 0x2e1   : > { %v722_v37 = vsel %vm144_vm1, %v721_v36, -inf }
 0x2e2   : > { %723 = vmax.xlane.f32.xlu0 %v722_v37 }
 0x2eb   : > { %564 = vrot.lane.b32.xlu1 %v1059_v1, %s1017_s26 }
 0x2f8   : > { %731 = vrot.lane.b32.xlu0 %v1059_v1, %s1018_s27 }
 0x367   : > { %v390_v38 = vpop.xlane.xlu1 %389 }
 0x368   : > { %v391_v39 = vsub.f32 %v387_v26, %v390_v38 }
 0x36a   : > { %v392_v40 = vmul.f32 1.442695, %v391_v39 }
 0x36b   : > { %v557_v41 = vpop.xlane.xlu0 %556  ;;  %v565_v47 = vpop.permute.xlu1 %564 }
 0x36c   : > { %984 = vpow2.f32 %v392_v40  ;;  %v558_v42 = vsub.f32 %v554_v31, %v557_v41 }
 0x36e   : > { %v559_v43 = vmul.f32 1.442695, %v558_v42 }
 0x36f   : > { %v724_v44 = vpop.xlane.xlu0 %723 }
 0x370   : > { %986 = vpow2.f32 %v559_v43  ;;  %v725_v45 = vsub.f32 %v721_v36, %v724_v44 }
 0x372   : > { %v726_v46 = vmul.f32 1.442695, %v725_v45 }
 0x373   : > { %v732_v50 = vpop.permute.xlu0 %731 }
 0x374   : > { %988 = vpow2.f32 %v726_v46 }
 0x376   : > { %v985_v48 = vpop.eup %984 }
 0x377   : > { %936 = vmatmul.mubr.msk.f32.vlgmr.msra.gmra.mrb[2].mxu0 %vm144_vm1, %v985_v48  ;;  %v394_v49 = vsel %vm144_vm1, %v985_v48, 0.0 }
 0x378   : > { %944 = vmatpush3.msra.mxu0 %v565_v47  ;;  %395 = vadd.xlane.f32.xlu0 %v394_v49 }
 0x379   : > { %945 = vmatprep.mubr.msk.f32.mxu0 %vm1007_vm0, %v1006_v0  ;;  %953 = vmatprep.subr.mxu0 %v1006_v0 }
 0x37a   : > { %v987_v51 = vpop.eup %986 }
 0x37b   : > { %946 = vmatmul.mubr.msk.f32.vlgmr.msra.gmra.mrb[4].mxu0 %vm144_vm1, %v987_v51  ;;  %v561_v52 = vsel %vm144_vm1, %v987_v51, 0.0 }
 0x37c   : > { %954 = vmatpush3.msra.mxu0 %v732_v50  ;;  %562 = vadd.xlane.f32.xlu1 %v561_v52 }
 0x37d   : > { %955 = vmatprep.mubr.msk.f32.mxu0 %vm1007_vm0, %v1006_v0 }
 0x37e   : > { %v989_v53 = vpop.eup %988 }
 0x37f   : > { %956 = vmatmul.mubr.msk.f32.vlgmr.msra.gmra.mrb[6].mxu0 %vm144_vm1, %v989_v53  ;;  %v728_v54 = vsel %vm144_vm1, %v989_v53, 0.0 }
 0x380   : > { %729 = vadd.xlane.f32.xlu0 %v728_v54 }
 0x384   : > { %228 = vadd.xlane.f32.xlu0 %v227_v55 }
 0x405   : > { %v396_v56 = vpop.xlane.xlu0 %395 }
 0x406   : > { %990 = vrcp.f32 %v396_v56 }
 0x409   : > { %v563_v57 = vpop.xlane.xlu1 %562 }
 0x40a   : > { %992 = vrcp.f32 %v563_v57 }
 0x40d   : > { %v730_v58 = vpop.xlane.xlu0 %729 }
 0x40e   : > { %994 = vrcp.f32 %v730_v58 }
 0x410   : > { %v991_v59 = vpop.eup %990 }
 0x411   : > { %v229_v7 = vpop.xlane.xlu0 %228 }
 0x412   : > { %996 = vrcp.f32 %v229_v7 }
 0x414   : > { %v993_v63 = vpop.eup %992 }
 0x418   : > { %v995_v3 = vpop.eup %994 }
 0x41c   : > { %v997_v8 = vpop.eup %996 }
 0x41d   : > { %v307_v10 = vmul.f32 %v997_v8, %v1100_v21 }
 0x44a   : > { %v469_v60 = vpop.f32.mrb[2].mxu0 }
 0x44b   : > { %v474_v61 = vmul.f32 %v991_v59, %v469_v60  ;;  %v937_v62 = vpop.f32.mrb[3].mxu0 }
 0x44d   : > { %810 = vrot.lane.b32.xlu0 %v474_v61, %s1019_s28 }
 0x44e   : > { %v636_v0 = vpop.f32.mrb[4].mxu0 }
 0x44f   : > { %v641_v1 = vmul.f32 %v993_v63, %v636_v0  ;;  %v947_v2 = vpop.f32.mrb[5].mxu0 }
 0x451   : > { %814 = vrot.lane.b32.xlu1 %v641_v1, %s1020_s29 }
 0x452   : > { %v803_v4 = vpop.f32.mrb[6].mxu0 }
 0x453   : > { %v808_v5 = vmul.f32 %v995_v3, %v803_v4  ;;  %v957_v6 = vpop.f32.mrb[7].mxu0 }
 0x455   : > { %818 = vrot.lane.b32.xlu0 %v808_v5, %s1021_s30 }
 0x4bf   : > { %v811_v9 = vpop.permute.xlu0 %810 }
 0x4c0   : > { %v821_v12 = vsel %vm144_vm1, %v307_v10, %v811_v9 }
 0x4c3   : > { %v815_v11 = vpop.permute.xlu1 %814 }
 0x4c4   : > { %v823_v13 = vsel %vm822_vm2, %v821_v12, %v815_v11 }
 0x4c7   : > { %v819_v14 = vpop.permute.xlu0 %818 }
 0x4c8   : > { %v825_v15 = vsel %vm824_vm3, %v823_v13, %v819_v14 }
 0x4c9   : > { %827 = vst.msk [vmem:[%s138_s5] sm:$0xff] %vm826_vm4, %v825_v15 }
 0x4ca PF: > { %s12_s9 = sadd.s32 1, %s1004_s9  }
 0x4cb   : > { %p9_p4 = scmp.ge.s32.totalorder %s12_s9, 4  }
 0x4cd   :  { %11 = sbr.rel (!%p9_p4) target bundleno = 1 (0x1), region = 58 }

// kernel: decoder_forward.21
= control target key start
LH: loop header
LB: loop body
LE: loop exit
PB: predicated region body
PF: predicated region fallthrough
CT: control target
= control target key end

     0   :  { %vm36_vm0 = vcmask 261120   ;;  %s289_s2 = inlined_call_operand.vmem [shape: f32[32,32], index: 2, kind: input, shape index: {}]   ;;  %s290_s0 = inlined_call_operand.vmem [shape: f32[16,32], index: 0, kind: input, shape index: {}]   ;;  %s291_s3 = inlined_call_operand.vmem [shape: f32[1,32], index: 3, kind: input, shape index: {}]   ;;  %s292_s1 = inlined_call_operand.vmem [shape: f32[16,32], index: 1, kind: input, shape index: {}]   ;;  %s293_s4 = inlined_call_operand.vmem [shape: f32[1,32], index: 4, kind: input, shape index: {}]   ;;  %s294_s5 = inlined_call_operand.vmem [shape: f32[1,32], index: 5, kind: input, shape index: {}]   ;;  %s295_s6 = inlined_call_operand.vmem [shape: f32[16,32], index: 6, kind: output, shape index: {}]  }
   0x1   :  { %v25_v0 = vld [vmem:[%s289_s2] sm:$0xff]  ;;  %v26_v1 = vld [vmem:[%s289_s2 + $0x8] sm:$0xff]  ;;  %v27_v2 = vld [vmem:[%s289_s2 + $0x10] sm:$0xff] }
   0x2   :  { %v195_v3 = vpack.c.bf16 %v26_v1, %v25_v0  ;;  %v28_v4 = vld [vmem:[%s289_s2 + $0x18] sm:$0xff]  ;;  %v23_v5 = vld [vmem:[%s290_s0] sm:$0xff]  ;;  %v24_v7 = vld [vmem:[%s290_s0 + $0x8] sm:$0xff] }
   0x3   :  { %v199_v6 = vpack.c.bf16 %v28_v4, %v27_v2  ;;  %192 = vmatprep.mubr.msk.f32.mxu0 %vm36_vm0, %v23_v5  ;;  %v173_v8 = vld [vmem:[%s291_s3] ss:$0 sm:$0xff]  ;;  %v119_v14 = vld [vmem:[%s292_s1 + $0x8] sm:$0xff] }
   0x4   :  { %196 = vmatprep.subr.bf16.mxu0 %v195_v3  ;;  %v118_v11 = vld [vmem:[%s292_s1] sm:$0xff] }
   0x5   :  { %198 = vmatpush3.bf16.msra.mxu0 %v195_v3  ;;  %v176_v36 = vld [vmem:[%s293_s4] ss:$0 sm:$0xff] }
   0x6   :  { %200 = vmatprep.subr.bf16.mxu0 %v199_v6  ;;  %v177_v38 = vld [vmem:[%s294_s5] ss:$0 sm:$0xff] }
   0x9   :  { %202 = vmatpush3.bf16.msra.mxu0 %v199_v6 }
   0xc   :  { %193 = vmatmul.mubr.msk.f32.vlgmr.msra.gmra.mrb[0].mxu0 %vm36_vm0, %v24_v7 }
  0xdf   :  { %v194_v9 = vpop.f32.mrb[0].mxu0 }
  0xe0   :  { %v109_v10 = vpop.f32.mrb[1].mxu0  ;;  %v115_v12 = vadd.f32 %v194_v9, %v173_v8 }
  0xe1   :  { %v110_v13 = vadd.f32 %v173_v8, %v109_v10 }
  0xe2   :  { %v121_v17 = vadd.f32 %v119_v14, %v115_v12 }
  0xe3   :  { %v120_v15 = vadd.f32 %v118_v11, %v110_v13 }
  0xe4   :  { %v127_v18 = vsel %vm36_vm0, %v121_v17, 0.0 }
  0xe5   :  { %v124_v16 = vsel %vm36_vm0, %v120_v15, 0.0 }
  0xe6   :  { %125 = vadd.xlane.f32.xlu0 %v124_v16 }
  0xea   :  { %128 = vadd.xlane.f32.xlu0 %v127_v18 }
 0x173   :  { %v126_v19 = vpop.xlane.xlu0 %125 }
 0x174   :  { %v131_v20 = vmul.f32 0.03125, %v126_v19 }
 0x176   :  { %v133_v21 = vsub.f32 %v120_v15, %v131_v20 }
 0x177   :  { %v129_v22 = vpop.xlane.xlu0 %128 }
 0x178   :  { %v132_v23 = vmul.f32 0.03125, %v129_v22  ;;  %v135_v24 = vmul.f32 %v133_v21, %v133_v21 }
 0x17a   :  { %v134_v25 = vsub.f32 %v121_v17, %v132_v23  ;;  %v137_v26 = vsel %vm36_vm0, %v135_v24, 0.0 }
 0x17b   :  { %138 = vadd.xlane.f32.xlu1 %v137_v26 }
 0x17c   :  { %v136_v27 = vmul.f32 %v134_v25, %v134_v25 }
 0x17e   :  { %v140_v28 = vsel %vm36_vm0, %v136_v27, 0.0 }
 0x17f   :  { %141 = vadd.xlane.f32.xlu1 %v140_v28 }
 0x208   :  { %v139_v29 = vpop.xlane.xlu1 %138 }
 0x209   :  { %v143_v30 = vmul.f32 0.03125, %v139_v29 }
 0x20b   :  { %v145_v31 = vadd.f32 1e-06, %v143_v30 }
 0x20c   :  { %v142_v32 = vpop.xlane.xlu1 %141 }
 0x20d   :  { %203 = vrsqrt.f32 %v145_v31  ;;  %v144_v33 = vmul.f32 0.03125, %v142_v32 }
 0x20f   :  { %v146_v34 = vadd.f32 1e-06, %v144_v33 }
 0x211   :  { %205 = vrsqrt.f32 %v146_v34 }
 0x217   :  { %v204_v35 = vpop.eup %203 }
 0x218   :  { %v149_v37 = vmul.f32 %v204_v35, %v133_v21 }
 0x21a   :  { %v157_v39 = vmul.f32 %v176_v36, %v149_v37 }
 0x21b   :  { %v206_v40 = vpop.eup %205 }
 0x21c   :  { %v165_v41 = vadd.f32 %v177_v38, %v157_v39  ;;  %v150_v42 = vmul.f32 %v206_v40, %v134_v25 }
 0x21e   :  { %167 = vst.msk [vmem:[%s295_s6] sm:$0xff] %vm36_vm0, %v165_v41  ;;  %v158_v43 = vmul.f32 %v176_v36, %v150_v42 }
 0x220   :  { %v166_v44 = vadd.f32 %v177_v38, %v158_v43 }
 0x222   :  { %168 = vst.msk [vmem:[%s295_s6 + $0x8] sm:$0xff] %vm36_vm0, %v166_v44 }

// kernel: decoder_forward.22
= control target key start
LH: loop header
LB: loop body
LE: loop exit
PB: predicated region body
PF: predicated region fallthrough
CT: control target
= control target key end

     0   :  { %vm18_vm0 = vcmask 261120   ;;  %v164_v3 = vmov 0.0   ;;  %s220_s1 = inlined_call_operand.vmem [shape: f32[32,32], index: 1, kind: input, shape index: {}]   ;;  %s221_s0 = inlined_call_operand.vmem [shape: f32[16,32], index: 0, kind: input, shape index: {}]   ;;  %s222_s2 = inlined_call_operand.vmem [shape: f32[1,32], index: 2, kind: input, shape index: {}]   ;;  %s223_s3 = inlined_call_operand.vmem [shape: f32[16,32], index: 3, kind: output, shape index: {}]  }
   0x1   :  { %v25_v0 = vld [vmem:[%s220_s1] sm:$0xff]  ;;  %v26_v1 = vld [vmem:[%s220_s1 + $0x8] sm:$0xff]  ;;  %v27_v2 = vld [vmem:[%s220_s1 + $0x10] sm:$0xff]  ;;  %20 = vst.msk [vmem:[#allocation2 + $0x8] sm:$0xff] %vm18_vm0, %v164_v3 }
   0x2   :  { %19 = vst.msk [vmem:[#allocation2] sm:$0xff] %vm18_vm0, %v164_v3  ;;  %v155_v4 = vpack.c.bf16 %v26_v1, %v25_v0  ;;  %v28_v5 = vld [vmem:[%s220_s1 + $0x18] sm:$0xff]  ;;  %v23_v6 = vld [vmem:[%s221_s0] sm:$0xff]  ;;  %v24_v8 = vld [vmem:[%s221_s0 + $0x8] sm:$0xff] }
   0x3   :  { %v159_v7 = vpack.c.bf16 %v28_v5, %v27_v2  ;;  %152 = vmatprep.mubr.msk.f32.mxu0 %vm18_vm0, %v23_v6  ;;  %v137_v15 = vld [vmem:[%s222_s2] ss:$0 sm:$0xff] }
   0x4   :  { %156 = vmatprep.subr.bf16.mxu0 %v155_v4 }
   0x5   :  { %158 = vmatpush3.bf16.msra.mxu0 %v155_v4 }
   0x6   :  { %160 = vmatprep.subr.bf16.mxu0 %v159_v7 }
   0x8   :  { %v22_v9 = vld [vmem:[#allocation2 + $0x8] sm:$0xff] }
   0x9   :  { %162 = vmatpush3.bf16.msra.mxu0 %v159_v7  ;;  %v21_v10 = vld [vmem:[#allocation2] sm:$0xff] }
   0xc   :  { %153 = vmatmul.mubr.msk.f32.vlgmr.msra.gmra.mrb[0].mxu0 %vm18_vm0, %v24_v8 }
  0xdf   :  { %v154_v11 = vpop.f32.mrb[0].mxu0 }
  0xe0   :  { %v112_v12 = vadd.f32 %v154_v11, %v22_v9  ;;  %v102_v13 = vpop.f32.mrb[1].mxu0 }
  0xe1   :  { %v111_v14 = vadd.f32 %v102_v13, %v21_v10 }
  0xe2   :  { %114 = vst.msk [vmem:[#allocation2 + $0x8] sm:$0xff] %vm18_vm0, %v112_v12 }
  0xe3   :  { %113 = vst.msk [vmem:[#allocation2] sm:$0xff] %vm18_vm0, %v111_v14 }
  0xe9   :  { %v119_v16 = vld [vmem:[#allocation2 + $0x8] sm:$0xff] }
  0xea   :  { %v128_v17 = vadd.f32 %v137_v15, %v119_v16  ;;  %v118_v18 = vld [vmem:[#allocation2] sm:$0xff] }
  0xeb   :  { %v127_v19 = vadd.f32 %v137_v15, %v118_v18 }
  0xec   :  { %130 = vst.msk [vmem:[%s223_s3 + $0x8] sm:$0xff] %vm18_vm0, %v128_v17 }
  0xed   :  { %129 = vst.msk [vmem:[%s223_s3] sm:$0xff] %vm18_vm0, %v127_v19 }

// kernel: decoder_forward.23
= control target key start
LH: loop header
LB: loop body
LE: loop exit
PB: predicated region body
PF: predicated region fallthrough
CT: control target
= control target key end

     0   :  { %vm29_vm0 = vcmask 261120   ;;  %vm18_vm1 = vcmask 523264   ;;  %v165_v3 = vmov 0.0   ;;  %s221_s1 = inlined_call_operand.vmem [shape: f32[32,64], index: 1, kind: input, shape index: {}]   ;;  %s222_s0 = inlined_call_operand.vmem [shape: f32[16,32], index: 0, kind: input, shape index: {}]   ;;  %s223_s2 = inlined_call_operand.vmem [shape: f32[1,64], index: 2, kind: input, shape index: {}]   ;;  %s224_s3 = inlined_call_operand.vmem [shape: f32[16,64], index: 3, kind: output, shape index: {}]  }
   0x1   :  { %v25_v0 = vld [vmem:[%s221_s1] sm:$0xff]  ;;  %v26_v1 = vld [vmem:[%s221_s1 + $0x8] sm:$0xff]  ;;  %v27_v2 = vld [vmem:[%s221_s1 + $0x10] sm:$0xff]  ;;  %20 = vst.msk [vmem:[#allocation2 + $0x8] sm:$0xff] %vm18_vm1, %v165_v3 }
   0x2   :  { %19 = vst.msk [vmem:[#allocation2] sm:$0xff] %vm18_vm1, %v165_v3  ;;  %v156_v4 = vpack.c.bf16 %v26_v1, %v25_v0  ;;  %v28_v5 = vld [vmem:[%s221_s1 + $0x18] sm:$0xff]  ;;  %v23_v6 = vld [vmem:[%s222_s0] sm:$0xff]  ;;  %v24_v8 = vld [vmem:[%s222_s0 + $0x8] sm:$0xff] }
   0x3   :  { %v160_v7 = vpack.c.bf16 %v28_v5, %v27_v2  ;;  %153 = vmatprep.mubr.msk.f32.mxu0 %vm29_vm0, %v23_v6  ;;  %v138_v15 = vld [vmem:[%s223_s2] ss:$0 sm:$0xff] }
   0x4   :  { %157 = vmatprep.subr.bf16.mxu0 %v156_v4 }
   0x5   :  { %159 = vmatpush3.bf16.msra.mxu0 %v156_v4 }
   0x6   :  { %161 = vmatprep.subr.bf16.mxu0 %v160_v7 }
   0x8   :  { %v22_v9 = vld [vmem:[#allocation2 + $0x8] sm:$0xff] }
   0x9   :  { %163 = vmatpush3.bf16.msra.mxu0 %v160_v7  ;;  %v21_v10 = vld [vmem:[#allocation2] sm:$0xff] }
   0xc   :  { %154 = vmatmul.mubr.msk.f32.vlgmr.msra.gmra.mrb[0].mxu0 %vm29_vm0, %v24_v8 }
  0xdf   :  { %v155_v11 = vpop.f32.mrb[0].mxu0 }
  0xe0   :  { %v112_v12 = vadd.f32 %v155_v11, %v22_v9  ;;  %v102_v13 = vpop.f32.mrb[1].mxu0 }
  0xe1   :  { %v111_v14 = vadd.f32 %v102_v13, %v21_v10 }
  0xe2   :  { %115 = vst.msk [vmem:[#allocation2 + $0x8] sm:$0xff] %vm18_vm1, %v112_v12 }
  0xe3   :  { %114 = vst.msk [vmem:[#allocation2] sm:$0xff] %vm18_vm1, %v111_v14 }
  0xe9   :  { %v120_v16 = vld [vmem:[#allocation2 + $0x8] sm:$0xff] }
  0xea   :  { %v129_v17 = vadd.f32 %v138_v15, %v120_v16  ;;  %v119_v18 = vld [vmem:[#allocation2] sm:$0xff] }
  0xeb   :  { %v128_v19 = vadd.f32 %v138_v15, %v119_v18 }
  0xec   :  { %131 = vst.msk [vmem:[%s224_s3 + $0x8] sm:$0xff] %vm18_vm1, %v129_v17 }
  0xed   :  { %130 = vst.msk [vmem:[%s224_s3] sm:$0xff] %vm18_vm1, %v128_v19 }

// kernel: decoder_forward.33
= control target key start
LH: loop header
LB: loop body
LE: loop exit
PB: predicated region body
PF: predicated region fallthrough
CT: control target
= control target key end

     0   :  { %11 = vsyncpa [#allocation3], 0  ;;  %s429_s0 = inlined_call_operand.vmem [shape: f32[16,32], index: 0, kind: input, shape index: {}]   ;;  %s430_s1 = inlined_call_operand.vmem [shape: f32[16,32], index: 1, kind: input, shape index: {}]   ;;  %s431_s2 = inlined_call_operand.vmem [shape: f32[32,32], index: 2, kind: input, shape index: {}]   ;;  %s432_s3 = inlined_call_operand.hbm [shape: f32[1,32], index: 3, kind: input, shape index: {}]   ;;  %s433_s4 = inlined_call_operand.hbm [shape: f32[1,32], index: 4, kind: input, shape index: {}]   ;;  %s434_s5 = inlined_call_operand.hbm [shape: f32[1,32], index: 5, kind: input, shape index: {}]   ;;  %s435_s6 = inlined_call_operand.vmem [shape: f32[16,32], index: 6, kind: output, shape index: {}]  }
   0x1   :  { %12 = vsyncpa [#allocation5], 0  ;;  %s317_s21 = smov [#allocation4]   ;;  %s318_s23 = smov [#allocation2]  }
   0x2   :  { %s35_s22 = sshll.u32 %s317_s21, 4  ;;  %s25_s24 = sshll.u32 %s318_s23, 4  ;;  %s36_s22 = int_to_ptr.vmem [resolvable:$true] %s35_s22  ;;  %s26_s24 = int_to_ptr.vmem [resolvable:$true] %s25_s24 }
   0x3   :  { %s247_s27 = scalar_lea.hbm %s433_s4, 16 }
   0x4   :  { %p248_p0 = scmp.ne.s32.totalorder %s433_s4, %s247_s27  ;;  %p251_p1 = scmp.lt.u32.totalorder %s247_s27, %s433_s4 }
   0x6   :  { %p253_p2 = pnand %p251_p1, %p248_p0 }
   0x8   :  { %256 = shalt.err (!%p253_p2)
}
   0x9   :  { %s257_s8 = scalar_lea.vmem %s36_s22, 16  ;;  %s261_s9 = scalar_lea.vmem %s36_s22, 32 }
   0xa   :  { %p258_p3 = scmp.ne.s32.totalorder %s36_s22, %s257_s8  ;;  %p262_p4 = scmp.lt.s32.totalorder %s36_s22, %s36_s22 }
   0xb   :  { %p263_p5 = scmp.lt.s32.totalorder %s261_s9, %s257_s8 }
   0xd   :  { %p264_p6 = por %p263_p5, %p262_p4 }
   0xf   :  { %p265_p7 = pnand %p264_p6, %p258_p3 }
  0x11   :  { %268 = shalt.err (!%p265_p7)
}
  0x12   :  { %38 = dma.hbm_to_vmem [thread:$0]  %s433_s4, 16, %s36_s22, [#allocation5]  }
  0x13   :  { %s269_s14 = scalar_lea.hbm %s432_s3, 16 }
  0x14   :  { %p270_p8 = scmp.ne.s32.totalorder %s432_s3, %s269_s14  ;;  %p273_p9 = scmp.lt.u32.totalorder %s269_s14, %s432_s3 }
  0x16   :  { %p275_p10 = pnand %p273_p9, %p270_p8 }
  0x18   :  { %278 = shalt.err (!%p275_p10)
}
  0x19   :  { %s279_s19 = scalar_lea.vmem %s26_s24, 16  ;;  %s283_s20 = scalar_lea.vmem %s26_s24, 32 }
  0x1a   :  { %p280_p11 = scmp.ne.s32.totalorder %s26_s24, %s279_s19  ;;  %p284_p12 = scmp.lt.s32.totalorder %s26_s24, %s26_s24 }
  0x1b   :  { %p285_p13 = scmp.lt.s32.totalorder %s283_s20, %s279_s19 }
  0x1d   :  { %p286_p0 = por %p285_p13, %p284_p12 }
  0x1f   :  { %p287_p1 = pnand %p286_p0, %p280_p11 }
  0x21   :  { %290 = shalt.err (!%p287_p1)
}
  0x22   :  { %28 = dma.hbm_to_vmem [thread:$0]  %s432_s3, 16, %s26_s24, [#allocation3]  }
  0x23   :  { %s319_s22 = smov [#allocation6]   ;;  %s291_s27 = scalar_lea.hbm %s434_s5, 16 }
  0x24   :  { %s45_s23 = sshll.u32 %s319_s22, 4  ;;  %p292_p2 = scmp.ne.s32.totalorder %s434_s5, %s291_s27  ;;  %s46_s23 = int_to_ptr.vmem [resolvable:$true] %s45_s23 }
  0x25   :  { %p295_p3 = scmp.lt.u32.totalorder %s291_s27, %s434_s5 }
  0x27   :  { %p297_p4 = pnand %p295_p3, %p292_p2 }
  0x29   :  { %300 = shalt.err (!%p297_p4)
}
  0x2a   :  { %s301_s8 = scalar_lea.vmem %s46_s23, 16  ;;  %s305_s3 = scalar_lea.vmem %s46_s23, 32 }
  0x2b   :  { %p302_p5 = scmp.ne.s32.totalorder %s46_s23, %s301_s8  ;;  %p306_p6 = scmp.lt.s32.totalorder %s46_s23, %s46_s23 }
  0x2c   :  { %p307_p7 = scmp.lt.s32.totalorder %s305_s3, %s301_s8 }
  0x2e   :  { %p308_p8 = por %p307_p7, %p306_p6 }
  0x30   :  { %p309_p9 = pnand %p308_p8, %p302_p5 }
  0x32   :  { %312 = shalt.err (!%p309_p9)
}
  0x33   :  { %48 = dma.hbm_to_vmem [thread:$0]  %s434_s5, 16, %s46_s23, [#allocation5]  }
  0x34   :  { %313 = dma.done.wait [#allocation3], 16  }
  0x35   :  { %314 = vsyncadd [#allocation3], 4294967280 }
  0x36   :  { %315 = dma.done.wait [#allocation5], 32  }
  0x37   :  { %316 = vsyncadd [#allocation5], 4294967264  ;;  %vm71_vm0 = vcmask 261120   ;;  %v60_v0 = vld [vmem:[%s431_s2] sm:$0xff]  ;;  %v61_v1 = vld [vmem:[%s431_s2 + $0x8] sm:$0xff] }
  0x38   :  { %v62_v2 = vld [vmem:[%s431_s2 + $0x10] sm:$0xff]  ;;  %v232_v3 = vpack.c.bf16 %v61_v1, %v60_v0  ;;  %v63_v4 = vld [vmem:[%s431_s2 + $0x18] sm:$0xff]  ;;  %v58_v5 = vld [vmem:[%s429_s0] sm:$0xff] }
  0x39   :  { %v236_v6 = vpack.c.bf16 %v63_v4, %v62_v2  ;;  %229 = vmatprep.mubr.msk.f32.mxu0 %vm71_vm0, %v58_v5  ;;  %v59_v7 = vld [vmem:[%s429_s0 + $0x8] sm:$0xff]  ;;  %v210_v8 = vld [vmem:[#allocation2] ss:$0 sm:$0xff]  ;;  %v213_v36 = vld [vmem:[#allocation4] ss:$0 sm:$0xff] }
  0x3a   :  { %233 = vmatprep.subr.bf16.mxu0 %v232_v3  ;;  %v153_v11 = vld [vmem:[%s430_s1] sm:$0xff]  ;;  %v154_v14 = vld [vmem:[%s430_s1 + $0x8] sm:$0xff] }
  0x3b   :  { %235 = vmatpush3.bf16.msra.mxu0 %v232_v3  ;;  %v214_v38 = vld [vmem:[#allocation6] ss:$0 sm:$0xff] }
  0x3c   :  { %237 = vmatprep.subr.bf16.mxu0 %v236_v6 }
  0x3f   :  { %239 = vmatpush3.bf16.msra.mxu0 %v236_v6 }
  0x42   :  { %230 = vmatmul.mubr.msk.f32.vlgmr.msra.gmra.mrb[0].mxu0 %vm71_vm0, %v59_v7 }
 0x115   :  { %v231_v9 = vpop.f32.mrb[0].mxu0 }
 0x116   :  { %v144_v10 = vpop.f32.mrb[1].mxu0  ;;  %v150_v12 = vadd.f32 %v231_v9, %v210_v8 }
 0x117   :  { %v145_v13 = vadd.f32 %v210_v8, %v144_v10 }
 0x118   :  { %v156_v17 = vadd.f32 %v154_v14, %v150_v12 }
 0x119   :  { %v155_v15 = vadd.f32 %v153_v11, %v145_v13 }
 0x11a   :  { %v162_v18 = vsel %vm71_vm0, %v156_v17, 0.0 }
 0x11b   :  { %v159_v16 = vsel %vm71_vm0, %v155_v15, 0.0 }
 0x11c   :  { %160 = vadd.xlane.f32.xlu0 %v159_v16 }
 0x120   :  { %163 = vadd.xlane.f32.xlu0 %v162_v18 }
 0x1a9   :  { %v161_v19 = vpop.xlane.xlu0 %160 }
 0x1aa   :  { %v166_v20 = vmul.f32 0.03125, %v161_v19 }
 0x1ac   :  { %v168_v21 = vsub.f32 %v155_v15, %v166_v20 }
 0x1ad   :  { %v164_v22 = vpop.xlane.xlu0 %163 }
 0x1ae   :  { %v167_v23 = vmul.f32 0.03125, %v164_v22  ;;  %v170_v24 = vmul.f32 %v168_v21, %v168_v21 }
 0x1b0   :  { %v169_v25 = vsub.f32 %v156_v17, %v167_v23  ;;  %v172_v26 = vsel %vm71_vm0, %v170_v24, 0.0 }
 0x1b1   :  { %173 = vadd.xlane.f32.xlu1 %v172_v26 }
 0x1b2   :  { %v171_v27 = vmul.f32 %v169_v25, %v169_v25 }
 0x1b4   :  { %v175_v28 = vsel %vm71_vm0, %v171_v27, 0.0 }
 0x1b5   :  { %176 = vadd.xlane.f32.xlu1 %v175_v28 }
 0x23e   :  { %v174_v29 = vpop.xlane.xlu1 %173 }
 0x23f   :  { %v178_v30 = vmul.f32 0.03125, %v174_v29 }
 0x241   :  { %v180_v31 = vadd.f32 1e-06, %v178_v30 }
 0x242   :  { %v177_v32 = vpop.xlane.xlu1 %176 }
 0x243   :  { %243 = vrsqrt.f32 %v180_v31  ;;  %v179_v33 = vmul.f32 0.03125, %v177_v32 }
 0x245   :  { %v181_v34 = vadd.f32 1e-06, %v179_v33 }
 0x247   :  { %245 = vrsqrt.f32 %v181_v34 }
 0x24d   :  { %v244_v35 = vpop.eup %243 }
 0x24e   :  { %v184_v37 = vmul.f32 %v244_v35, %v168_v21 }
 0x250   :  { %v192_v39 = vmul.f32 %v213_v36, %v184_v37 }
 0x251   :  { %v246_v40 = vpop.eup %245 }
 0x252   :  { %v200_v41 = vadd.f32 %v214_v38, %v192_v39  ;;  %v185_v42 = vmul.f32 %v246_v40, %v169_v25 }
 0x254   :  { %202 = vst.msk [vmem:[%s435_s6] sm:$0xff] %vm71_vm0, %v200_v41  ;;  %v193_v43 = vmul.f32 %v213_v36, %v185_v42 }
 0x256   :  { %v201_v44 = vadd.f32 %v214_v38, %v193_v43 }
 0x258   :  { %203 = vst.msk [vmem:[%s435_s6 + $0x8] sm:$0xff] %vm71_vm0, %v201_v44 }
 0x259   :  { %208 = vsyncpa [#allocation3], 1 }
 0x25a   :  { %209 = vsyncpa [#allocation5], 1 }

// kernel: decoder_forward.26
= control target key start
LH: loop header
LB: loop body
LE: loop exit
PB: predicated region body
PF: predicated region fallthrough
CT: control target
= control target key end

     0   :  { %vm39_vm0 = vcmask 261120   ;;  %s530_s1 = inlined_call_operand.vmem [shape: f32[32,128], index: 1, kind: input, shape index: {}]   ;;  %s531_s0 = inlined_call_operand.vmem [shape: f32[16,32], index: 0, kind: input, shape index: {}]   ;;  %s532_s3 = inlined_call_operand.vmem [shape: f32[128,32], index: 3, kind: input, shape index: {}]   ;;  %s533_s2 = inlined_call_operand.vmem [shape: f32[1,128], index: 2, kind: input, shape index: {}]   ;;  %s534_s4 = inlined_call_operand.vmem [shape: f32[1,32], index: 4, kind: input, shape index: {}]   ;;  %s535_s5 = inlined_call_operand.vmem [shape: f32[1,32], index: 5, kind: input, shape index: {}]   ;;  %s536_s6 = inlined_call_operand.vmem [shape: f32[1,32], index: 6, kind: input, shape index: {}]   ;;  %s537_s7 = inlined_call_operand.vmem [shape: f32[16,32], index: 7, kind: output, shape index: {}]  }
   0x1   :  { %v28_v0 = vld [vmem:[%s530_s1] sm:$0xff]  ;;  %v29_v1 = vld [vmem:[%s530_s1 + $0x8] sm:$0xff]  ;;  %v30_v2 = vld [vmem:[%s530_s1 + $0x10] sm:$0xff] }
   0x2   :  { %v350_v3 = vpack.c.bf16 %v29_v1, %v28_v0  ;;  %v31_v4 = vld [vmem:[%s530_s1 + $0x18] sm:$0xff]  ;;  %v449_v5 = vld [vmem:[%s531_s0] sm:$0xff]  ;;  %v124_v8 = vld [vmem:[%s532_s3 + $0x8] sm:$0xff] }
   0x3   :  { %v354_v6 = vpack.c.bf16 %v31_v4, %v30_v2  ;;  %312 = vmatprep.mubr.msk.f32.mxu0 %vm39_vm0, %v449_v5  ;;  %v123_v7 = vld [vmem:[%s532_s3] sm:$0xff]  ;;  %v125_v9 = vld [vmem:[%s532_s3 + $0x10] sm:$0xff]  ;;  %v126_v11 = vld [vmem:[%s532_s3 + $0x18] sm:$0xff] }
   0x4   :  { %351 = vmatprep.subr.bf16.mxu0 %v350_v3  ;;  %v358_v10 = vpack.c.bf16 %v124_v8, %v123_v7  ;;  %v362_v12 = vpack.c.bf16 %v126_v11, %v125_v9  ;;  %v127_v13 = vld [vmem:[%s532_s3 + $0x20] sm:$0xff]  ;;  %v128_v14 = vld [vmem:[%s532_s3 + $0x28] sm:$0xff]  ;;  %v129_v17 = vld [vmem:[%s532_s3 + $0x30] sm:$0xff] }
   0x5   :  { %353 = vmatpush3.bf16.msra.mxu0 %v350_v3  ;;  %v366_v15 = vpack.c.bf16 %v128_v14, %v127_v13  ;;  %v27_v16 = vld [vmem:[%s531_s0 + $0x8] sm:$0xff]  ;;  %v130_v18 = vld [vmem:[%s532_s3 + $0x38] sm:$0xff]  ;;  %v131_v20 = vld [vmem:[%s532_s3 + $0x40] sm:$0xff] }
   0x6   :  { %355 = vmatprep.subr.bf16.mxu0 %v354_v6  ;;  %359 = vmatprep.subr.bf16.mxu1 %v358_v10  ;;  %v370_v19 = vpack.c.bf16 %v130_v18, %v129_v17  ;;  %v132_v21 = vld [vmem:[%s532_s3 + $0x48] sm:$0xff]  ;;  %v133_v23 = vld [vmem:[%s532_s3 + $0x50] sm:$0xff]  ;;  %v134_v24 = vld [vmem:[%s532_s3 + $0x58] sm:$0xff] }
   0x7   :  { %361 = vmatpush3.bf16.msra.mxu1 %v358_v10  ;;  %v374_v22 = vpack.c.bf16 %v132_v21, %v131_v20  ;;  %v378_v25 = vpack.c.bf16 %v134_v24, %v133_v23  ;;  %v135_v26 = vld [vmem:[%s532_s3 + $0x60] sm:$0xff]  ;;  %v136_v27 = vld [vmem:[%s532_s3 + $0x68] sm:$0xff]  ;;  %v137_v29 = vld [vmem:[%s532_s3 + $0x70] sm:$0xff] }
   0x8   :  { %363 = vmatprep.subr.bf16.mxu1 %v362_v12  ;;  %v382_v28 = vpack.c.bf16 %v136_v27, %v135_v26  ;;  %v138_v30 = vld [vmem:[%s532_s3 + $0x78] sm:$0xff]  ;;  %v274_v32 = vld [vmem:[%s533_s2] ss:$0 sm:$0xff] }
   0x9   :  { %357 = vmatpush3.bf16.msra.mxu0 %v354_v6  ;;  %v386_v31 = vpack.c.bf16 %v138_v30, %v137_v29  ;;  %v277_v39 = vld [vmem:[%s534_s4] ss:$0 sm:$0xff] }
   0xa   :  { %v278_v1 = vld [vmem:[%s535_s5] ss:$0 sm:$0xff] }
   0xb   :  { %365 = vmatpush3.bf16.msra.mxu1 %v362_v12  ;;  %v279_v3 = vld [vmem:[%s536_s6] ss:$0 sm:$0xff] }
   0xc   :  { %313 = vmatmul.mubr.msk.f32.vlgmr.msra.gmra.mrb[0].mxu0 %vm39_vm0, %v27_v16  ;;  %367 = vmatprep.subr.bf16.mxu1 %v366_v15 }
   0xf   :  { %369 = vmatpush3.bf16.msra.mxu1 %v366_v15 }
  0x10   :  { %371 = vmatprep.subr.bf16.mxu1 %v370_v19 }
  0x13   :  { %373 = vmatpush3.bf16.msra.mxu1 %v370_v19 }
  0x14   :  { %375 = vmatprep.subr.bf16.mxu1 %v374_v22 }
  0x17   :  { %377 = vmatpush3.bf16.msra.mxu1 %v374_v22 }
  0x18   :  { %379 = vmatprep.subr.bf16.mxu1 %v378_v25 }
  0x1b   :  { %381 = vmatpush3.bf16.msra.mxu1 %v378_v25 }
  0x1c   :  { %383 = vmatprep.subr.bf16.mxu1 %v382_v28 }
  0x1f   :  { %385 = vmatpush3.bf16.msra.mxu1 %v382_v28 }
  0x20   :  { %387 = vmatprep.subr.bf16.mxu1 %v386_v31 }
  0x23   :  { %389 = vmatpush3.bf16.msra.mxu1 %v386_v31 }
  0xdf   :  { %v314_v33 = vpop.f32.mrb[0].mxu0 }
  0xe0   :  { %v118_v34 = vadd.f32 %v314_v33, %v274_v32  ;;  %v112_v35 = vpop.f32.mrb[1].mxu0 }
  0xe1   :  { %v113_v36 = vadd.f32 %v274_v32, %v112_v35 }
  0xe2   :  { %v122_v38 = vmax.f32 %v118_v34, 0.0 }
  0xe3   :  { %v121_v37 = vmax.f32 %v113_v36, 0.0 }
  0xe5   :  { %347 = vmatprep.mubr.f32.mxu1 %v121_v37 }
  0xe6   :  { %348 = vmatmul.mubr.f32.vlgmr.msra.gmra.mrb[0].mxu1 %v122_v38 }
 0x1b9   :  { %v349_v40 = vpop.f32.mrb[0].mxu1 }
 0x1ba   :  { %v212_v41 = vpop.f32.mrb[1].mxu1  ;;  %v218_v42 = vadd.f32 %v349_v40, %v277_v39 }
 0x1bb   :  { %v213_v43 = vadd.f32 %v277_v39, %v212_v41 }
 0x1bc   :  { %v222_v46 = vadd.f32 %v218_v42, %v27_v16 }
 0x1bd   :  { %v221_v44 = vadd.f32 %v213_v43, %v449_v5 }
 0x1be   :  { %v228_v47 = vsel %vm39_vm0, %v222_v46, 0.0 }
 0x1bf   :  { %v225_v45 = vsel %vm39_vm0, %v221_v44, 0.0 }
 0x1c0   :  { %226 = vadd.xlane.f32.xlu0 %v225_v45 }
 0x1c4   :  { %229 = vadd.xlane.f32.xlu0 %v228_v47 }
 0x24d   :  { %v227_v48 = vpop.xlane.xlu0 %226 }
 0x24e   :  { %v232_v49 = vmul.f32 0.03125, %v227_v48 }
 0x250   :  { %v234_v50 = vsub.f32 %v221_v44, %v232_v49 }
 0x251   :  { %v230_v51 = vpop.xlane.xlu0 %229 }
 0x252   :  { %v233_v52 = vmul.f32 0.03125, %v230_v51  ;;  %v236_v53 = vmul.f32 %v234_v50, %v234_v50 }
 0x254   :  { %v235_v54 = vsub.f32 %v222_v46, %v233_v52  ;;  %v238_v55 = vsel %vm39_vm0, %v236_v53, 0.0 }
 0x255   :  { %239 = vadd.xlane.f32.xlu1 %v238_v55 }
 0x256   :  { %v237_v56 = vmul.f32 %v235_v54, %v235_v54 }
 0x258   :  { %v241_v57 = vsel %vm39_vm0, %v237_v56, 0.0 }
 0x259   :  { %242 = vadd.xlane.f32.xlu1 %v241_v57 }
 0x2e2   :  { %v240_v58 = vpop.xlane.xlu1 %239 }
 0x2e3   :  { %v244_v59 = vmul.f32 0.03125, %v240_v58 }
 0x2e5   :  { %v246_v60 = vadd.f32 1e-06, %v244_v59 }
 0x2e6   :  { %v243_v61 = vpop.xlane.xlu1 %242 }
 0x2e7   :  { %390 = vrsqrt.f32 %v246_v60  ;;  %v245_v62 = vmul.f32 0.03125, %v243_v61 }
 0x2e9   :  { %v247_v63 = vadd.f32 1e-06, %v245_v62 }
 0x2eb   :  { %392 = vrsqrt.f32 %v247_v63 }
 0x2f1   :  { %v391_v0 = vpop.eup %390 }
 0x2f2   :  { %v250_v2 = vmul.f32 %v391_v0, %v234_v50 }
 0x2f4   :  { %v258_v4 = vmul.f32 %v278_v1, %v250_v2 }
 0x2f5   :  { %v393_v5 = vpop.eup %392 }
 0x2f6   :  { %v266_v6 = vadd.f32 %v279_v3, %v258_v4  ;;  %v251_v7 = vmul.f32 %v393_v5, %v235_v54 }
 0x2f8   :  { %268 = vst.msk [vmem:[%s537_s7] sm:$0xff] %vm39_vm0, %v266_v6  ;;  %v259_v8 = vmul.f32 %v278_v1, %v251_v7 }
 0x2fa   :  { %v267_v9 = vadd.f32 %v279_v3, %v259_v8 }
 0x2fc   :  { %269 = vst.msk [vmem:[%s537_s7 + $0x8] sm:$0xff] %vm39_vm0, %v267_v9 }

// kernel: decoder_forward.34
= control target key start
LH: loop header
LB: loop body
LE: loop exit
PB: predicated region body
PF: predicated region fallthrough
CT: control target
= control target key end

     0   :  { %12 = vsyncpa [#allocation3], 0  ;;  %s718_s0 = inlined_call_operand.vmem [shape: f32[16,32], index: 0, kind: input, shape index: {}]   ;;  %s719_s1 = inlined_call_operand.vmem [shape: f32[32,128], index: 1, kind: input, shape index: {}]   ;;  %s720_s2 = inlined_call_operand.hbm [shape: f32[1,128], index: 2, kind: input, shape index: {}]   ;;  %s721_s3 = inlined_call_operand.vmem [shape: f32[128,32], index: 3, kind: input, shape index: {}]   ;;  %s722_s4 = inlined_call_operand.hbm [shape: f32[1,32], index: 4, kind: input, shape index: {}]   ;;  %s723_s5 = inlined_call_operand.hbm [shape: f32[1,32], index: 5, kind: input, shape index: {}]   ;;  %s724_s6 = inlined_call_operand.hbm [shape: f32[1,32], index: 6, kind: input, shape index: {}]   ;;  %s725_s7 = inlined_call_operand.vmem [shape: f32[16,32], index: 7, kind: output, shape index: {}]  }
   0x1   :  { %13 = vsyncpa [#allocation5], 0 }
   0x2   :  { %14 = vsyncpa [#allocation8], 0  ;;  %s542_s24 = smov [#allocation4]   ;;  %s543_s26 = smov [#allocation2]  }
   0x3   :  { %s37_s25 = sshll.u32 %s542_s24, 4  ;;  %s25_s27 = sshll.u32 %s543_s26, 4  ;;  %s38_s25 = int_to_ptr.vmem [resolvable:$true] %s37_s25  ;;  %s26_s27 = int_to_ptr.vmem [resolvable:$true] %s25_s27 }
   0x4   :  { %s448_s30 = scalar_lea.hbm %s722_s4, 16 }
   0x5   :  { %p449_p0 = scmp.ne.s32.totalorder %s722_s4, %s448_s30  ;;  %p452_p1 = scmp.lt.u32.totalorder %s448_s30, %s722_s4 }
   0x7   :  { %p454_p2 = pnand %p452_p1, %p449_p0 }
   0x9   :  { %457 = shalt.err (!%p454_p2)
}
   0xa   :  { %s458_s12 = scalar_lea.vmem %s38_s25, 16  ;;  %s462_s13 = scalar_lea.vmem %s38_s25, 32 }
   0xb   :  { %p459_p3 = scmp.ne.s32.totalorder %s38_s25, %s458_s12  ;;  %p463_p4 = scmp.lt.s32.totalorder %s38_s25, %s38_s25 }
   0xc   :  { %p464_p5 = scmp.lt.s32.totalorder %s462_s13, %s458_s12 }
   0xe   :  { %p465_p6 = por %p464_p5, %p463_p4 }
  0x10   :  { %p466_p7 = pnand %p465_p6, %p459_p3 }
  0x12   :  { %469 = shalt.err (!%p466_p7)
}
  0x13   :  { %40 = dma.hbm_to_vmem [thread:$0]  %s722_s4, 16, %s38_s25, [#allocation5]  }
  0x14   :  { %s470_s18 = scalar_lea.hbm %s720_s2, 16 }
  0x15   :  { %p471_p8 = scmp.ne.s32.totalorder %s720_s2, %s470_s18  ;;  %p474_p9 = scmp.lt.u32.totalorder %s470_s18, %s720_s2 }
  0x17   :  { %p476_p10 = pnand %p474_p9, %p471_p8 }
  0x19   :  { %479 = shalt.err (!%p476_p10)
}
  0x1a   :  { %s480_s23 = scalar_lea.vmem %s26_s27, 16  ;;  %s484_s24 = scalar_lea.vmem %s26_s27, 32 }
  0x1b   :  { %p481_p11 = scmp.ne.s32.totalorder %s26_s27, %s480_s23  ;;  %p485_p12 = scmp.lt.s32.totalorder %s26_s27, %s26_s27 }
  0x1c   :  { %p486_p13 = scmp.lt.s32.totalorder %s484_s24, %s480_s23 }
  0x1e   :  { %p487_p0 = por %p486_p13, %p485_p12 }
  0x20   :  { %p488_p1 = pnand %p487_p0, %p481_p11 }
  0x22   :  { %491 = shalt.err (!%p488_p1)
}
  0x23   :  { %28 = dma.hbm_to_vmem [thread:$0]  %s720_s2, 16, %s26_s27, [#allocation3]  }
  0x24   :  { %s544_s26 = smov [#allocation6]   ;;  %s545_s29 = smov [#allocation7]  }
  0x25   :  { %s47_s28 = sshll.u32 %s544_s26, 4  ;;  %s57_s30 = sshll.u32 %s545_s29, 4  ;;  %s48_s28 = int_to_ptr.vmem [resolvable:$true] %s47_s28  ;;  %s58_s30 = int_to_ptr.vmem [resolvable:$true] %s57_s30 }
  0x26   :  { %s492_s10 = scalar_lea.hbm %s723_s5, 16 }
  0x27   :  { %p493_p2 = scmp.ne.s32.totalorder %s723_s5, %s492_s10  ;;  %p496_p3 = scmp.lt.u32.totalorder %s492_s10, %s723_s5 }
  0x29   :  { %p498_p4 = pnand %p496_p3, %p493_p2 }
  0x2b   :  { %501 = shalt.err (!%p498_p4)
}
  0x2c   :  { %s502_s2 = scalar_lea.vmem %s48_s28, 16  ;;  %s506_s27 = scalar_lea.vmem %s48_s28, 32 }
  0x2d   :  { %p503_p5 = scmp.ne.s32.totalorder %s48_s28, %s502_s2  ;;  %p507_p6 = scmp.lt.s32.totalorder %s48_s28, %s48_s28 }
  0x2e   :  { %p508_p7 = scmp.lt.s32.totalorder %s506_s27, %s502_s2 }
  0x30   :  { %p509_p8 = por %p508_p7, %p507_p6 }
  0x32   :  { %p510_p9 = pnand %p509_p8, %p503_p5 }
  0x34   :  { %513 = shalt.err (!%p510_p9)
}
  0x35   :  { %50 = dma.hbm_to_vmem [thread:$0]  %s723_s5, 16, %s48_s28, [#allocation5]  }
  0x36   :  { %s514_s19 = scalar_lea.hbm %s724_s6, 16 }
  0x37   :  { %p515_p10 = scmp.ne.s32.totalorder %s724_s6, %s514_s19  ;;  %p518_p11 = scmp.lt.u32.totalorder %s514_s19, %s724_s6 }
  0x39   :  { %p520_p12 = pnand %p518_p11, %p515_p10 }
  0x3b   :  { %523 = shalt.err (!%p520_p12)
}
  0x3c   :  { %s524_s24 = scalar_lea.vmem %s58_s30, 16  ;;  %s528_s4 = scalar_lea.vmem %s58_s30, 32 }
  0x3d   :  { %p525_p13 = scmp.ne.s32.totalorder %s58_s30, %s524_s24  ;;  %p529_p0 = scmp.lt.s32.totalorder %s58_s30, %s58_s30 }
  0x3e   :  { %p530_p1 = scmp.lt.s32.totalorder %s528_s4, %s524_s24 }
  0x40   :  { %p531_p2 = por %p530_p1, %p529_p0 }
  0x42   :  { %p532_p3 = pnand %p531_p2, %p525_p13 }
  0x44   :  { %535 = shalt.err (!%p532_p3)
}
  0x45   :  { %60 = dma.hbm_to_vmem [thread:$0]  %s724_s6, 16, %s58_s30, [#allocation8]  }
  0x46   :  { %536 = dma.done.wait [#allocation3], 16  }
  0x47   :  { %537 = vsyncadd [#allocation3], 4294967280 }
  0x48   :  { %538 = dma.done.wait [#allocation5], 32  }
  0x49   :  { %539 = vsyncadd [#allocation5], 4294967264 }
  0x4a   :  { %540 = dma.done.wait [#allocation8], 16  }
  0x4b   :  { %541 = vsyncadd [#allocation8], 4294967280  ;;  %vm86_vm0 = vcmask 261120   ;;  %v75_v0 = vld [vmem:[%s719_s1] sm:$0xff]  ;;  %v76_v1 = vld [vmem:[%s719_s1 + $0x8] sm:$0xff] }
  0x4c   :  { %v77_v2 = vld [vmem:[%s719_s1 + $0x10] sm:$0xff]  ;;  %v400_v3 = vpack.c.bf16 %v76_v1, %v75_v0  ;;  %v78_v4 = vld [vmem:[%s719_s1 + $0x18] sm:$0xff]  ;;  %v649_v5 = vld [vmem:[%s718_s0] sm:$0xff] }
  0x4d   :  { %v404_v6 = vpack.c.bf16 %v78_v4, %v77_v2  ;;  %362 = vmatprep.mubr.msk.f32.mxu0 %vm86_vm0, %v649_v5  ;;  %v170_v7 = vld [vmem:[%s721_s3] sm:$0xff]  ;;  %v171_v8 = vld [vmem:[%s721_s3 + $0x8] sm:$0xff]  ;;  %v172_v9 = vld [vmem:[%s721_s3 + $0x10] sm:$0xff] }
  0x4e   :  { %401 = vmatprep.subr.bf16.mxu0 %v400_v3  ;;  %v408_v10 = vpack.c.bf16 %v171_v8, %v170_v7  ;;  %v173_v11 = vld [vmem:[%s721_s3 + $0x18] sm:$0xff]  ;;  %v174_v13 = vld [vmem:[%s721_s3 + $0x20] sm:$0xff]  ;;  %v175_v14 = vld [vmem:[%s721_s3 + $0x28] sm:$0xff] }
  0x4f   :  { %403 = vmatpush3.bf16.msra.mxu0 %v400_v3  ;;  %v412_v12 = vpack.c.bf16 %v173_v11, %v172_v9  ;;  %v416_v15 = vpack.c.bf16 %v175_v14, %v174_v13  ;;  %v74_v16 = vld [vmem:[%s718_s0 + $0x8] sm:$0xff]  ;;  %v176_v17 = vld [vmem:[%s721_s3 + $0x30] sm:$0xff]  ;;  %v177_v18 = vld [vmem:[%s721_s3 + $0x38] sm:$0xff] }
  0x50   :  { %405 = vmatprep.subr.bf16.mxu0 %v404_v6  ;;  %409 = vmatprep.subr.bf16.mxu1 %v408_v10  ;;  %v420_v19 = vpack.c.bf16 %v177_v18, %v176_v17  ;;  %v178_v20 = vld [vmem:[%s721_s3 + $0x40] sm:$0xff]  ;;  %v179_v21 = vld [vmem:[%s721_s3 + $0x48] sm:$0xff]  ;;  %v180_v23 = vld [vmem:[%s721_s3 + $0x50] sm:$0xff] }
  0x51   :  { %411 = vmatpush3.bf16.msra.mxu1 %v408_v10  ;;  %v424_v22 = vpack.c.bf16 %v179_v21, %v178_v20  ;;  %v181_v24 = vld [vmem:[%s721_s3 + $0x58] sm:$0xff]  ;;  %v182_v26 = vld [vmem:[%s721_s3 + $0x60] sm:$0xff]  ;;  %v183_v27 = vld [vmem:[%s721_s3 + $0x68] sm:$0xff] }
  0x52   :  { %413 = vmatprep.subr.bf16.mxu1 %v412_v12  ;;  %v428_v25 = vpack.c.bf16 %v181_v24, %v180_v23  ;;  %v432_v28 = vpack.c.bf16 %v183_v27, %v182_v26  ;;  %v184_v29 = vld [vmem:[%s721_s3 + $0x70] sm:$0xff]  ;;  %v185_v30 = vld [vmem:[%s721_s3 + $0x78] sm:$0xff]  ;;  %v324_v32 = vld [vmem:[#allocation2] ss:$0 sm:$0xff] }
  0x53   :  { %407 = vmatpush3.bf16.msra.mxu0 %v404_v6  ;;  %v436_v31 = vpack.c.bf16 %v185_v30, %v184_v29  ;;  %v327_v39 = vld [vmem:[#allocation4] ss:$0 sm:$0xff]  ;;  %v328_v1 = vld [vmem:[#allocation6] ss:$0 sm:$0xff]  ;;  %v329_v3 = vld [vmem:[#allocation7] ss:$0 sm:$0xff] }
  0x55   :  { %415 = vmatpush3.bf16.msra.mxu1 %v412_v12 }
  0x56   :  { %363 = vmatmul.mubr.msk.f32.vlgmr.msra.gmra.mrb[0].mxu0 %vm86_vm0, %v74_v16  ;;  %417 = vmatprep.subr.bf16.mxu1 %v416_v15 }
  0x59   :  { %419 = vmatpush3.bf16.msra.mxu1 %v416_v15 }
  0x5a   :  { %421 = vmatprep.subr.bf16.mxu1 %v420_v19 }
  0x5d   :  { %423 = vmatpush3.bf16.msra.mxu1 %v420_v19 }
  0x5e   :  { %425 = vmatprep.subr.bf16.mxu1 %v424_v22 }
  0x61   :  { %427 = vmatpush3.bf16.msra.mxu1 %v424_v22 }
  0x62   :  { %429 = vmatprep.subr.bf16.mxu1 %v428_v25 }
  0x65   :  { %431 = vmatpush3.bf16.msra.mxu1 %v428_v25 }
  0x66   :  { %433 = vmatprep.subr.bf16.mxu1 %v432_v28 }
  0x69   :  { %435 = vmatpush3.bf16.msra.mxu1 %v432_v28 }
  0x6a   :  { %437 = vmatprep.subr.bf16.mxu1 %v436_v31 }
  0x6d   :  { %439 = vmatpush3.bf16.msra.mxu1 %v436_v31 }
 0x129   :  { %v364_v33 = vpop.f32.mrb[0].mxu0 }
 0x12a   :  { %v165_v34 = vadd.f32 %v364_v33, %v324_v32  ;;  %v159_v35 = vpop.f32.mrb[1].mxu0 }
 0x12b   :  { %v160_v36 = vadd.f32 %v324_v32, %v159_v35 }
 0x12c   :  { %v169_v38 = vmax.f32 %v165_v34, 0.0 }
 0x12d   :  { %v168_v37 = vmax.f32 %v160_v36, 0.0 }
 0x12f   :  { %397 = vmatprep.mubr.f32.mxu1 %v168_v37 }
 0x130   :  { %398 = vmatmul.mubr.f32.vlgmr.msra.gmra.mrb[0].mxu1 %v169_v38 }
 0x203   :  { %v399_v40 = vpop.f32.mrb[0].mxu1 }
 0x204   :  { %v259_v41 = vpop.f32.mrb[1].mxu1  ;;  %v265_v42 = vadd.f32 %v399_v40, %v327_v39 }
 0x205   :  { %v260_v43 = vadd.f32 %v327_v39, %v259_v41 }
 0x206   :  { %v269_v46 = vadd.f32 %v265_v42, %v74_v16 }
 0x207   :  { %v268_v44 = vadd.f32 %v260_v43, %v649_v5 }
 0x208   :  { %v275_v47 = vsel %vm86_vm0, %v269_v46, 0.0 }
 0x209   :  { %v272_v45 = vsel %vm86_vm0, %v268_v44, 0.0 }
 0x20a   :  { %273 = vadd.xlane.f32.xlu0 %v272_v45 }
 0x20e   :  { %276 = vadd.xlane.f32.xlu0 %v275_v47 }
 0x297   :  { %v274_v48 = vpop.xlane.xlu0 %273 }
 0x298   :  { %v279_v49 = vmul.f32 0.03125, %v274_v48 }
 0x29a   :  { %v281_v50 = vsub.f32 %v268_v44, %v279_v49 }
 0x29b   :  { %v277_v51 = vpop.xlane.xlu0 %276 }
 0x29c   :  { %v280_v52 = vmul.f32 0.03125, %v277_v51  ;;  %v283_v53 = vmul.f32 %v281_v50, %v281_v50 }
 0x29e   :  { %v282_v54 = vsub.f32 %v269_v46, %v280_v52  ;;  %v285_v55 = vsel %vm86_vm0, %v283_v53, 0.0 }
 0x29f   :  { %286 = vadd.xlane.f32.xlu1 %v285_v55 }
 0x2a0   :  { %v284_v56 = vmul.f32 %v282_v54, %v282_v54 }
 0x2a2   :  { %v288_v57 = vsel %vm86_vm0, %v284_v56, 0.0 }
 0x2a3   :  { %289 = vadd.xlane.f32.xlu1 %v288_v57 }
 0x32c   :  { %v287_v58 = vpop.xlane.xlu1 %286 }
 0x32d   :  { %v291_v59 = vmul.f32 0.03125, %v287_v58 }
 0x32f   :  { %v293_v60 = vadd.f32 1e-06, %v291_v59 }
 0x330   :  { %v290_v61 = vpop.xlane.xlu1 %289 }
 0x331   :  { %444 = vrsqrt.f32 %v293_v60  ;;  %v292_v62 = vmul.f32 0.03125, %v290_v61 }
 0x333   :  { %v294_v63 = vadd.f32 1e-06, %v292_v62 }
 0x335   :  { %446 = vrsqrt.f32 %v294_v63 }
 0x33b   :  { %v445_v0 = vpop.eup %444 }
 0x33c   :  { %v297_v2 = vmul.f32 %v445_v0, %v281_v50 }
 0x33e   :  { %v305_v4 = vmul.f32 %v328_v1, %v297_v2 }
 0x33f   :  { %v447_v5 = vpop.eup %446 }
 0x340   :  { %v313_v6 = vadd.f32 %v329_v3, %v305_v4  ;;  %v298_v7 = vmul.f32 %v447_v5, %v282_v54 }
 0x342   :  { %315 = vst.msk [vmem:[%s725_s7] sm:$0xff] %vm86_vm0, %v313_v6  ;;  %v306_v8 = vmul.f32 %v328_v1, %v298_v7 }
 0x344   :  { %v314_v9 = vadd.f32 %v329_v3, %v306_v8 }
 0x346   :  { %316 = vst.msk [vmem:[%s725_s7 + $0x8] sm:$0xff] %vm86_vm0, %v314_v9 }
 0x347   :  { %321 = vsyncpa [#allocation3], 1 }
 0x348   :  { %322 = vsyncpa [#allocation5], 1 }
 0x349   :  { %323 = vsyncpa [#allocation8], 1 }

// kernel: decoder_forward.24
= control target key start
LH: loop header
LB: loop body
LE: loop exit
PB: predicated region body
PF: predicated region fallthrough
CT: control target
= control target key end

     0   :  { %s1121_s12 = smov 0   ;;  %s1211_s0 = inlined_call_operand.vmem [shape: f32[2,8,32], index: 0, kind: input, shape index: {}]   ;;  %s1212_s1 = inlined_call_operand.vmem [shape: f32[2,8,64], index: 1, kind: input, shape index: {}]   ;;  %s1213_s2 = inlined_call_operand.vmem [shape: f32[2,1,1,8], index: 2, kind: input, shape index: {}]   ;;  %s1214_s3 = inlined_call_operand.vmem [shape: f32[2,8,32], index: 3, kind: output, shape index: {}]  }
   0x1 LB: > { %s966_s13 = sadd.s32 4294967295, %s1087_s12   ;;  %p970_p0 = scmp.ge.s32.totalorder %s1087_s12, 1  ;;  %s1087_s12 = sphi %s1121_s12, %s13_s12  }
   0x2   : > { %p153_p1 = scmp.lt.s32.totalorder %s1087_s12, 3 }
   0x4   : > { %p154_p2 = pnand %p970_p0, %p153_p1 }
   0x5   : > { %p182_p3 = scmp.lt.s32.totalorder (!%p154_p2), %s966_s13, 1  ;;  %v1089_v0 = vmov (!%p154_p2), 0.0   ;;  %vm1090_vm0 = vmmov (!%p154_p2), 0   ;;  %vm200_vm1 = vcmask (!%p154_p2), 64512   ;;  %s1091_s21 = smov (!%p154_p2), 120   ;;  %vm886_vm2 = vcmask (!%p154_p2), 130048  }
   0x6   : > { %157 = sbr.rel (%p154_p2) target bundleno = 1111 (0x457), region = 32  ;;  %1005 = vmatprep.subr.mxu0 (!%p154_p2), %v1089_v0  ;;  %1007 = vmatprep.mubr.msk.f32.mxu0 (!%p154_p2), %vm1090_vm0, %v1089_v0  ;;  %s1092_s22 = smov (!%p154_p2), 112   ;;  %vm888_vm3 = vcmask (!%p154_p2), 195584   ;;  %vm890_vm4 = vcmask (!%p154_p2), 261120  }
   0x7   : > { %1010 = vmatprep.subr.mxu1 (!%p154_p2), %v1089_v0  ;;  %1012 = vmatprep.mubr.msk.f32.mxu1 (!%p154_p2), %vm1090_vm0, %v1089_v0  ;;  %s1093_s23 = smov (!%p154_p2), 104   ;;  %s1094_s27 = smov (!%p154_p2), 96  }
   0x8   : > { %s1095_s28 = smov (!%p154_p2), 88   ;;  %s1096_s29 = smov (!%p154_p2), 72  }
   0x9   : > { %s1097_s30 = smov (!%p154_p2), 80   ;;  %s1098_s4 = smov (!%p154_p2), 8  }
   0xa   : > { %s1099_s5 = smov (!%p154_p2), 16   ;;  %s1100_s6 = smov (!%p154_p2), 24  }
   0xd   : > { %s1216_s13 = smov (!%p182_p3, %s966_s13), 1 }
   0xe   : > { %s1135_s14 = sshll.u32 %s1216_s13, 3  ;;  %s192_s26 = scalar_lea.vmem %s1213_s2, %s1216_s13 }
   0xf   : > { %s189_s17 = scalar_lea.vmem %s1212_s1, %s1135_s14  ;;  %s185_s20 = scalar_lea.vmem %s1211_s0, %s1135_s14  ;;  %v976_v4 = vld [vmem:[%s192_s26] ss:$0 sm:$0xff] }
  0x10   : > { %v1145_v1 = vld [vmem:[%s189_s17] sm:$0xff]  ;;  %s196_s9 = scalar_lea.vmem %s1214_s3, %s1135_s14 }
  0x11   : > { %1006 = vmatpush3.xpose.msk.msra.mxu0 %vm200_vm1, %v1145_v1  ;;  %v197_v2 = vld [vmem:[%s185_s20] sm:$0xff]  ;;  %374 = vrot.lane.b32.xlu1 %v1145_v1, %s1091_s21 }
  0x12   : > { %1020 = vmatprep.subr.mxu0 %v1089_v0 }
  0x14   : > { %1008 = vmatmul.mubr.msk.f32.vlgmr.msra.gmra.mrb[0].mxu0 %vm200_vm1, %v197_v2 }
  0x15   : > { %1022 = vmatprep.mubr.msk.f32.mxu0 %vm1090_vm0, %v1089_v0  ;;  %372 = vrot.lane.b32.xlu1 %v197_v2, %s1091_s21 }
  0x19   : > { %541 = vrot.lane.b32.xlu1 %v1145_v1, %s1092_s22 }
  0x1d   : > { %539 = vrot.lane.b32.xlu1 %v197_v2, %s1092_s22 }
  0x21   : > { %708 = vrot.lane.b32.xlu1 %v1145_v1, %s1093_s23 }
  0x25   : > { %706 = vrot.lane.b32.xlu1 %v197_v2, %s1093_s23 }
  0x29   : > { %461 = vrot.lane.b32.xlu1 %v1145_v1, %s1095_s28 }
  0x83   : > { %v375_v9 = vpop.permute.xlu1 %374 }
  0x87   : > { %v373_v12 = vpop.permute.xlu1 %372 }
  0x8b   : > { %v542_v15 = vpop.permute.xlu1 %541 }
  0x8f   : > { %v540_v16 = vpop.permute.xlu1 %539 }
  0x93   : > { %v709_v18 = vpop.permute.xlu1 %708 }
  0x97   : > { %v707_v19 = vpop.permute.xlu1 %706 }
  0x9b   : > { %v462_v20 = vpop.permute.xlu1 %461 }
  0x9c   : > { %1021 = vmatpush3.msra.mxu0 %v462_v20 }
  0x9d   : > { %1030 = vmatprep.subr.mxu0 %v1089_v0 }
  0xe7   : > { %v273_v3 = vpop.f32.mrb[0].mxu0 }
  0xe8   : > { %v277_v5 = vmul.f32 0.35355338, %v273_v3  ;;  %v1009_v6 = vpop.f32.mrb[1].mxu0 }
  0xea   : > { %v284_v7 = vadd.f32 %v976_v4, %v277_v5 }
  0xec   : > { %v285_v8 = vsel %vm200_vm1, %v284_v7, -inf }
  0xed   : > { %286 = vmax.xlane.f32.xlu0 %v285_v8 }
 0x103   : > { %294 = vrot.lane.b32.xlu0 %v1145_v1, %s1094_s27 }
 0x17a   : > { %v287_v10 = vpop.xlane.xlu0 %286 }
 0x17b   : > { %v288_v11 = vsub.f32 %v284_v7, %v287_v10 }
 0x17d   : > { %v289_v13 = vmul.f32 1.442695, %v288_v11 }
 0x17e   : > { %v295_v14 = vpop.permute.xlu0 %294 }
 0x17f   : > { %1065 = vpow2.f32 %v289_v13  ;;  %1011 = vmatpush3.msra.mxu1 %v295_v14 }
 0x180   : > { %1015 = vmatprep.subr.mxu1 %v1089_v0 }
 0x189   : > { %v1163_v17 = vpop.eup %1065 }
 0x18a   : > { %1013 = vmatmul.mubr.msk.f32.vlgmr.msra.gmra.mrb[0].mxu1 %vm200_vm1, %v1163_v17  ;;  %v291_v52 = vsel %vm200_vm1, %v1163_v17, 0.0 }
 0x18b   : > { %1016 = vmatpush3.xpose.msk.msra.mxu1 %vm200_vm1, %v375_v9  ;;  %1017 = vmatprep.mubr.msk.f32.mxu1 %vm1090_vm0, %v1089_v0 }
 0x18c   : > { %1025 = vmatprep.subr.mxu1 %v1089_v0 }
 0x18e   : > { %1018 = vmatmul.mubr.msk.f32.vlgmr.msra.gmra.mrb[2].mxu1 %vm200_vm1, %v373_v12 }
 0x18f   : > { %1026 = vmatpush3.xpose.msk.msra.mxu1 %vm200_vm1, %v542_v15  ;;  %1027 = vmatprep.mubr.msk.f32.mxu1 %vm1090_vm0, %v1089_v0 }
 0x190   : > { %1035 = vmatprep.subr.mxu1 %v1089_v0 }
 0x192   : > { %1028 = vmatmul.mubr.msk.f32.vlgmr.msra.gmra.mrb[4].mxu1 %vm200_vm1, %v540_v16 }
 0x193   : > { %1036 = vmatpush3.xpose.msk.msra.mxu1 %vm200_vm1, %v709_v18  ;;  %1037 = vmatprep.mubr.msk.f32.mxu1 %vm1090_vm0, %v1089_v0 }
 0x196   : > { %1038 = vmatmul.mubr.msk.f32.vlgmr.msra.gmra.mrb[6].mxu1 %vm200_vm1, %v707_v19 }
 0x25d   : > { %v1182_v21 = vpop.f32.mrb[0].mxu1 }
 0x25e   : > { %v1014_v22 = vpop.f32.mrb[1].mxu1 }
 0x261   : > { %v446_v23 = vpop.f32.mrb[2].mxu1 }
 0x262   : > { %v450_v24 = vmul.f32 0.35355338, %v446_v23  ;;  %v1019_v25 = vpop.f32.mrb[3].mxu1 }
 0x264   : > { %v451_v26 = vadd.f32 %v976_v4, %v450_v24 }
 0x265   : > { %v613_v27 = vpop.f32.mrb[4].mxu1 }
 0x266   : > { %v617_v28 = vmul.f32 0.35355338, %v613_v27  ;;  %v1029_v29 = vpop.f32.mrb[5].mxu1  ;;  %v452_v30 = vsel %vm200_vm1, %v451_v26, -inf }
 0x267   : > { %453 = vmax.xlane.f32.xlu1 %v452_v30 }
 0x268   : > { %v618_v31 = vadd.f32 %v976_v4, %v617_v28 }
 0x269   : > { %v780_v32 = vpop.f32.mrb[6].mxu1 }
 0x26a   : > { %v784_v33 = vmul.f32 0.35355338, %v780_v32  ;;  %v1039_v34 = vpop.f32.mrb[7].mxu1  ;;  %v619_v35 = vsel %vm200_vm1, %v618_v31, -inf }
 0x26b   : > { %620 = vmax.xlane.f32.xlu0 %v619_v35 }
 0x26c   : > { %v785_v36 = vadd.f32 %v976_v4, %v784_v33 }
 0x26e   : > { %v786_v37 = vsel %vm200_vm1, %v785_v36, -inf }
 0x26f   : > { %787 = vmax.xlane.f32.xlu0 %v786_v37 }
 0x278   : > { %795 = vrot.lane.b32.xlu1 %v1145_v1, %s1096_s29 }
 0x285   : > { %628 = vrot.lane.b32.xlu0 %v1145_v1, %s1097_s30 }
 0x2f4   : > { %v454_v38 = vpop.xlane.xlu1 %453 }
 0x2f5   : > { %v455_v39 = vsub.f32 %v451_v26, %v454_v38 }
 0x2f7   : > { %v456_v40 = vmul.f32 1.442695, %v455_v39 }
 0x2f8   : > { %v621_v41 = vpop.xlane.xlu0 %620  ;;  %v796_v50 = vpop.permute.xlu1 %795 }
 0x2f9   : > { %1067 = vpow2.f32 %v456_v40  ;;  %v622_v42 = vsub.f32 %v618_v31, %v621_v41 }
 0x2fb   : > { %v623_v43 = vmul.f32 1.442695, %v622_v42 }
 0x2fc   : > { %v788_v44 = vpop.xlane.xlu0 %787 }
 0x2fd   : > { %1069 = vpow2.f32 %v623_v43  ;;  %v789_v45 = vsub.f32 %v785_v36, %v788_v44 }
 0x2ff   : > { %v790_v46 = vmul.f32 1.442695, %v789_v45 }
 0x300   : > { %v629_v47 = vpop.permute.xlu0 %628 }
 0x301   : > { %1071 = vpow2.f32 %v790_v46 }
 0x303   : > { %v1068_v48 = vpop.eup %1067 }
 0x304   : > { %1023 = vmatmul.mubr.msk.f32.vlgmr.msra.gmra.mrb[2].mxu0 %vm200_vm1, %v1068_v48  ;;  %v458_v49 = vsel %vm200_vm1, %v1068_v48, 0.0 }
 0x305   : > { %1031 = vmatpush3.msra.mxu0 %v629_v47  ;;  %459 = vadd.xlane.f32.xlu1 %v458_v49 }
 0x306   : > { %1032 = vmatprep.mubr.msk.f32.mxu0 %vm1090_vm0, %v1089_v0  ;;  %1040 = vmatprep.subr.mxu0 %v1089_v0 }
 0x307   : > { %v1070_v51 = vpop.eup %1069 }
 0x308   : > { %1033 = vmatmul.mubr.msk.f32.vlgmr.msra.gmra.mrb[4].mxu0 %vm200_vm1, %v1070_v51  ;;  %v625_v53 = vsel %vm200_vm1, %v1070_v51, 0.0 }
 0x309   : > { %1041 = vmatpush3.msra.mxu0 %v796_v50  ;;  %292 = vadd.xlane.f32.xlu1 %v291_v52 }
 0x30a   : > { %626 = vadd.xlane.f32.xlu0 %v625_v53  ;;  %1042 = vmatprep.mubr.msk.f32.mxu0 %vm1090_vm0, %v1089_v0 }
 0x30b   : > { %v1072_v54 = vpop.eup %1071 }
 0x30c   : > { %1043 = vmatmul.mubr.msk.f32.vlgmr.msra.gmra.mrb[6].mxu0 %vm200_vm1, %v1072_v54  ;;  %v792_v55 = vsel %vm200_vm1, %v1072_v54, 0.0 }
 0x30e   : > { %793 = vadd.xlane.f32.xlu0 %v792_v55 }
 0x392   : > { %v460_v56 = vpop.xlane.xlu1 %459 }
 0x393   : > { %1073 = vrcp.f32 %v460_v56 }
 0x396   : > { %v293_v7 = vpop.xlane.xlu1 %292 }
 0x397   : > { %v627_v57 = vpop.xlane.xlu0 %626 }
 0x398   : > { %1075 = vrcp.f32 %v627_v57 }
 0x39b   : > { %v794_v58 = vpop.xlane.xlu0 %793 }
 0x39c   : > { %1077 = vrcp.f32 %v794_v58 }
 0x39d   : > { %v1074_v59 = vpop.eup %1073  ;;  %1079 = vrcp.f32 %v293_v7 }
 0x3a2   : > { %v1076_v63 = vpop.eup %1075 }
 0x3a6   : > { %v1078_v3 = vpop.eup %1077 }
 0x3a7   : > { %v1080_v8 = vpop.eup %1079 }
 0x3a8   : > { %v371_v11 = vmul.f32 %v1080_v8, %v1182_v21 }
 0x3d7   : > { %v533_v60 = vpop.f32.mrb[2].mxu0 }
 0x3d8   : > { %v538_v61 = vmul.f32 %v1074_v59, %v533_v60  ;;  %v1024_v62 = vpop.f32.mrb[3].mxu0 }
 0x3da   : > { %874 = vrot.lane.b32.xlu0 %v538_v61, %s1098_s4 }
 0x3db   : > { %v700_v0 = vpop.f32.mrb[4].mxu0 }
 0x3dc   : > { %v705_v1 = vmul.f32 %v1076_v63, %v700_v0  ;;  %v1034_v2 = vpop.f32.mrb[5].mxu0 }
 0x3de   : > { %878 = vrot.lane.b32.xlu1 %v705_v1, %s1099_s5 }
 0x3df   : > { %v867_v4 = vpop.f32.mrb[6].mxu0 }
 0x3e0   : > { %v872_v5 = vmul.f32 %v1078_v3, %v867_v4  ;;  %v1044_v6 = vpop.f32.mrb[7].mxu0 }
 0x3e2   : > { %882 = vrot.lane.b32.xlu1 %v872_v5, %s1100_s6 }
 0x44c   : > { %v875_v9 = vpop.permute.xlu0 %874 }
 0x44d   : > { %v885_v12 = vsel %vm200_vm1, %v371_v11, %v875_v9 }
 0x450   : > { %v879_v10 = vpop.permute.xlu1 %878 }
 0x451   : > { %v887_v13 = vsel %vm886_vm2, %v885_v12, %v879_v10 }
 0x454   : > { %v883_v14 = vpop.permute.xlu1 %882 }
 0x455   : > { %v889_v15 = vsel %vm888_vm3, %v887_v13, %v883_v14 }
 0x456   : > { %891 = vst.msk [vmem:[%s196_s9] sm:$0xff] %vm890_vm4, %v889_v15 }
 0x457 PF: > { %s13_s12 = sadd.s32 1, %s1087_s12  }
 0x458   : > { %p10_p4 = scmp.ge.s32.totalorder %s13_s12, 4  }
 0x45a   :  { %12 = sbr.rel (!%p10_p4) target bundleno = 1 (0x1), region = 68 }

// kernel: decoder_forward.35
= control target key start
LH: loop header
LB: loop body
LE: loop exit
PB: predicated region body
PF: predicated region fallthrough
CT: control target
= control target key end

     0   :  { %s980_s12 = smov 0   ;;  %s982_s13 = smov 0   ;;  %s1154_s0 = inlined_call_operand.vmem [shape: f32[16,32], index: 0, kind: input, shape index: {}]   ;;  %s1155_s1 = inlined_call_operand.vmem [shape: f32[32,30080], index: 1, kind: input, shape index: {}]   ;;  %s1156_s2 = inlined_call_operand.vmem [shape: f32[1,30080], index: 2, kind: input, shape index: {}]   ;;  %s1157_s3 = inlined_call_operand.vmem [shape: f32[16,30080], index: 3, kind: output, shape index: {}]  }
   0x1   :  { %s984_s14 = smov 0   ;;  %s986_s15 = smov 0  }
   0x2   :  { %s988_s16 = smov 0  }
   0x3 LB: > { %s28_s17 = sadd.s32 1, %s953_s15  ;;  %s816_s18 = sadd.s32 4294967295, %s957_s16   ;;  %s957_s16 = sphi %s988_s16, %s13_s16   ;;  %s953_s15 = sphi %s986_s15, %s1162_s15   ;;  %s949_s14 = sphi %s984_s14, %s1161_s14   ;;  %s945_s13 = sphi %s982_s13, %s1160_s13   ;;  %s941_s12 = sphi %s980_s12, %s1159_s12  }
   0x4   : > { %p30_p0 = scmp.ge.s32.totalorder %s28_s17, 47  ;;  %p76_p1 = scmp.ne.s32.totalorder %s945_s13, %s941_s12 }
   0x5   : > { %p77_p2 = scmp.eq.s32.totalorder %s957_s16, 0  ;;  %p134_p4 = scmp.eq.s32.totalorder %s816_s18, 46 }
   0x6   : > { %s1164_s17 = smov (%p30_p0, %s28_s17), 0  ;;  %s69_s20 = sadd.s32 1, %s945_s13 }
   0x7   : > { %p78_p3 = por %p77_p2, %p76_p1  ;;  %s65_s19 = ssub.s32 %s953_s15, %s1164_s17 }
   0x8   : > { %p67_p5 = scmp.eq.s32.totalorder %s65_s19, 0  ;;  %p1015_p6 = por %p134_p4, %p76_p1 }
   0x9   : > { %p820_p7 = scmp.ge.s32.totalorder %s957_s16, 47 }
   0xa   : > { %s1020_s22 = scalar_select %p67_p5, %s945_s13, %s69_s20  }
   0xb   : > { %168 = sbr.rel (%p820_p7) target bundleno = 33 (0x21), region = 20 }
  0x12   : > { %171 = sbr.rel (!%p78_p3) target bundleno = 33 (0x21), region = 24  ;;  %s173_s23 = sand.u32 (%p78_p3), 1, %s945_s13  }
  0x13   : > { %s832_s24 = smul.u32 (%p78_p3), 40, %s953_s15 }
  0x14   : > { %s875_s25 = smul.u32 (%p78_p3), 160, %s173_s23 }
  0x15   : > { %s1028_s28 = scalar_lea.vmem (%p78_p3), %s1155_s1, %s832_s24 }
  0x16   : > { %v194_v0 = vld [vmem:[%s1028_s28] sm:$0xff] (%p78_p3)  ;;  %v196_v1 = vld [vmem:[%s1028_s28 + $0x8] sm:$0xff] (%p78_p3)  ;;  %v198_v2 = vld [vmem:[%s1028_s28 + $0x10] sm:$0xff] (%p78_p3)  ;;  %s1033_s29 = scalar_lea.vmem (%p78_p3), [#allocation3], %s875_s25 }
  0x17   : > { %195 = vst [vmem:[%s1033_s29] sm:$0xff] (%p78_p3), %v194_v0  ;;  %197 = vst [vmem:[%s1033_s29 + $0x8] sm:$0xff] (%p78_p3), %v196_v1  ;;  %v200_v3 = vld [vmem:[%s1028_s28 + $0x18] sm:$0xff] (%p78_p3)  ;;  %v202_v4 = vld [vmem:[%s1028_s28 + $0x20] sm:$0xff] (%p78_p3) }
  0x18   : > { %199 = vst [vmem:[%s1033_s29 + $0x10] sm:$0xff] (%p78_p3), %v198_v2  ;;  %v204_v5 = vld [vmem:[%s1028_s28 + $0x758] sm:$0xff] (%p78_p3)  ;;  %201 = vst [vmem:[%s1033_s29 + $0x18] sm:$0xff] (%p78_p3), %v200_v3  ;;  %v206_v6 = vld [vmem:[%s1028_s28 + $0x760] sm:$0xff] (%p78_p3) }
  0x19   : > { %203 = vst [vmem:[%s1033_s29 + $0x20] sm:$0xff] %v202_v4  ;;  %205 = vst [vmem:[%s1033_s29 + $0x28] sm:$0xff] %v204_v5  ;;  %v208_v7 = vld [vmem:[%s1028_s28 + $0x768] sm:$0xff]  ;;  %v210_v8 = vld [vmem:[%s1028_s28 + $0x770] sm:$0xff] }
  0x1a   : > { %207 = vst [vmem:[%s1033_s29 + $0x30] sm:$0xff] %v206_v6  ;;  %209 = vst [vmem:[%s1033_s29 + $0x38] sm:$0xff] %v208_v7  ;;  %v212_v9 = vld [vmem:[%s1028_s28 + $0x778] sm:$0xff]  ;;  %v214_v10 = vld [vmem:[%s1028_s28 + $0xeb0] sm:$0xff] }
  0x1b   : > { %211 = vst [vmem:[%s1033_s29 + $0x40] sm:$0xff] %v210_v8  ;;  %v216_v11 = vld [vmem:[%s1028_s28 + $0xeb8] sm:$0xff]  ;;  %213 = vst [vmem:[%s1033_s29 + $0x48] sm:$0xff] %v212_v9  ;;  %v218_v12 = vld [vmem:[%s1028_s28 + $0xec0] sm:$0xff] }
  0x1c   : > { %215 = vst [vmem:[%s1033_s29 + $0x50] sm:$0xff] %v214_v10  ;;  %217 = vst [vmem:[%s1033_s29 + $0x58] sm:$0xff] %v216_v11  ;;  %v220_v13 = vld [vmem:[%s1028_s28 + $0xec8] sm:$0xff]  ;;  %v222_v14 = vld [vmem:[%s1028_s28 + $0xed0] sm:$0xff] }
  0x1d   : > { %219 = vst [vmem:[%s1033_s29 + $0x60] sm:$0xff] %v218_v12  ;;  %221 = vst [vmem:[%s1033_s29 + $0x68] sm:$0xff] %v220_v13  ;;  %v224_v15 = vld [vmem:[%s1028_s28 + $0x1608] sm:$0xff]  ;;  %v226_v16 = vld [vmem:[%s1028_s28 + $0x1610] sm:$0xff] }
  0x1e   : > { %223 = vst [vmem:[%s1033_s29 + $0x70] sm:$0xff] %v222_v14  ;;  %v228_v17 = vld [vmem:[%s1028_s28 + $0x1618] sm:$0xff]  ;;  %225 = vst [vmem:[%s1033_s29 + $0x78] sm:$0xff] %v224_v15  ;;  %v230_v18 = vld [vmem:[%s1028_s28 + $0x1620] sm:$0xff] }
  0x1f   : > { %227 = vst [vmem:[%s1033_s29 + $0x80] sm:$0xff] %v226_v16  ;;  %229 = vst [vmem:[%s1033_s29 + $0x88] sm:$0xff] %v228_v17  ;;  %v232_v19 = vld [vmem:[%s1028_s28 + $0x1628] sm:$0xff] }
  0x20   : > { %231 = vst [vmem:[%s1033_s29 + $0x90] sm:$0xff] %v230_v18  ;;  %233 = vst [vmem:[%s1033_s29 + $0x98] sm:$0xff] %v232_v19 }
  0x21 PF: > { %p822_p8 = scmp.ge.s32.totalorder %s957_s16, 1  ;;  %p246_p9 = scmp.lt.s32.totalorder %s957_s16, 48 }
  0x23   : > { %p247_p10 = pnand %p822_p8, %p246_p9 }
  0x24   : > { %s253_s30 = sand.u32 (!%p247_p10), 1, %s941_s12   ;;  %v959_v20 = vmov (!%p247_p10), 0.0   ;;  %v329_v50 = vld [vmem:[%s1154_s0] sm:$0xff] (!%p247_p10)  ;;  %vm351_vm0 = vcmask (!%p247_p10), 261120   ;;  %v330_v52 = vld [vmem:[%s1154_s0 + $0x8] sm:$0xff] (!%p247_p10)  ;;  %s298_s10 = smul.u32 (!%p247_p10), 5, %s949_s14  ;;  %v622_v53 = vlaneseq (!%p247_p10) }
  0x25   : > { %250 = sbr.rel (%p247_p10) target bundleno = 284 (0x11c), region = 51  ;;  %422 = vmatprep.mubr.f32.mxu0 (!%p247_p10), %v959_v20  ;;  %499 = vmatprep.mubr.f32.mxu1 (!%p247_p10), %v959_v20 }
  0x26   : > { %s876_s4 = smul.u32 (!%p247_p10), 160, %s253_s30  ;;  %p299_p11 = scmp.lt.s32.totalorder (!%p247_p10), %s298_s10, 234  ;;  %v623_v54 = vshrl.u32 (!%p247_p10), %v622_v53, 7 }
  0x27   : > { %s877_s20 = smul.u32 (!%p247_p10), 80, %s253_s30 }
  0x28   : > { %s1077_s5 = scalar_lea.vmem (!%p247_p10), [#allocation3], %s876_s4  ;;  %v624_v55 = vsub.s32 (!%p247_p10), 0, %v623_v54  ;;  %v628_v57 = vsub.s32 (!%p247_p10), 1, %v623_v54  ;;  %v632_v58 = vsub.s32 (!%p247_p10), 2, %v623_v54  ;;  %v636_v59 = vsub.s32 (!%p247_p10), 3, %v623_v54 }
  0x29   : > { %v332_v21 = vld [vmem:[%s1077_s5 + $0x8] sm:$0xff] (!%p247_p10)  ;;  %v337_v22 = vld [vmem:[%s1077_s5 + $0x30] sm:$0xff] (!%p247_p10)  ;;  %v331_v23 = vld [vmem:[%s1077_s5] sm:$0xff] (!%p247_p10)  ;;  %v640_v3 = vsub.s32 (!%p247_p10), 4, %v623_v54  ;;  %s1111_s23 = scalar_lea.vmem (!%p247_p10), [#allocation4], %s877_s20 }
  0x2a   : > { %v851_v24 = vpack.c.bf16 (!%p247_p10), %v337_v22, %v332_v21  ;;  %v336_v25 = vld [vmem:[%s1077_s5 + $0x28] sm:$0xff] (!%p247_p10)  ;;  %v342_v26 = vld [vmem:[%s1077_s5 + $0x58] sm:$0xff] (!%p247_p10)  ;;  %v347_v27 = vld [vmem:[%s1077_s5 + $0x80] sm:$0xff] (!%p247_p10) }
  0x2b   : > { %v853_v28 = vpack.c.bf16 (!%p247_p10), %v336_v25, %v331_v23  ;;  %v855_v29 = vpack.c.bf16 (!%p247_p10), %v347_v27, %v342_v26  ;;  %v334_v30 = vld [vmem:[%s1077_s5 + $0x18] sm:$0xff] (!%p247_p10)  ;;  %v339_v31 = vld [vmem:[%s1077_s5 + $0x40] sm:$0xff] (!%p247_p10)  ;;  %v341_v32 = vld [vmem:[%s1077_s5 + $0x50] sm:$0xff] (!%p247_p10) }
  0x2c   : > { %852 = vmatprep.subr.bf16.mxu0 %v851_v24  ;;  %v859_v33 = vpack.c.bf16 %v339_v31, %v334_v30  ;;  %v346_v34 = vld [vmem:[%s1077_s5 + $0x78] sm:$0xff]  ;;  %v333_v35 = vld [vmem:[%s1077_s5 + $0x10] sm:$0xff]  ;;  %v344_v39 = vld [vmem:[%s1077_s5 + $0x68] sm:$0xff]  ;;  %s1166_s10 = smov (!%p299_p11, %s298_s10), 234  ;;  %s833_s12 = smul.u32 (%p1015_p6), 40, %s949_s14 }
  0x2d   : > { %v338_v36 = vld [vmem:[%s1077_s5 + $0x38] sm:$0xff]  ;;  %854 = vmatpush1.bf16.msra.mxu0 %v853_v28  ;;  %v857_v37 = vpack.c.bf16 %v346_v34, %v341_v32  ;;  %v349_v40 = vld [vmem:[%s1077_s5 + $0x90] sm:$0xff]  ;;  %v335_v41 = vld [vmem:[%s1077_s5 + $0x20] sm:$0xff]  ;;  %s301_s19 = scalar_lea.vmem %s1156_s2, %s1166_s10 }
  0x2e   : > { %v861_v38 = vpack.c.bf16 %v338_v36, %v333_v35  ;;  %856 = vmatprep.subr.bf16.mxu0 %v855_v29  ;;  %860 = vmatprep.subr.bf16.mxu1 %v859_v33  ;;  %v863_v42 = vpack.c.bf16 %v349_v40, %v344_v39  ;;  %v340_v43 = vld [vmem:[%s1077_s5 + $0x48] sm:$0xff]  ;;  %v343_v44 = vld [vmem:[%s1077_s5 + $0x60] sm:$0xff]  ;;  %v345_v48 = vld [vmem:[%s1077_s5 + $0x70] sm:$0xff]  ;;  %s679_s25 = scalar_lea.vmem (%p1015_p6), %s1157_s3, %s833_s12 }
  0x2f   : > { %v348_v45 = vld [vmem:[%s1077_s5 + $0x88] sm:$0xff]  ;;  %v867_v46 = vpack.c.bf16 %v340_v43, %v335_v41  ;;  %v350_v49 = vld [vmem:[%s1077_s5 + $0x98] sm:$0xff]  ;;  %v620_v56 = vld [vmem:[%s301_s19] sm:$0x1f] }
  0x30   : > { %862 = vmatpush1.bf16.msra.mxu1 %v861_v38  ;;  %v865_v47 = vpack.c.bf16 %v348_v45, %v343_v44  ;;  %v871_v51 = vpack.c.bf16 %v350_v49, %v345_v48  ;;  %v625_v60 = vrot.slane %v620_v56, %v624_v55  ;;  %v629_v61 = vrot.slane %v620_v56, %v628_v57 }
  0x31   : > { %864 = vmatprep.subr.bf16.mxu1 %v863_v42  ;;  %858 = vmatpush1.bf16.msra.mxu0 %v857_v37  ;;  %v633_v62 = vrot.slane %v620_v56, %v632_v58  ;;  %v637_v0 = vrot.slane %v620_v56, %v636_v59  ;;  %v641_v12 = vrot.slane %v620_v56, %v640_v3 }
  0x32   : > { %868 = vmatprep.subr.bf16.mxu0 %v867_v46 }
  0x34   : > { %866 = vmatpush1.bf16.msra.mxu1 %v865_v47  ;;  %823 = vmatmul.mubr.msk.f32.vlgmr.msra.gmra.mrb[0].mxu0 %vm351_vm0, %v329_v50 }
  0x35   : > { %870 = vmatpush3.bf16.msra.mxu0 %v867_v46  ;;  %428 = vmatprep.mubr.f32.mxu0 %v959_v20 }
  0x36   : > { %872 = vmatprep.subr.bf16.mxu0 %v871_v51 }
  0x37   : > { %825 = vmatmul.mubr.msk.f32.vlgmr.msra.gmra.mrb[0].mxu1 %vm351_vm0, %v329_v50 }
  0x38   : > { %505 = vmatprep.mubr.f32.mxu1 %v959_v20  ;;  %824 = vmatmul.mubr.msk.f32.gmra.mrb[2].mxu0 %vm351_vm0, %v330_v52 }
  0x39   : > { %874 = vmatpush3.bf16.msra.mxu0 %v871_v51  ;;  %848 = vmatprep.mubr.msk.f32.mxu0 %vm351_vm0, %v329_v50 }
  0x3b   : > { %826 = vmatmul.mubr.msk.f32.gmra.mrb[2].mxu1 %vm351_vm0, %v330_v52 }
  0x3c   : > { %849 = vmatmul.mubr.msk.f32.vlgmr.msra.gmra.mrb[4].mxu0 %vm351_vm0, %v330_v52 }
 0x107   : > { %v424_v63 = vpop.f32.mrb[0].mxu0 }
 0x108   : > { %v647_v1 = vadd.f32 %v625_v60, %v424_v63  ;;  %v426_v2 = vpop.f32.mrb[1].mxu0 }
 0x109   : > { %v648_v4 = vadd.f32 %v629_v61, %v426_v2 }
 0x10a   : > { %v501_v5 = vpop.f32.mrb[0].mxu1  ;;  %657 = vst [vmem:[%s1111_s23] sm:$0xff] %v647_v1 }
 0x10b   : > { %v649_v6 = vadd.f32 %v633_v62, %v501_v5  ;;  %v503_v7 = vpop.f32.mrb[1].mxu1  ;;  %658 = vst [vmem:[%s1111_s23 + $0x8] sm:$0xff] %v648_v4  ;;  %v430_v8 = vpop.f32.mrb[2].mxu0 }
 0x10c   : > { %v650_v9 = vadd.f32 %v637_v0, %v503_v7  ;;  %v652_v10 = vadd.f32 %v625_v60, %v430_v8  ;;  %v432_v11 = vpop.f32.mrb[3].mxu0 }
 0x10d   : > { %659 = vst [vmem:[%s1111_s23 + $0x10] sm:$0xff] %v649_v6  ;;  %v653_v13 = vadd.f32 %v629_v61, %v432_v11  ;;  %673 = sbr.rel (!%p1015_p6) target bundleno = 284 (0x11c), region = 67 }
 0x10e   : > { %660 = vst [vmem:[%s1111_s23 + $0x18] sm:$0xff] %v650_v9  ;;  %v507_v14 = vpop.f32.mrb[2].mxu1  ;;  %662 = vst [vmem:[%s1111_s23 + $0x28] sm:$0xff] %v652_v10 }
 0x10f   : > { %v654_v15 = vadd.f32 %v633_v62, %v507_v14  ;;  %v509_v16 = vpop.f32.mrb[3].mxu1  ;;  %663 = vst [vmem:[%s1111_s23 + $0x30] sm:$0xff] %v653_v13  ;;  %v850_v17 = vpop.f32.mrb[4].mxu0 }
 0x110   : > { %v655_v18 = vadd.f32 %v637_v0, %v509_v16  ;;  %v656_v19 = vadd.f32 %v850_v17, %v641_v12  ;;  %v578_v20 = vpop.f32.mrb[5].mxu0 }
 0x111   : > { %664 = vst [vmem:[%s1111_s23 + $0x38] sm:$0xff] %v654_v15  ;;  %v651_v21 = vadd.f32 %v641_v12, %v578_v20  ;;  %v692_v22 = vld [vmem:[%s1111_s23] sm:$0xff] (%p1015_p6) }
 0x112   : > { %665 = vst [vmem:[%s1111_s23 + $0x40] sm:$0xff] %v655_v18  ;;  %666 = vst [vmem:[%s1111_s23 + $0x48] sm:$0xff] %v656_v19  ;;  %v694_v23 = vld [vmem:[%s1111_s23 + $0x8] sm:$0xff] (%p1015_p6) }
 0x113   : > { %661 = vst [vmem:[%s1111_s23 + $0x20] sm:$0xff] %v651_v21  ;;  %693 = vst [vmem:[%s679_s25] sm:$0xff] (%p1015_p6), %v692_v22 }
 0x114   : > { %v696_v24 = vld [vmem:[%s1111_s23 + $0x10] sm:$0xff]  ;;  %695 = vst [vmem:[%s679_s25 + $0x8] sm:$0xff] %v694_v23 }
 0x115   : > { %v698_v25 = vld [vmem:[%s1111_s23 + $0x18] sm:$0xff]  ;;  %v702_v27 = vld [vmem:[%s1111_s23 + $0x28] sm:$0xff]  ;;  %697 = vst [vmem:[%s679_s25 + $0x10] sm:$0xff] %v696_v24 }
 0x116   : > { %v704_v28 = vld [vmem:[%s1111_s23 + $0x30] sm:$0xff]  ;;  %699 = vst [vmem:[%s679_s25 + $0x18] sm:$0xff] %v698_v25  ;;  %703 = vst [vmem:[%s679_s25 + $0x758] sm:$0xff] %v702_v27 }
 0x117   : > { %705 = vst [vmem:[%s679_s25 + $0x760] sm:$0xff] %v704_v28 }
 0x118   : > { %v706_v29 = vld [vmem:[%s1111_s23 + $0x38] sm:$0xff] }
 0x119   : > { %v708_v30 = vld [vmem:[%s1111_s23 + $0x40] sm:$0xff]  ;;  %707 = vst [vmem:[%s679_s25 + $0x768] sm:$0xff] %v706_v29  ;;  %v710_v31 = vld [vmem:[%s1111_s23 + $0x48] sm:$0xff] }
 0x11a   : > { %v700_v26 = vld [vmem:[%s1111_s23 + $0x20] sm:$0xff]  ;;  %709 = vst [vmem:[%s679_s25 + $0x770] sm:$0xff] %v708_v30  ;;  %711 = vst [vmem:[%s679_s25 + $0x778] sm:$0xff] %v710_v31 }
 0x11b   : > { %701 = vst [vmem:[%s679_s25 + $0x20] sm:$0xff] %v700_v26 }
 0x11c PF: > { %s13_s16 = sadd.s32 1, %s957_s16   ;;  %s1159_s12 = smov %s945_s13 }
 0x11d   : > { %p10_p12 = scmp.ge.s32.totalorder %s13_s16, 49   ;;  %s1160_s13 = smov %s1020_s22 }
 0x11e   : > { %s1161_s14 = smov %s953_s15  ;;  %s1162_s15 = smov %s1164_s17 }
 0x11f   :  { %12 = sbr.rel (!%p10_p12) target bundleno = 3 (0x3), region = 127 }

</bundles_post_ra>
